<compile_context>
chip_gen: v7x
topology: tpu7x:2x2x1
jax: 0.10.0
libtpu: 0.0.40
codegen_flags: <defaults>
</compile_context>

<pallas_src>
import jax
import jax.numpy as jnp
import numpy as np
from jax.experimental import pallas as pl
from jax.experimental.pallas import tpu as pltpu

CHAR_EMBED = 50          # self.char_embed_size
C_PAD = 64               # char channels zero-padded for aligned matmul K dim
MAX_WORD = 21            # self.max_word_length
KERNEL_K = 5             # CNN kernel size used in a5
T_OUT = MAX_WORD - KERNEL_K + 1   # 17 (VALID conv)


def _round_up(x, m):
    return (x + m - 1) // m * m


def model_embeddings_kernel(emb_ref, wc_ref, bc_ref, whw_ref, bhw_ref, out_ref):
    """Conv1d (K shifted matmuls) + max-over-time + ReLU + fused Highway.

    emb_ref : (MAX_WORD, tile_n, C_PAD)  bf16 char embeddings (word-pos leading)
    wc_ref  : (KERNEL_K, C_PAD, E_pad)   bf16 conv weight, per-tap
    bc_ref  : (1, E_pad)                 f32 conv bias (zero in padded lanes)
    whw_ref : (E_pad, 2*E_pad)           bf16 [w_proj | w_gate] fused
    bhw_ref : (1, 2*E_pad)               f32 [b_proj | b_gate] fused
    out_ref : (tile_n, E_pad)            f32 (lane-dense, sliced in wrapper)
    """
    e_pad = out_ref.shape[1]

    # Conv output at time t: sum_k emb[t+k] @ W_k ; fold max over t on the fly.
    pooled = None
    for t in range(T_OUT):
        c = jnp.dot(emb_ref[t], wc_ref[0], preferred_element_type=jnp.float32)
        for k in range(1, KERNEL_K):
            c = c + jnp.dot(emb_ref[t + k], wc_ref[k],
                            preferred_element_type=jnp.float32)
        pooled = c if pooled is None else jnp.maximum(pooled, c)

    # Hoisted bias + ReLU:  max_t relu(c_t + b) == relu(max_t c_t + b).
    pooled = jnp.maximum(pooled + bc_ref[...], 0.0)

    # Fused highway: one matmul produces [proj | gate] pre-activations.
    hw = jnp.dot(pooled.astype(whw_ref.dtype), whw_ref[...],
                 preferred_element_type=jnp.float32) + bhw_ref[...]
    x_proj = jnp.maximum(hw[:, :e_pad], 0.0)
    x_gate = jax.nn.sigmoid(hw[:, e_pad:])
    out_ref[...] = x_gate * x_proj + (1.0 - x_gate) * pooled


def model_embeddings_forward(input_ids, params, embed_size, tile_n=256):
    """input_ids: (sent_len, batch, max_word) int32 char indices."""
    sent_len, batch, max_word = input_ids.shape
    assert max_word == MAX_WORD
    n_words = sent_len * batch
    e_pad = _round_up(embed_size, 128)

    # Pick the row tile: large (256) for real workloads, clamped for tiny tests.
    tile_n = min(tile_n, _round_up(n_words, 8))
    n_pad = pl.cdiv(n_words, tile_n) * tile_n

    # --- glue: pad N, gather char embeddings in (word_pos, word, chan) layout -
    ids = input_ids.reshape(n_words, max_word)
    if n_pad != n_words:
        pad = jnp.zeros((n_pad - n_words, max_word), ids.dtype)
        ids = jnp.concatenate([ids, pad], axis=0)
    ids_t = ids.T                                       # (MAX_WORD, n_pad)
    emb = params["char_emb_pad"][ids_t]                 # (MAX_WORD, n_pad, C_PAD) bf16

    out = pl.pallas_call(
        model_embeddings_kernel,
        out_shape=jax.ShapeDtypeStruct((n_pad, e_pad), jnp.float32),
        grid_spec=pltpu.PrefetchScalarGridSpec(
            num_scalar_prefetch=0,
            grid=(n_pad // tile_n,),
            in_specs=[
                pl.BlockSpec((MAX_WORD, tile_n, C_PAD), lambda i: (0, i, 0)),
                pl.BlockSpec((KERNEL_K, C_PAD, e_pad), lambda i: (0, 0, 0)),
                pl.BlockSpec((1, e_pad), lambda i: (0, 0)),
                pl.BlockSpec((e_pad, 2 * e_pad), lambda i: (0, 0)),
                pl.BlockSpec((1, 2 * e_pad), lambda i: (0, 0)),
            ],
            out_specs=pl.BlockSpec((tile_n, e_pad), lambda i: (i, 0)),
        ),
        compiler_params=pltpu.CompilerParams(
            dimension_semantics=("parallel",)),
    )(emb, params["wc_pad"], params["bc_pad"],
      params["whw_pad"], params["bhw_pad"])

    # TODO(synk): dropout(p=0.3) is identity here (eval mode); PyTorch training
    # RNG cannot be reproduced bit-exactly anyway.
    return out[:n_words, :embed_size].reshape(sent_len, batch, embed_size)


def init_params(key, vocab_size, pad_idx, embed_size):
    k1, k2, k3, k4, k5, k6, k7 = jax.random.split(key, 7)
    e_pad = _round_up(embed_size, 128)

    # --- reference (PyTorch-layout, f32) parameters ---------------------------
    char_emb = 0.1 * jax.random.normal(k1, (vocab_size, CHAR_EMBED), jnp.float32)
    char_emb = char_emb.at[pad_idx].set(0.0)          # padding_idx row is zero
    # PyTorch Conv1d weight layout: (out_channels=E, in_channels=C, K)
    w_conv = 0.05 * jax.random.normal(k2, (embed_size, CHAR_EMBED, KERNEL_K),
                                      jnp.float32)
    b_conv = 0.05 * jax.random.normal(k3, (1, embed_size), jnp.float32)
    w_proj = 0.1 * jax.random.normal(k4, (embed_size, embed_size), jnp.float32)
    b_proj = 0.1 * jax.random.normal(k5, (1, embed_size), jnp.float32)
    w_gate = 0.1 * jax.random.normal(k6, (embed_size, embed_size), jnp.float32)
    b_gate = 0.1 * jax.random.normal(k7, (1, embed_size), jnp.float32)

    # --- kernel-side padded / fused / bf16 parameters -------------------------
    char_emb_pad = jnp.zeros((vocab_size, C_PAD), jnp.bfloat16)
    char_emb_pad = char_emb_pad.at[:, :CHAR_EMBED].set(
        char_emb.astype(jnp.bfloat16))
    # Per-tap conv weight: wc_pad[k, c, e] = w_conv[e, c, k]
    wc_pad = jnp.zeros((KERNEL_K, C_PAD, e_pad), jnp.bfloat16)
    wc_pad = wc_pad.at[:, :CHAR_EMBED, :embed_size].set(
        jnp.transpose(w_conv, (2, 1, 0)).astype(jnp.bfloat16))
    bc_pad = jnp.zeros((1, e_pad), jnp.float32).at[:, :embed_size].set(b_conv)
    # Fused highway weight [proj | gate] (zero-padded rows/cols keep math exact).
    whw_pad = jnp.zeros((e_pad, 2 * e_pad), jnp.bfloat16)
    whw_pad = whw_pad.at[:embed_size, :embed_size].set(w_proj.astype(jnp.bfloat16))
    whw_pad = whw_pad.at[:embed_size, e_pad:e_pad + embed_size].set(
        w_gate.astype(jnp.bfloat16))
    bhw_pad = jnp.zeros((1, 2 * e_pad), jnp.float32)
    bhw_pad = bhw_pad.at[:, :embed_size].set(b_proj)
    bhw_pad = bhw_pad.at[:, e_pad:e_pad + embed_size].set(b_gate)

    return dict(char_emb=char_emb, w_conv=w_conv, b_conv=b_conv,
                w_proj=w_proj, b_proj=b_proj, w_gate=w_gate, b_gate=b_gate,
                char_emb_pad=char_emb_pad, wc_pad=wc_pad, bc_pad=bc_pad,
                whw_pad=whw_pad, bhw_pad=bhw_pad)


def reference_forward(input_ids, params, embed_size):
    """Pure-JAX f32 reference mirroring the PyTorch module (eval mode)."""
    sent_len, batch, _ = input_ids.shape
    n_words = sent_len * batch
    emb = params["char_emb"][input_ids.reshape(n_words, MAX_WORD)]   # (N, L, C)
    x = jnp.transpose(emb, (0, 2, 1))                                # (N, C, L)
    conv = jax.lax.conv_general_dilated(
        x, params["w_conv"], window_strides=(1,), padding="VALID",
        dimension_numbers=("NCH", "OIH", "NCH"))
    conv = conv + params["b_conv"].reshape(1, embed_size, 1)
    pooled = jnp.max(jax.nn.relu(conv), axis=2)                      # (N, E)
    proj = jax.nn.relu(pooled @ params["w_proj"] + params["b_proj"])
    gate = jax.nn.sigmoid(pooled @ params["w_gate"] + params["b_gate"])
    hw = gate * proj + (1.0 - gate) * pooled
    return hw.reshape(sent_len, batch, embed_size)


if __name__ == "__main__":
    key = jax.random.PRNGKey(0)
    kp, ki = jax.random.split(key)

    vocab_size = 30            # synthetic char vocab (len(vocab.char2id))
    pad_idx = 0                # vocab.char2id['<pad>']
    embed_size = 32
    sent_len, batch = 8, 2

    params = init_params(kp, vocab_size, pad_idx, embed_size)
    input_ids = jax.random.randint(ki, (sent_len, batch, MAX_WORD),
                                   0, vocab_size, dtype=jnp.int32)

    out = model_embeddings_forward(input_ids, params, embed_size)
    out = jax.block_until_ready(out)
    assert out.shape == (sent_len, batch, embed_size)

    # Kernel uses bf16 matmul operands (f32 accumulation), so compare against
    # the f32 reference with loosened tolerance.
    ref = reference_forward(input_ids, params, embed_size)
    np.testing.assert_allclose(np.asarray(out), np.asarray(ref),
                               rtol=2e-2, atol=2e-2)
    print("KERNEL_OK")
</pallas_src>

<mosaic_0001>
module attributes {stable_mosaic.version = 11 : i64} {
  func.func @model_embeddings_kernel(%arg0: i32, %arg1: memref<21x16x64xbf16, #tpu.memory_space<vmem>>, %arg2: memref<5x64x128xbf16, #tpu.memory_space<vmem>>, %arg3: memref<1x128xf32, #tpu.memory_space<vmem>>, %arg4: memref<128x256xbf16, #tpu.memory_space<vmem>>, %arg5: memref<1x256xf32, #tpu.memory_space<vmem>>, %arg6: memref<16x128xf32, #tpu.memory_space<vmem>>) attributes {dimension_semantics = [#tpu.dimension_semantics<parallel>], iteration_bounds = array<i64: 1>, scalar_prefetch = 0 : i64, scratch_operands = 0 : i64, tpu.core_type = #tpu.core_type<tc>, window_params = [{transform_indices = @transform_0, window_bounds = array<i64: 21, 16, 64>}, {pipeline_mode = #tpu.pipeline_mode<synchronous>, transform_indices = @transform_1, window_bounds = array<i64: 5, 64, 128>}, {pipeline_mode = #tpu.pipeline_mode<synchronous>, transform_indices = @transform_2, window_bounds = array<i64: 1, 128>}, {pipeline_mode = #tpu.pipeline_mode<synchronous>, transform_indices = @transform_3, window_bounds = array<i64: 128, 256>}, {pipeline_mode = #tpu.pipeline_mode<synchronous>, transform_indices = @transform_4, window_bounds = array<i64: 1, 256>}, {transform_indices = @transform_5, window_bounds = array<i64: 16, 128>}]} {
    %c0 = arith.constant 0 : index
    %c0_0 = arith.constant 0 : index
    %c0_1 = arith.constant 0 : index
    %0 = vector.load %arg1[%c0, %c0_0, %c0_1] : memref<21x16x64xbf16, #tpu.memory_space<vmem>>, vector<1x16x64xbf16>
    %1 = vector.shape_cast %0 : vector<1x16x64xbf16> to vector<16x64xbf16>
    %c0_2 = arith.constant 0 : index
    %c0_3 = arith.constant 0 : index
    %c0_4 = arith.constant 0 : index
    %2 = vector.load %arg2[%c0_2, %c0_3, %c0_4] : memref<5x64x128xbf16, #tpu.memory_space<vmem>>, vector<1x64x128xbf16>
    %3 = vector.shape_cast %2 : vector<1x64x128xbf16> to vector<64x128xbf16>
    %cst = arith.constant dense<0.000000e+00> : vector<16x128xf32>
    %4 = tpu.matmul %1, %3, %cst {dimension_numbers = #tpu.dot_dimension_numbers<[1], [0], [0], [1], [0, 0, 1, 1], [], []>} : vector<16x64xbf16>, vector<64x128xbf16>, vector<16x128xf32> -> vector<16x128xf32>
    %c1 = arith.constant 1 : index
    %c0_5 = arith.constant 0 : index
    %c0_6 = arith.constant 0 : index
    %5 = vector.load %arg1[%c1, %c0_5, %c0_6] : memref<21x16x64xbf16, #tpu.memory_space<vmem>>, vector<1x16x64xbf16>
    %6 = vector.shape_cast %5 : vector<1x16x64xbf16> to vector<16x64xbf16>
    %c1_7 = arith.constant 1 : index
    %c0_8 = arith.constant 0 : index
    %c0_9 = arith.constant 0 : index
    %7 = vector.load %arg2[%c1_7, %c0_8, %c0_9] : memref<5x64x128xbf16, #tpu.memory_space<vmem>>, vector<1x64x128xbf16>
    %8 = vector.shape_cast %7 : vector<1x64x128xbf16> to vector<64x128xbf16>
    %cst_10 = arith.constant dense<0.000000e+00> : vector<16x128xf32>
    %9 = tpu.matmul %6, %8, %cst_10 {dimension_numbers = #tpu.dot_dimension_numbers<[1], [0], [0], [1], [0, 0, 1, 1], [], []>} : vector<16x64xbf16>, vector<64x128xbf16>, vector<16x128xf32> -> vector<16x128xf32>
    %10 = arith.addf %4, %9 : vector<16x128xf32>
    %c2 = arith.constant 2 : index
    %c0_11 = arith.constant 0 : index
    %c0_12 = arith.constant 0 : index
    %11 = vector.load %arg1[%c2, %c0_11, %c0_12] : memref<21x16x64xbf16, #tpu.memory_space<vmem>>, vector<1x16x64xbf16>
    %12 = vector.shape_cast %11 : vector<1x16x64xbf16> to vector<16x64xbf16>
    %c2_13 = arith.constant 2 : index
    %c0_14 = arith.constant 0 : index
    %c0_15 = arith.constant 0 : index
    %13 = vector.load %arg2[%c2_13, %c0_14, %c0_15] : memref<5x64x128xbf16, #tpu.memory_space<vmem>>, vector<1x64x128xbf16>
    %14 = vector.shape_cast %13 : vector<1x64x128xbf16> to vector<64x128xbf16>
    %cst_16 = arith.constant dense<0.000000e+00> : vector<16x128xf32>
    %15 = tpu.matmul %12, %14, %cst_16 {dimension_numbers = #tpu.dot_dimension_numbers<[1], [0], [0], [1], [0, 0, 1, 1], [], []>} : vector<16x64xbf16>, vector<64x128xbf16>, vector<16x128xf32> -> vector<16x128xf32>
    %16 = arith.addf %10, %15 : vector<16x128xf32>
    %c3 = arith.constant 3 : index
    %c0_17 = arith.constant 0 : index
    %c0_18 = arith.constant 0 : index
    %17 = vector.load %arg1[%c3, %c0_17, %c0_18] : memref<21x16x64xbf16, #tpu.memory_space<vmem>>, vector<1x16x64xbf16>
    %18 = vector.shape_cast %17 : vector<1x16x64xbf16> to vector<16x64xbf16>
    %c3_19 = arith.constant 3 : index
    %c0_20 = arith.constant 0 : index
    %c0_21 = arith.constant 0 : index
    %19 = vector.load %arg2[%c3_19, %c0_20, %c0_21] : memref<5x64x128xbf16, #tpu.memory_space<vmem>>, vector<1x64x128xbf16>
    %20 = vector.shape_cast %19 : vector<1x64x128xbf16> to vector<64x128xbf16>
    %cst_22 = arith.constant dense<0.000000e+00> : vector<16x128xf32>
    %21 = tpu.matmul %18, %20, %cst_22 {dimension_numbers = #tpu.dot_dimension_numbers<[1], [0], [0], [1], [0, 0, 1, 1], [], []>} : vector<16x64xbf16>, vector<64x128xbf16>, vector<16x128xf32> -> vector<16x128xf32>
    %22 = arith.addf %16, %21 : vector<16x128xf32>
    %c4 = arith.constant 4 : index
    %c0_23 = arith.constant 0 : index
    %c0_24 = arith.constant 0 : index
    %23 = vector.load %arg1[%c4, %c0_23, %c0_24] : memref<21x16x64xbf16, #tpu.memory_space<vmem>>, vector<1x16x64xbf16>
    %24 = vector.shape_cast %23 : vector<1x16x64xbf16> to vector<16x64xbf16>
    %c4_25 = arith.constant 4 : index
    %c0_26 = arith.constant 0 : index
    %c0_27 = arith.constant 0 : index
    %25 = vector.load %arg2[%c4_25, %c0_26, %c0_27] : memref<5x64x128xbf16, #tpu.memory_space<vmem>>, vector<1x64x128xbf16>
    %26 = vector.shape_cast %25 : vector<1x64x128xbf16> to vector<64x128xbf16>
    %cst_28 = arith.constant dense<0.000000e+00> : vector<16x128xf32>
    %27 = tpu.matmul %24, %26, %cst_28 {dimension_numbers = #tpu.dot_dimension_numbers<[1], [0], [0], [1], [0, 0, 1, 1], [], []>} : vector<16x64xbf16>, vector<64x128xbf16>, vector<16x128xf32> -> vector<16x128xf32>
    %28 = arith.addf %22, %27 : vector<16x128xf32>
    %c1_29 = arith.constant 1 : index
    %c0_30 = arith.constant 0 : index
    %c0_31 = arith.constant 0 : index
    %29 = vector.load %arg1[%c1_29, %c0_30, %c0_31] : memref<21x16x64xbf16, #tpu.memory_space<vmem>>, vector<1x16x64xbf16>
    %30 = vector.shape_cast %29 : vector<1x16x64xbf16> to vector<16x64xbf16>
    %c0_32 = arith.constant 0 : index
    %c0_33 = arith.constant 0 : index
    %c0_34 = arith.constant 0 : index
    %31 = vector.load %arg2[%c0_32, %c0_33, %c0_34] : memref<5x64x128xbf16, #tpu.memory_space<vmem>>, vector<1x64x128xbf16>
    %32 = vector.shape_cast %31 : vector<1x64x128xbf16> to vector<64x128xbf16>
    %cst_35 = arith.constant dense<0.000000e+00> : vector<16x128xf32>
    %33 = tpu.matmul %30, %32, %cst_35 {dimension_numbers = #tpu.dot_dimension_numbers<[1], [0], [0], [1], [0, 0, 1, 1], [], []>} : vector<16x64xbf16>, vector<64x128xbf16>, vector<16x128xf32> -> vector<16x128xf32>
    %c2_36 = arith.constant 2 : index
    %c0_37 = arith.constant 0 : index
    %c0_38 = arith.constant 0 : index
    %34 = vector.load %arg1[%c2_36, %c0_37, %c0_38] : memref<21x16x64xbf16, #tpu.memory_space<vmem>>, vector<1x16x64xbf16>
    %35 = vector.shape_cast %34 : vector<1x16x64xbf16> to vector<16x64xbf16>
    %c1_39 = arith.constant 1 : index
    %c0_40 = arith.constant 0 : index
    %c0_41 = arith.constant 0 : index
    %36 = vector.load %arg2[%c1_39, %c0_40, %c0_41] : memref<5x64x128xbf16, #tpu.memory_space<vmem>>, vector<1x64x128xbf16>
    %37 = vector.shape_cast %36 : vector<1x64x128xbf16> to vector<64x128xbf16>
    %cst_42 = arith.constant dense<0.000000e+00> : vector<16x128xf32>
    %38 = tpu.matmul %35, %37, %cst_42 {dimension_numbers = #tpu.dot_dimension_numbers<[1], [0], [0], [1], [0, 0, 1, 1], [], []>} : vector<16x64xbf16>, vector<64x128xbf16>, vector<16x128xf32> -> vector<16x128xf32>
    %39 = arith.addf %33, %38 : vector<16x128xf32>
    %c3_43 = arith.constant 3 : index
    %c0_44 = arith.constant 0 : index
    %c0_45 = arith.constant 0 : index
    %40 = vector.load %arg1[%c3_43, %c0_44, %c0_45] : memref<21x16x64xbf16, #tpu.memory_space<vmem>>, vector<1x16x64xbf16>
    %41 = vector.shape_cast %40 : vector<1x16x64xbf16> to vector<16x64xbf16>
    %c2_46 = arith.constant 2 : index
    %c0_47 = arith.constant 0 : index
    %c0_48 = arith.constant 0 : index
    %42 = vector.load %arg2[%c2_46, %c0_47, %c0_48] : memref<5x64x128xbf16, #tpu.memory_space<vmem>>, vector<1x64x128xbf16>
    %43 = vector.shape_cast %42 : vector<1x64x128xbf16> to vector<64x128xbf16>
    %cst_49 = arith.constant dense<0.000000e+00> : vector<16x128xf32>
    %44 = tpu.matmul %41, %43, %cst_49 {dimension_numbers = #tpu.dot_dimension_numbers<[1], [0], [0], [1], [0, 0, 1, 1], [], []>} : vector<16x64xbf16>, vector<64x128xbf16>, vector<16x128xf32> -> vector<16x128xf32>
    %45 = arith.addf %39, %44 : vector<16x128xf32>
    %c4_50 = arith.constant 4 : index
    %c0_51 = arith.constant 0 : index
    %c0_52 = arith.constant 0 : index
    %46 = vector.load %arg1[%c4_50, %c0_51, %c0_52] : memref<21x16x64xbf16, #tpu.memory_space<vmem>>, vector<1x16x64xbf16>
    %47 = vector.shape_cast %46 : vector<1x16x64xbf16> to vector<16x64xbf16>
    %c3_53 = arith.constant 3 : index
    %c0_54 = arith.constant 0 : index
    %c0_55 = arith.constant 0 : index
    %48 = vector.load %arg2[%c3_53, %c0_54, %c0_55] : memref<5x64x128xbf16, #tpu.memory_space<vmem>>, vector<1x64x128xbf16>
    %49 = vector.shape_cast %48 : vector<1x64x128xbf16> to vector<64x128xbf16>
    %cst_56 = arith.constant dense<0.000000e+00> : vector<16x128xf32>
    %50 = tpu.matmul %47, %49, %cst_56 {dimension_numbers = #tpu.dot_dimension_numbers<[1], [0], [0], [1], [0, 0, 1, 1], [], []>} : vector<16x64xbf16>, vector<64x128xbf16>, vector<16x128xf32> -> vector<16x128xf32>
    %51 = arith.addf %45, %50 : vector<16x128xf32>
    %c5 = arith.constant 5 : index
    %c0_57 = arith.constant 0 : index
    %c0_58 = arith.constant 0 : index
    %52 = vector.load %arg1[%c5, %c0_57, %c0_58] : memref<21x16x64xbf16, #tpu.memory_space<vmem>>, vector<1x16x64xbf16>
    %53 = vector.shape_cast %52 : vector<1x16x64xbf16> to vector<16x64xbf16>
    %c4_59 = arith.constant 4 : index
    %c0_60 = arith.constant 0 : index
    %c0_61 = arith.constant 0 : index
    %54 = vector.load %arg2[%c4_59, %c0_60, %c0_61] : memref<5x64x128xbf16, #tpu.memory_space<vmem>>, vector<1x64x128xbf16>
    %55 = vector.shape_cast %54 : vector<1x64x128xbf16> to vector<64x128xbf16>
    %cst_62 = arith.constant dense<0.000000e+00> : vector<16x128xf32>
    %56 = tpu.matmul %53, %55, %cst_62 {dimension_numbers = #tpu.dot_dimension_numbers<[1], [0], [0], [1], [0, 0, 1, 1], [], []>} : vector<16x64xbf16>, vector<64x128xbf16>, vector<16x128xf32> -> vector<16x128xf32>
    %57 = arith.addf %51, %56 : vector<16x128xf32>
    %58 = arith.maximumf %28, %57 : vector<16x128xf32>
    %c2_63 = arith.constant 2 : index
    %c0_64 = arith.constant 0 : index
    %c0_65 = arith.constant 0 : index
    %59 = vector.load %arg1[%c2_63, %c0_64, %c0_65] : memref<21x16x64xbf16, #tpu.memory_space<vmem>>, vector<1x16x64xbf16>
    %60 = vector.shape_cast %59 : vector<1x16x64xbf16> to vector<16x64xbf16>
    %c0_66 = arith.constant 0 : index
    %c0_67 = arith.constant 0 : index
    %c0_68 = arith.constant 0 : index
    %61 = vector.load %arg2[%c0_66, %c0_67, %c0_68] : memref<5x64x128xbf16, #tpu.memory_space<vmem>>, vector<1x64x128xbf16>
    %62 = vector.shape_cast %61 : vector<1x64x128xbf16> to vector<64x128xbf16>
    %cst_69 = arith.constant dense<0.000000e+00> : vector<16x128xf32>
    %63 = tpu.matmul %60, %62, %cst_69 {dimension_numbers = #tpu.dot_dimension_numbers<[1], [0], [0], [1], [0, 0, 1, 1], [], []>} : vector<16x64xbf16>, vector<64x128xbf16>, vector<16x128xf32> -> vector<16x128xf32>
    %c3_70 = arith.constant 3 : index
    %c0_71 = arith.constant 0 : index
    %c0_72 = arith.constant 0 : index
    %64 = vector.load %arg1[%c3_70, %c0_71, %c0_72] : memref<21x16x64xbf16, #tpu.memory_space<vmem>>, vector<1x16x64xbf16>
    %65 = vector.shape_cast %64 : vector<1x16x64xbf16> to vector<16x64xbf16>
    %c1_73 = arith.constant 1 : index
    %c0_74 = arith.constant 0 : index
    %c0_75 = arith.constant 0 : index
    %66 = vector.load %arg2[%c1_73, %c0_74, %c0_75] : memref<5x64x128xbf16, #tpu.memory_space<vmem>>, vector<1x64x128xbf16>
    %67 = vector.shape_cast %66 : vector<1x64x128xbf16> to vector<64x128xbf16>
    %cst_76 = arith.constant dense<0.000000e+00> : vector<16x128xf32>
    %68 = tpu.matmul %65, %67, %cst_76 {dimension_numbers = #tpu.dot_dimension_numbers<[1], [0], [0], [1], [0, 0, 1, 1], [], []>} : vector<16x64xbf16>, vector<64x128xbf16>, vector<16x128xf32> -> vector<16x128xf32>
    %69 = arith.addf %63, %68 : vector<16x128xf32>
    %c4_77 = arith.constant 4 : index
    %c0_78 = arith.constant 0 : index
    %c0_79 = arith.constant 0 : index
    %70 = vector.load %arg1[%c4_77, %c0_78, %c0_79] : memref<21x16x64xbf16, #tpu.memory_space<vmem>>, vector<1x16x64xbf16>
    %71 = vector.shape_cast %70 : vector<1x16x64xbf16> to vector<16x64xbf16>
    %c2_80 = arith.constant 2 : index
    %c0_81 = arith.constant 0 : index
    %c0_82 = arith.constant 0 : index
    %72 = vector.load %arg2[%c2_80, %c0_81, %c0_82] : memref<5x64x128xbf16, #tpu.memory_space<vmem>>, vector<1x64x128xbf16>
    %73 = vector.shape_cast %72 : vector<1x64x128xbf16> to vector<64x128xbf16>
    %cst_83 = arith.constant dense<0.000000e+00> : vector<16x128xf32>
    %74 = tpu.matmul %71, %73, %cst_83 {dimension_numbers = #tpu.dot_dimension_numbers<[1], [0], [0], [1], [0, 0, 1, 1], [], []>} : vector<16x64xbf16>, vector<64x128xbf16>, vector<16x128xf32> -> vector<16x128xf32>
    %75 = arith.addf %69, %74 : vector<16x128xf32>
    %c5_84 = arith.constant 5 : index
    %c0_85 = arith.constant 0 : index
    %c0_86 = arith.constant 0 : index
    %76 = vector.load %arg1[%c5_84, %c0_85, %c0_86] : memref<21x16x64xbf16, #tpu.memory_space<vmem>>, vector<1x16x64xbf16>
    %77 = vector.shape_cast %76 : vector<1x16x64xbf16> to vector<16x64xbf16>
    %c3_87 = arith.constant 3 : index
    %c0_88 = arith.constant 0 : index
    %c0_89 = arith.constant 0 : index
    %78 = vector.load %arg2[%c3_87, %c0_88, %c0_89] : memref<5x64x128xbf16, #tpu.memory_space<vmem>>, vector<1x64x128xbf16>
    %79 = vector.shape_cast %78 : vector<1x64x128xbf16> to vector<64x128xbf16>
    %cst_90 = arith.constant dense<0.000000e+00> : vector<16x128xf32>
    %80 = tpu.matmul %77, %79, %cst_90 {dimension_numbers = #tpu.dot_dimension_numbers<[1], [0], [0], [1], [0, 0, 1, 1], [], []>} : vector<16x64xbf16>, vector<64x128xbf16>, vector<16x128xf32> -> vector<16x128xf32>
    %81 = arith.addf %75, %80 : vector<16x128xf32>
    %c6 = arith.constant 6 : index
    %c0_91 = arith.constant 0 : index
    %c0_92 = arith.constant 0 : index
    %82 = vector.load %arg1[%c6, %c0_91, %c0_92] : memref<21x16x64xbf16, #tpu.memory_space<vmem>>, vector<1x16x64xbf16>
    %83 = vector.shape_cast %82 : vector<1x16x64xbf16> to vector<16x64xbf16>
    %c4_93 = arith.constant 4 : index
    %c0_94 = arith.constant 0 : index
    %c0_95 = arith.constant 0 : index
    %84 = vector.load %arg2[%c4_93, %c0_94, %c0_95] : memref<5x64x128xbf16, #tpu.memory_space<vmem>>, vector<1x64x128xbf16>
    %85 = vector.shape_cast %84 : vector<1x64x128xbf16> to vector<64x128xbf16>
    %cst_96 = arith.constant dense<0.000000e+00> : vector<16x128xf32>
    %86 = tpu.matmul %83, %85, %cst_96 {dimension_numbers = #tpu.dot_dimension_numbers<[1], [0], [0], [1], [0, 0, 1, 1], [], []>} : vector<16x64xbf16>, vector<64x128xbf16>, vector<16x128xf32> -> vector<16x128xf32>
    %87 = arith.addf %81, %86 : vector<16x128xf32>
    %88 = arith.maximumf %58, %87 : vector<16x128xf32>
    %c3_97 = arith.constant 3 : index
    %c0_98 = arith.constant 0 : index
    %c0_99 = arith.constant 0 : index
    %89 = vector.load %arg1[%c3_97, %c0_98, %c0_99] : memref<21x16x64xbf16, #tpu.memory_space<vmem>>, vector<1x16x64xbf16>
    %90 = vector.shape_cast %89 : vector<1x16x64xbf16> to vector<16x64xbf16>
    %c0_100 = arith.constant 0 : index
    %c0_101 = arith.constant 0 : index
    %c0_102 = arith.constant 0 : index
    %91 = vector.load %arg2[%c0_100, %c0_101, %c0_102] : memref<5x64x128xbf16, #tpu.memory_space<vmem>>, vector<1x64x128xbf16>
    %92 = vector.shape_cast %91 : vector<1x64x128xbf16> to vector<64x128xbf16>
    %cst_103 = arith.constant dense<0.000000e+00> : vector<16x128xf32>
    %93 = tpu.matmul %90, %92, %cst_103 {dimension_numbers = #tpu.dot_dimension_numbers<[1], [0], [0], [1], [0, 0, 1, 1], [], []>} : vector<16x64xbf16>, vector<64x128xbf16>, vector<16x128xf32> -> vector<16x128xf32>
    %c4_104 = arith.constant 4 : index
    %c0_105 = arith.constant 0 : index
    %c0_106 = arith.constant 0 : index
    %94 = vector.load %arg1[%c4_104, %c0_105, %c0_106] : memref<21x16x64xbf16, #tpu.memory_space<vmem>>, vector<1x16x64xbf16>
    %95 = vector.shape_cast %94 : vector<1x16x64xbf16> to vector<16x64xbf16>
    %c1_107 = arith.constant 1 : index
    %c0_108 = arith.constant 0 : index
    %c0_109 = arith.constant 0 : index
    %96 = vector.load %arg2[%c1_107, %c0_108, %c0_109] : memref<5x64x128xbf16, #tpu.memory_space<vmem>>, vector<1x64x128xbf16>
    %97 = vector.shape_cast %96 : vector<1x64x128xbf16> to vector<64x128xbf16>
    %cst_110 = arith.constant dense<0.000000e+00> : vector<16x128xf32>
    %98 = tpu.matmul %95, %97, %cst_110 {dimension_numbers = #tpu.dot_dimension_numbers<[1], [0], [0], [1], [0, 0, 1, 1], [], []>} : vector<16x64xbf16>, vector<64x128xbf16>, vector<16x128xf32> -> vector<16x128xf32>
    %99 = arith.addf %93, %98 : vector<16x128xf32>
    %c5_111 = arith.constant 5 : index
    %c0_112 = arith.constant 0 : index
    %c0_113 = arith.constant 0 : index
    %100 = vector.load %arg1[%c5_111, %c0_112, %c0_113] : memref<21x16x64xbf16, #tpu.memory_space<vmem>>, vector<1x16x64xbf16>
    %101 = vector.shape_cast %100 : vector<1x16x64xbf16> to vector<16x64xbf16>
    %c2_114 = arith.constant 2 : index
    %c0_115 = arith.constant 0 : index
    %c0_116 = arith.constant 0 : index
    %102 = vector.load %arg2[%c2_114, %c0_115, %c0_116] : memref<5x64x128xbf16, #tpu.memory_space<vmem>>, vector<1x64x128xbf16>
    %103 = vector.shape_cast %102 : vector<1x64x128xbf16> to vector<64x128xbf16>
    %cst_117 = arith.constant dense<0.000000e+00> : vector<16x128xf32>
    %104 = tpu.matmul %101, %103, %cst_117 {dimension_numbers = #tpu.dot_dimension_numbers<[1], [0], [0], [1], [0, 0, 1, 1], [], []>} : vector<16x64xbf16>, vector<64x128xbf16>, vector<16x128xf32> -> vector<16x128xf32>
    %105 = arith.addf %99, %104 : vector<16x128xf32>
    %c6_118 = arith.constant 6 : index
    %c0_119 = arith.constant 0 : index
    %c0_120 = arith.constant 0 : index
    %106 = vector.load %arg1[%c6_118, %c0_119, %c0_120] : memref<21x16x64xbf16, #tpu.memory_space<vmem>>, vector<1x16x64xbf16>
    %107 = vector.shape_cast %106 : vector<1x16x64xbf16> to vector<16x64xbf16>
    %c3_121 = arith.constant 3 : index
    %c0_122 = arith.constant 0 : index
    %c0_123 = arith.constant 0 : index
    %108 = vector.load %arg2[%c3_121, %c0_122, %c0_123] : memref<5x64x128xbf16, #tpu.memory_space<vmem>>, vector<1x64x128xbf16>
    %109 = vector.shape_cast %108 : vector<1x64x128xbf16> to vector<64x128xbf16>
    %cst_124 = arith.constant dense<0.000000e+00> : vector<16x128xf32>
    %110 = tpu.matmul %107, %109, %cst_124 {dimension_numbers = #tpu.dot_dimension_numbers<[1], [0], [0], [1], [0, 0, 1, 1], [], []>} : vector<16x64xbf16>, vector<64x128xbf16>, vector<16x128xf32> -> vector<16x128xf32>
    %111 = arith.addf %105, %110 : vector<16x128xf32>
    %c7 = arith.constant 7 : index
    %c0_125 = arith.constant 0 : index
    %c0_126 = arith.constant 0 : index
    %112 = vector.load %arg1[%c7, %c0_125, %c0_126] : memref<21x16x64xbf16, #tpu.memory_space<vmem>>, vector<1x16x64xbf16>
    %113 = vector.shape_cast %112 : vector<1x16x64xbf16> to vector<16x64xbf16>
    %c4_127 = arith.constant 4 : index
    %c0_128 = arith.constant 0 : index
    %c0_129 = arith.constant 0 : index
    %114 = vector.load %arg2[%c4_127, %c0_128, %c0_129] : memref<5x64x128xbf16, #tpu.memory_space<vmem>>, vector<1x64x128xbf16>
    %115 = vector.shape_cast %114 : vector<1x64x128xbf16> to vector<64x128xbf16>
    %cst_130 = arith.constant dense<0.000000e+00> : vector<16x128xf32>
    %116 = tpu.matmul %113, %115, %cst_130 {dimension_numbers = #tpu.dot_dimension_numbers<[1], [0], [0], [1], [0, 0, 1, 1], [], []>} : vector<16x64xbf16>, vector<64x128xbf16>, vector<16x128xf32> -> vector<16x128xf32>
    %117 = arith.addf %111, %116 : vector<16x128xf32>
    %118 = arith.maximumf %88, %117 : vector<16x128xf32>
    %c4_131 = arith.constant 4 : index
    %c0_132 = arith.constant 0 : index
    %c0_133 = arith.constant 0 : index
    %119 = vector.load %arg1[%c4_131, %c0_132, %c0_133] : memref<21x16x64xbf16, #tpu.memory_space<vmem>>, vector<1x16x64xbf16>
    %120 = vector.shape_cast %119 : vector<1x16x64xbf16> to vector<16x64xbf16>
    %c0_134 = arith.constant 0 : index
    %c0_135 = arith.constant 0 : index
    %c0_136 = arith.constant 0 : index
    %121 = vector.load %arg2[%c0_134, %c0_135, %c0_136] : memref<5x64x128xbf16, #tpu.memory_space<vmem>>, vector<1x64x128xbf16>
    %122 = vector.shape_cast %121 : vector<1x64x128xbf16> to vector<64x128xbf16>
    %cst_137 = arith.constant dense<0.000000e+00> : vector<16x128xf32>
    %123 = tpu.matmul %120, %122, %cst_137 {dimension_numbers = #tpu.dot_dimension_numbers<[1], [0], [0], [1], [0, 0, 1, 1], [], []>} : vector<16x64xbf16>, vector<64x128xbf16>, vector<16x128xf32> -> vector<16x128xf32>
    %c5_138 = arith.constant 5 : index
    %c0_139 = arith.constant 0 : index
    %c0_140 = arith.constant 0 : index
    %124 = vector.load %arg1[%c5_138, %c0_139, %c0_140] : memref<21x16x64xbf16, #tpu.memory_space<vmem>>, vector<1x16x64xbf16>
    %125 = vector.shape_cast %124 : vector<1x16x64xbf16> to vector<16x64xbf16>
    %c1_141 = arith.constant 1 : index
    %c0_142 = arith.constant 0 : index
    %c0_143 = arith.constant 0 : index
    %126 = vector.load %arg2[%c1_141, %c0_142, %c0_143] : memref<5x64x128xbf16, #tpu.memory_space<vmem>>, vector<1x64x128xbf16>
    %127 = vector.shape_cast %126 : vector<1x64x128xbf16> to vector<64x128xbf16>
    %cst_144 = arith.constant dense<0.000000e+00> : vector<16x128xf32>
    %128 = tpu.matmul %125, %127, %cst_144 {dimension_numbers = #tpu.dot_dimension_numbers<[1], [0], [0], [1], [0, 0, 1, 1], [], []>} : vector<16x64xbf16>, vector<64x128xbf16>, vector<16x128xf32> -> vector<16x128xf32>
    %129 = arith.addf %123, %128 : vector<16x128xf32>
    %c6_145 = arith.constant 6 : index
    %c0_146 = arith.constant 0 : index
    %c0_147 = arith.constant 0 : index
    %130 = vector.load %arg1[%c6_145, %c0_146, %c0_147] : memref<21x16x64xbf16, #tpu.memory_space<vmem>>, vector<1x16x64xbf16>
    %131 = vector.shape_cast %130 : vector<1x16x64xbf16> to vector<16x64xbf16>
    %c2_148 = arith.constant 2 : index
    %c0_149 = arith.constant 0 : index
    %c0_150 = arith.constant 0 : index
    %132 = vector.load %arg2[%c2_148, %c0_149, %c0_150] : memref<5x64x128xbf16, #tpu.memory_space<vmem>>, vector<1x64x128xbf16>
    %133 = vector.shape_cast %132 : vector<1x64x128xbf16> to vector<64x128xbf16>
    %cst_151 = arith.constant dense<0.000000e+00> : vector<16x128xf32>
    %134 = tpu.matmul %131, %133, %cst_151 {dimension_numbers = #tpu.dot_dimension_numbers<[1], [0], [0], [1], [0, 0, 1, 1], [], []>} : vector<16x64xbf16>, vector<64x128xbf16>, vector<16x128xf32> -> vector<16x128xf32>
    %135 = arith.addf %129, %134 : vector<16x128xf32>
    %c7_152 = arith.constant 7 : index
    %c0_153 = arith.constant 0 : index
    %c0_154 = arith.constant 0 : index
    %136 = vector.load %arg1[%c7_152, %c0_153, %c0_154] : memref<21x16x64xbf16, #tpu.memory_space<vmem>>, vector<1x16x64xbf16>
    %137 = vector.shape_cast %136 : vector<1x16x64xbf16> to vector<16x64xbf16>
    %c3_155 = arith.constant 3 : index
    %c0_156 = arith.constant 0 : index
    %c0_157 = arith.constant 0 : index
    %138 = vector.load %arg2[%c3_155, %c0_156, %c0_157] : memref<5x64x128xbf16, #tpu.memory_space<vmem>>, vector<1x64x128xbf16>
    %139 = vector.shape_cast %138 : vector<1x64x128xbf16> to vector<64x128xbf16>
    %cst_158 = arith.constant dense<0.000000e+00> : vector<16x128xf32>
    %140 = tpu.matmul %137, %139, %cst_158 {dimension_numbers = #tpu.dot_dimension_numbers<[1], [0], [0], [1], [0, 0, 1, 1], [], []>} : vector<16x64xbf16>, vector<64x128xbf16>, vector<16x128xf32> -> vector<16x128xf32>
    %141 = arith.addf %135, %140 : vector<16x128xf32>
    %c8 = arith.constant 8 : index
    %c0_159 = arith.constant 0 : index
    %c0_160 = arith.constant 0 : index
    %142 = vector.load %arg1[%c8, %c0_159, %c0_160] : memref<21x16x64xbf16, #tpu.memory_space<vmem>>, vector<1x16x64xbf16>
    %143 = vector.shape_cast %142 : vector<1x16x64xbf16> to vector<16x64xbf16>
    %c4_161 = arith.constant 4 : index
    %c0_162 = arith.constant 0 : index
    %c0_163 = arith.constant 0 : index
    %144 = vector.load %arg2[%c4_161, %c0_162, %c0_163] : memref<5x64x128xbf16, #tpu.memory_space<vmem>>, vector<1x64x128xbf16>
    %145 = vector.shape_cast %144 : vector<1x64x128xbf16> to vector<64x128xbf16>
    %cst_164 = arith.constant dense<0.000000e+00> : vector<16x128xf32>
    %146 = tpu.matmul %143, %145, %cst_164 {dimension_numbers = #tpu.dot_dimension_numbers<[1], [0], [0], [1], [0, 0, 1, 1], [], []>} : vector<16x64xbf16>, vector<64x128xbf16>, vector<16x128xf32> -> vector<16x128xf32>
    %147 = arith.addf %141, %146 : vector<16x128xf32>
    %148 = arith.maximumf %118, %147 : vector<16x128xf32>
    %c5_165 = arith.constant 5 : index
    %c0_166 = arith.constant 0 : index
    %c0_167 = arith.constant 0 : index
    %149 = vector.load %arg1[%c5_165, %c0_166, %c0_167] : memref<21x16x64xbf16, #tpu.memory_space<vmem>>, vector<1x16x64xbf16>
    %150 = vector.shape_cast %149 : vector<1x16x64xbf16> to vector<16x64xbf16>
    %c0_168 = arith.constant 0 : index
    %c0_169 = arith.constant 0 : index
    %c0_170 = arith.constant 0 : index
    %151 = vector.load %arg2[%c0_168, %c0_169, %c0_170] : memref<5x64x128xbf16, #tpu.memory_space<vmem>>, vector<1x64x128xbf16>
    %152 = vector.shape_cast %151 : vector<1x64x128xbf16> to vector<64x128xbf16>
    %cst_171 = arith.constant dense<0.000000e+00> : vector<16x128xf32>
    %153 = tpu.matmul %150, %152, %cst_171 {dimension_numbers = #tpu.dot_dimension_numbers<[1], [0], [0], [1], [0, 0, 1, 1], [], []>} : vector<16x64xbf16>, vector<64x128xbf16>, vector<16x128xf32> -> vector<16x128xf32>
    %c6_172 = arith.constant 6 : index
    %c0_173 = arith.constant 0 : index
    %c0_174 = arith.constant 0 : index
    %154 = vector.load %arg1[%c6_172, %c0_173, %c0_174] : memref<21x16x64xbf16, #tpu.memory_space<vmem>>, vector<1x16x64xbf16>
    %155 = vector.shape_cast %154 : vector<1x16x64xbf16> to vector<16x64xbf16>
    %c1_175 = arith.constant 1 : index
    %c0_176 = arith.constant 0 : index
    %c0_177 = arith.constant 0 : index
    %156 = vector.load %arg2[%c1_175, %c0_176, %c0_177] : memref<5x64x128xbf16, #tpu.memory_space<vmem>>, vector<1x64x128xbf16>
    %157 = vector.shape_cast %156 : vector<1x64x128xbf16> to vector<64x128xbf16>
    %cst_178 = arith.constant dense<0.000000e+00> : vector<16x128xf32>
    %158 = tpu.matmul %155, %157, %cst_178 {dimension_numbers = #tpu.dot_dimension_numbers<[1], [0], [0], [1], [0, 0, 1, 1], [], []>} : vector<16x64xbf16>, vector<64x128xbf16>, vector<16x128xf32> -> vector<16x128xf32>
    %159 = arith.addf %153, %158 : vector<16x128xf32>
    %c7_179 = arith.constant 7 : index
    %c0_180 = arith.constant 0 : index
    %c0_181 = arith.constant 0 : index
    %160 = vector.load %arg1[%c7_179, %c0_180, %c0_181] : memref<21x16x64xbf16, #tpu.memory_space<vmem>>, vector<1x16x64xbf16>
    %161 = vector.shape_cast %160 : vector<1x16x64xbf16> to vector<16x64xbf16>
    %c2_182 = arith.constant 2 : index
    %c0_183 = arith.constant 0 : index
    %c0_184 = arith.constant 0 : index
    %162 = vector.load %arg2[%c2_182, %c0_183, %c0_184] : memref<5x64x128xbf16, #tpu.memory_space<vmem>>, vector<1x64x128xbf16>
    %163 = vector.shape_cast %162 : vector<1x64x128xbf16> to vector<64x128xbf16>
    %cst_185 = arith.constant dense<0.000000e+00> : vector<16x128xf32>
    %164 = tpu.matmul %161, %163, %cst_185 {dimension_numbers = #tpu.dot_dimension_numbers<[1], [0], [0], [1], [0, 0, 1, 1], [], []>} : vector<16x64xbf16>, vector<64x128xbf16>, vector<16x128xf32> -> vector<16x128xf32>
    %165 = arith.addf %159, %164 : vector<16x128xf32>
    %c8_186 = arith.constant 8 : index
    %c0_187 = arith.constant 0 : index
    %c0_188 = arith.constant 0 : index
    %166 = vector.load %arg1[%c8_186, %c0_187, %c0_188] : memref<21x16x64xbf16, #tpu.memory_space<vmem>>, vector<1x16x64xbf16>
    %167 = vector.shape_cast %166 : vector<1x16x64xbf16> to vector<16x64xbf16>
    %c3_189 = arith.constant 3 : index
    %c0_190 = arith.constant 0 : index
    %c0_191 = arith.constant 0 : index
    %168 = vector.load %arg2[%c3_189, %c0_190, %c0_191] : memref<5x64x128xbf16, #tpu.memory_space<vmem>>, vector<1x64x128xbf16>
    %169 = vector.shape_cast %168 : vector<1x64x128xbf16> to vector<64x128xbf16>
    %cst_192 = arith.constant dense<0.000000e+00> : vector<16x128xf32>
    %170 = tpu.matmul %167, %169, %cst_192 {dimension_numbers = #tpu.dot_dimension_numbers<[1], [0], [0], [1], [0, 0, 1, 1], [], []>} : vector<16x64xbf16>, vector<64x128xbf16>, vector<16x128xf32> -> vector<16x128xf32>
    %171 = arith.addf %165, %170 : vector<16x128xf32>
    %c9 = arith.constant 9 : index
    %c0_193 = arith.constant 0 : index
    %c0_194 = arith.constant 0 : index
    %172 = vector.load %arg1[%c9, %c0_193, %c0_194] : memref<21x16x64xbf16, #tpu.memory_space<vmem>>, vector<1x16x64xbf16>
    %173 = vector.shape_cast %172 : vector<1x16x64xbf16> to vector<16x64xbf16>
    %c4_195 = arith.constant 4 : index
    %c0_196 = arith.constant 0 : index
    %c0_197 = arith.constant 0 : index
    %174 = vector.load %arg2[%c4_195, %c0_196, %c0_197] : memref<5x64x128xbf16, #tpu.memory_space<vmem>>, vector<1x64x128xbf16>
    %175 = vector.shape_cast %174 : vector<1x64x128xbf16> to vector<64x128xbf16>
    %cst_198 = arith.constant dense<0.000000e+00> : vector<16x128xf32>
    %176 = tpu.matmul %173, %175, %cst_198 {dimension_numbers = #tpu.dot_dimension_numbers<[1], [0], [0], [1], [0, 0, 1, 1], [], []>} : vector<16x64xbf16>, vector<64x128xbf16>, vector<16x128xf32> -> vector<16x128xf32>
    %177 = arith.addf %171, %176 : vector<16x128xf32>
    %178 = arith.maximumf %148, %177 : vector<16x128xf32>
    %c6_199 = arith.constant 6 : index
    %c0_200 = arith.constant 0 : index
    %c0_201 = arith.constant 0 : index
    %179 = vector.load %arg1[%c6_199, %c0_200, %c0_201] : memref<21x16x64xbf16, #tpu.memory_space<vmem>>, vector<1x16x64xbf16>
    %180 = vector.shape_cast %179 : vector<1x16x64xbf16> to vector<16x64xbf16>
    %c0_202 = arith.constant 0 : index
    %c0_203 = arith.constant 0 : index
    %c0_204 = arith.constant 0 : index
    %181 = vector.load %arg2[%c0_202, %c0_203, %c0_204] : memref<5x64x128xbf16, #tpu.memory_space<vmem>>, vector<1x64x128xbf16>
    %182 = vector.shape_cast %181 : vector<1x64x128xbf16> to vector<64x128xbf16>
    %cst_205 = arith.constant dense<0.000000e+00> : vector<16x128xf32>
    %183 = tpu.matmul %180, %182, %cst_205 {dimension_numbers = #tpu.dot_dimension_numbers<[1], [0], [0], [1], [0, 0, 1, 1], [], []>} : vector<16x64xbf16>, vector<64x128xbf16>, vector<16x128xf32> -> vector<16x128xf32>
    %c7_206 = arith.constant 7 : index
    %c0_207 = arith.constant 0 : index
    %c0_208 = arith.constant 0 : index
    %184 = vector.load %arg1[%c7_206, %c0_207, %c0_208] : memref<21x16x64xbf16, #tpu.memory_space<vmem>>, vector<1x16x64xbf16>
    %185 = vector.shape_cast %184 : vector<1x16x64xbf16> to vector<16x64xbf16>
    %c1_209 = arith.constant 1 : index
    %c0_210 = arith.constant 0 : index
    %c0_211 = arith.constant 0 : index
    %186 = vector.load %arg2[%c1_209, %c0_210, %c0_211] : memref<5x64x128xbf16, #tpu.memory_space<vmem>>, vector<1x64x128xbf16>
    %187 = vector.shape_cast %186 : vector<1x64x128xbf16> to vector<64x128xbf16>
    %cst_212 = arith.constant dense<0.000000e+00> : vector<16x128xf32>
    %188 = tpu.matmul %185, %187, %cst_212 {dimension_numbers = #tpu.dot_dimension_numbers<[1], [0], [0], [1], [0, 0, 1, 1], [], []>} : vector<16x64xbf16>, vector<64x128xbf16>, vector<16x128xf32> -> vector<16x128xf32>
    %189 = arith.addf %183, %188 : vector<16x128xf32>
    %c8_213 = arith.constant 8 : index
    %c0_214 = arith.constant 0 : index
    %c0_215 = arith.constant 0 : index
    %190 = vector.load %arg1[%c8_213, %c0_214, %c0_215] : memref<21x16x64xbf16, #tpu.memory_space<vmem>>, vector<1x16x64xbf16>
    %191 = vector.shape_cast %190 : vector<1x16x64xbf16> to vector<16x64xbf16>
    %c2_216 = arith.constant 2 : index
    %c0_217 = arith.constant 0 : index
    %c0_218 = arith.constant 0 : index
    %192 = vector.load %arg2[%c2_216, %c0_217, %c0_218] : memref<5x64x128xbf16, #tpu.memory_space<vmem>>, vector<1x64x128xbf16>
    %193 = vector.shape_cast %192 : vector<1x64x128xbf16> to vector<64x128xbf16>
    %cst_219 = arith.constant dense<0.000000e+00> : vector<16x128xf32>
    %194 = tpu.matmul %191, %193, %cst_219 {dimension_numbers = #tpu.dot_dimension_numbers<[1], [0], [0], [1], [0, 0, 1, 1], [], []>} : vector<16x64xbf16>, vector<64x128xbf16>, vector<16x128xf32> -> vector<16x128xf32>
    %195 = arith.addf %189, %194 : vector<16x128xf32>
    %c9_220 = arith.constant 9 : index
    %c0_221 = arith.constant 0 : index
    %c0_222 = arith.constant 0 : index
    %196 = vector.load %arg1[%c9_220, %c0_221, %c0_222] : memref<21x16x64xbf16, #tpu.memory_space<vmem>>, vector<1x16x64xbf16>
    %197 = vector.shape_cast %196 : vector<1x16x64xbf16> to vector<16x64xbf16>
    %c3_223 = arith.constant 3 : index
    %c0_224 = arith.constant 0 : index
    %c0_225 = arith.constant 0 : index
    %198 = vector.load %arg2[%c3_223, %c0_224, %c0_225] : memref<5x64x128xbf16, #tpu.memory_space<vmem>>, vector<1x64x128xbf16>
    %199 = vector.shape_cast %198 : vector<1x64x128xbf16> to vector<64x128xbf16>
    %cst_226 = arith.constant dense<0.000000e+00> : vector<16x128xf32>
    %200 = tpu.matmul %197, %199, %cst_226 {dimension_numbers = #tpu.dot_dimension_numbers<[1], [0], [0], [1], [0, 0, 1, 1], [], []>} : vector<16x64xbf16>, vector<64x128xbf16>, vector<16x128xf32> -> vector<16x128xf32>
    %201 = arith.addf %195, %200 : vector<16x128xf32>
    %c10 = arith.constant 10 : index
    %c0_227 = arith.constant 0 : index
    %c0_228 = arith.constant 0 : index
    %202 = vector.load %arg1[%c10, %c0_227, %c0_228] : memref<21x16x64xbf16, #tpu.memory_space<vmem>>, vector<1x16x64xbf16>
    %203 = vector.shape_cast %202 : vector<1x16x64xbf16> to vector<16x64xbf16>
    %c4_229 = arith.constant 4 : index
    %c0_230 = arith.constant 0 : index
    %c0_231 = arith.constant 0 : index
    %204 = vector.load %arg2[%c4_229, %c0_230, %c0_231] : memref<5x64x128xbf16, #tpu.memory_space<vmem>>, vector<1x64x128xbf16>
    %205 = vector.shape_cast %204 : vector<1x64x128xbf16> to vector<64x128xbf16>
    %cst_232 = arith.constant dense<0.000000e+00> : vector<16x128xf32>
    %206 = tpu.matmul %203, %205, %cst_232 {dimension_numbers = #tpu.dot_dimension_numbers<[1], [0], [0], [1], [0, 0, 1, 1], [], []>} : vector<16x64xbf16>, vector<64x128xbf16>, vector<16x128xf32> -> vector<16x128xf32>
    %207 = arith.addf %201, %206 : vector<16x128xf32>
    %208 = arith.maximumf %178, %207 : vector<16x128xf32>
    %c7_233 = arith.constant 7 : index
    %c0_234 = arith.constant 0 : index
    %c0_235 = arith.constant 0 : index
    %209 = vector.load %arg1[%c7_233, %c0_234, %c0_235] : memref<21x16x64xbf16, #tpu.memory_space<vmem>>, vector<1x16x64xbf16>
    %210 = vector.shape_cast %209 : vector<1x16x64xbf16> to vector<16x64xbf16>
    %c0_236 = arith.constant 0 : index
    %c0_237 = arith.constant 0 : index
    %c0_238 = arith.constant 0 : index
    %211 = vector.load %arg2[%c0_236, %c0_237, %c0_238] : memref<5x64x128xbf16, #tpu.memory_space<vmem>>, vector<1x64x128xbf16>
    %212 = vector.shape_cast %211 : vector<1x64x128xbf16> to vector<64x128xbf16>
    %cst_239 = arith.constant dense<0.000000e+00> : vector<16x128xf32>
    %213 = tpu.matmul %210, %212, %cst_239 {dimension_numbers = #tpu.dot_dimension_numbers<[1], [0], [0], [1], [0, 0, 1, 1], [], []>} : vector<16x64xbf16>, vector<64x128xbf16>, vector<16x128xf32> -> vector<16x128xf32>
    %c8_240 = arith.constant 8 : index
    %c0_241 = arith.constant 0 : index
    %c0_242 = arith.constant 0 : index
    %214 = vector.load %arg1[%c8_240, %c0_241, %c0_242] : memref<21x16x64xbf16, #tpu.memory_space<vmem>>, vector<1x16x64xbf16>
    %215 = vector.shape_cast %214 : vector<1x16x64xbf16> to vector<16x64xbf16>
    %c1_243 = arith.constant 1 : index
    %c0_244 = arith.constant 0 : index
    %c0_245 = arith.constant 0 : index
    %216 = vector.load %arg2[%c1_243, %c0_244, %c0_245] : memref<5x64x128xbf16, #tpu.memory_space<vmem>>, vector<1x64x128xbf16>
    %217 = vector.shape_cast %216 : vector<1x64x128xbf16> to vector<64x128xbf16>
    %cst_246 = arith.constant dense<0.000000e+00> : vector<16x128xf32>
    %218 = tpu.matmul %215, %217, %cst_246 {dimension_numbers = #tpu.dot_dimension_numbers<[1], [0], [0], [1], [0, 0, 1, 1], [], []>} : vector<16x64xbf16>, vector<64x128xbf16>, vector<16x128xf32> -> vector<16x128xf32>
    %219 = arith.addf %213, %218 : vector<16x128xf32>
    %c9_247 = arith.constant 9 : index
    %c0_248 = arith.constant 0 : index
    %c0_249 = arith.constant 0 : index
    %220 = vector.load %arg1[%c9_247, %c0_248, %c0_249] : memref<21x16x64xbf16, #tpu.memory_space<vmem>>, vector<1x16x64xbf16>
    %221 = vector.shape_cast %220 : vector<1x16x64xbf16> to vector<16x64xbf16>
    %c2_250 = arith.constant 2 : index
    %c0_251 = arith.constant 0 : index
    %c0_252 = arith.constant 0 : index
    %222 = vector.load %arg2[%c2_250, %c0_251, %c0_252] : memref<5x64x128xbf16, #tpu.memory_space<vmem>>, vector<1x64x128xbf16>
    %223 = vector.shape_cast %222 : vector<1x64x128xbf16> to vector<64x128xbf16>
    %cst_253 = arith.constant dense<0.000000e+00> : vector<16x128xf32>
    %224 = tpu.matmul %221, %223, %cst_253 {dimension_numbers = #tpu.dot_dimension_numbers<[1], [0], [0], [1], [0, 0, 1, 1], [], []>} : vector<16x64xbf16>, vector<64x128xbf16>, vector<16x128xf32> -> vector<16x128xf32>
    %225 = arith.addf %219, %224 : vector<16x128xf32>
    %c10_254 = arith.constant 10 : index
    %c0_255 = arith.constant 0 : index
    %c0_256 = arith.constant 0 : index
    %226 = vector.load %arg1[%c10_254, %c0_255, %c0_256] : memref<21x16x64xbf16, #tpu.memory_space<vmem>>, vector<1x16x64xbf16>
    %227 = vector.shape_cast %226 : vector<1x16x64xbf16> to vector<16x64xbf16>
    %c3_257 = arith.constant 3 : index
    %c0_258 = arith.constant 0 : index
    %c0_259 = arith.constant 0 : index
    %228 = vector.load %arg2[%c3_257, %c0_258, %c0_259] : memref<5x64x128xbf16, #tpu.memory_space<vmem>>, vector<1x64x128xbf16>
    %229 = vector.shape_cast %228 : vector<1x64x128xbf16> to vector<64x128xbf16>
    %cst_260 = arith.constant dense<0.000000e+00> : vector<16x128xf32>
    %230 = tpu.matmul %227, %229, %cst_260 {dimension_numbers = #tpu.dot_dimension_numbers<[1], [0], [0], [1], [0, 0, 1, 1], [], []>} : vector<16x64xbf16>, vector<64x128xbf16>, vector<16x128xf32> -> vector<16x128xf32>
    %231 = arith.addf %225, %230 : vector<16x128xf32>
    %c11 = arith.constant 11 : index
    %c0_261 = arith.constant 0 : index
    %c0_262 = arith.constant 0 : index
    %232 = vector.load %arg1[%c11, %c0_261, %c0_262] : memref<21x16x64xbf16, #tpu.memory_space<vmem>>, vector<1x16x64xbf16>
    %233 = vector.shape_cast %232 : vector<1x16x64xbf16> to vector<16x64xbf16>
    %c4_263 = arith.constant 4 : index
    %c0_264 = arith.constant 0 : index
    %c0_265 = arith.constant 0 : index
    %234 = vector.load %arg2[%c4_263, %c0_264, %c0_265] : memref<5x64x128xbf16, #tpu.memory_space<vmem>>, vector<1x64x128xbf16>
    %235 = vector.shape_cast %234 : vector<1x64x128xbf16> to vector<64x128xbf16>
    %cst_266 = arith.constant dense<0.000000e+00> : vector<16x128xf32>
    %236 = tpu.matmul %233, %235, %cst_266 {dimension_numbers = #tpu.dot_dimension_numbers<[1], [0], [0], [1], [0, 0, 1, 1], [], []>} : vector<16x64xbf16>, vector<64x128xbf16>, vector<16x128xf32> -> vector<16x128xf32>
    %237 = arith.addf %231, %236 : vector<16x128xf32>
    %238 = arith.maximumf %208, %237 : vector<16x128xf32>
    %c8_267 = arith.constant 8 : index
    %c0_268 = arith.constant 0 : index
    %c0_269 = arith.constant 0 : index
    %239 = vector.load %arg1[%c8_267, %c0_268, %c0_269] : memref<21x16x64xbf16, #tpu.memory_space<vmem>>, vector<1x16x64xbf16>
    %240 = vector.shape_cast %239 : vector<1x16x64xbf16> to vector<16x64xbf16>
    %c0_270 = arith.constant 0 : index
    %c0_271 = arith.constant 0 : index
    %c0_272 = arith.constant 0 : index
    %241 = vector.load %arg2[%c0_270, %c0_271, %c0_272] : memref<5x64x128xbf16, #tpu.memory_space<vmem>>, vector<1x64x128xbf16>
    %242 = vector.shape_cast %241 : vector<1x64x128xbf16> to vector<64x128xbf16>
    %cst_273 = arith.constant dense<0.000000e+00> : vector<16x128xf32>
    %243 = tpu.matmul %240, %242, %cst_273 {dimension_numbers = #tpu.dot_dimension_numbers<[1], [0], [0], [1], [0, 0, 1, 1], [], []>} : vector<16x64xbf16>, vector<64x128xbf16>, vector<16x128xf32> -> vector<16x128xf32>
    %c9_274 = arith.constant 9 : index
    %c0_275 = arith.constant 0 : index
    %c0_276 = arith.constant 0 : index
    %244 = vector.load %arg1[%c9_274, %c0_275, %c0_276] : memref<21x16x64xbf16, #tpu.memory_space<vmem>>, vector<1x16x64xbf16>
    %245 = vector.shape_cast %244 : vector<1x16x64xbf16> to vector<16x64xbf16>
    %c1_277 = arith.constant 1 : index
    %c0_278 = arith.constant 0 : index
    %c0_279 = arith.constant 0 : index
    %246 = vector.load %arg2[%c1_277, %c0_278, %c0_279] : memref<5x64x128xbf16, #tpu.memory_space<vmem>>, vector<1x64x128xbf16>
    %247 = vector.shape_cast %246 : vector<1x64x128xbf16> to vector<64x128xbf16>
    %cst_280 = arith.constant dense<0.000000e+00> : vector<16x128xf32>
    %248 = tpu.matmul %245, %247, %cst_280 {dimension_numbers = #tpu.dot_dimension_numbers<[1], [0], [0], [1], [0, 0, 1, 1], [], []>} : vector<16x64xbf16>, vector<64x128xbf16>, vector<16x128xf32> -> vector<16x128xf32>
    %249 = arith.addf %243, %248 : vector<16x128xf32>
    %c10_281 = arith.constant 10 : index
    %c0_282 = arith.constant 0 : index
    %c0_283 = arith.constant 0 : index
    %250 = vector.load %arg1[%c10_281, %c0_282, %c0_283] : memref<21x16x64xbf16, #tpu.memory_space<vmem>>, vector<1x16x64xbf16>
    %251 = vector.shape_cast %250 : vector<1x16x64xbf16> to vector<16x64xbf16>
    %c2_284 = arith.constant 2 : index
    %c0_285 = arith.constant 0 : index
    %c0_286 = arith.constant 0 : index
    %252 = vector.load %arg2[%c2_284, %c0_285, %c0_286] : memref<5x64x128xbf16, #tpu.memory_space<vmem>>, vector<1x64x128xbf16>
    %253 = vector.shape_cast %252 : vector<1x64x128xbf16> to vector<64x128xbf16>
    %cst_287 = arith.constant dense<0.000000e+00> : vector<16x128xf32>
    %254 = tpu.matmul %251, %253, %cst_287 {dimension_numbers = #tpu.dot_dimension_numbers<[1], [0], [0], [1], [0, 0, 1, 1], [], []>} : vector<16x64xbf16>, vector<64x128xbf16>, vector<16x128xf32> -> vector<16x128xf32>
    %255 = arith.addf %249, %254 : vector<16x128xf32>
    %c11_288 = arith.constant 11 : index
    %c0_289 = arith.constant 0 : index
    %c0_290 = arith.constant 0 : index
    %256 = vector.load %arg1[%c11_288, %c0_289, %c0_290] : memref<21x16x64xbf16, #tpu.memory_space<vmem>>, vector<1x16x64xbf16>
    %257 = vector.shape_cast %256 : vector<1x16x64xbf16> to vector<16x64xbf16>
    %c3_291 = arith.constant 3 : index
    %c0_292 = arith.constant 0 : index
    %c0_293 = arith.constant 0 : index
    %258 = vector.load %arg2[%c3_291, %c0_292, %c0_293] : memref<5x64x128xbf16, #tpu.memory_space<vmem>>, vector<1x64x128xbf16>
    %259 = vector.shape_cast %258 : vector<1x64x128xbf16> to vector<64x128xbf16>
    %cst_294 = arith.constant dense<0.000000e+00> : vector<16x128xf32>
    %260 = tpu.matmul %257, %259, %cst_294 {dimension_numbers = #tpu.dot_dimension_numbers<[1], [0], [0], [1], [0, 0, 1, 1], [], []>} : vector<16x64xbf16>, vector<64x128xbf16>, vector<16x128xf32> -> vector<16x128xf32>
    %261 = arith.addf %255, %260 : vector<16x128xf32>
    %c12 = arith.constant 12 : index
    %c0_295 = arith.constant 0 : index
    %c0_296 = arith.constant 0 : index
    %262 = vector.load %arg1[%c12, %c0_295, %c0_296] : memref<21x16x64xbf16, #tpu.memory_space<vmem>>, vector<1x16x64xbf16>
    %263 = vector.shape_cast %262 : vector<1x16x64xbf16> to vector<16x64xbf16>
    %c4_297 = arith.constant 4 : index
    %c0_298 = arith.constant 0 : index
    %c0_299 = arith.constant 0 : index
    %264 = vector.load %arg2[%c4_297, %c0_298, %c0_299] : memref<5x64x128xbf16, #tpu.memory_space<vmem>>, vector<1x64x128xbf16>
    %265 = vector.shape_cast %264 : vector<1x64x128xbf16> to vector<64x128xbf16>
    %cst_300 = arith.constant dense<0.000000e+00> : vector<16x128xf32>
    %266 = tpu.matmul %263, %265, %cst_300 {dimension_numbers = #tpu.dot_dimension_numbers<[1], [0], [0], [1], [0, 0, 1, 1], [], []>} : vector<16x64xbf16>, vector<64x128xbf16>, vector<16x128xf32> -> vector<16x128xf32>
    %267 = arith.addf %261, %266 : vector<16x128xf32>
    %268 = arith.maximumf %238, %267 : vector<16x128xf32>
    %c9_301 = arith.constant 9 : index
    %c0_302 = arith.constant 0 : index
    %c0_303 = arith.constant 0 : index
    %269 = vector.load %arg1[%c9_301, %c0_302, %c0_303] : memref<21x16x64xbf16, #tpu.memory_space<vmem>>, vector<1x16x64xbf16>
    %270 = vector.shape_cast %269 : vector<1x16x64xbf16> to vector<16x64xbf16>
    %c0_304 = arith.constant 0 : index
    %c0_305 = arith.constant 0 : index
    %c0_306 = arith.constant 0 : index
    %271 = vector.load %arg2[%c0_304, %c0_305, %c0_306] : memref<5x64x128xbf16, #tpu.memory_space<vmem>>, vector<1x64x128xbf16>
    %272 = vector.shape_cast %271 : vector<1x64x128xbf16> to vector<64x128xbf16>
    %cst_307 = arith.constant dense<0.000000e+00> : vector<16x128xf32>
    %273 = tpu.matmul %270, %272, %cst_307 {dimension_numbers = #tpu.dot_dimension_numbers<[1], [0], [0], [1], [0, 0, 1, 1], [], []>} : vector<16x64xbf16>, vector<64x128xbf16>, vector<16x128xf32> -> vector<16x128xf32>
    %c10_308 = arith.constant 10 : index
    %c0_309 = arith.constant 0 : index
    %c0_310 = arith.constant 0 : index
    %274 = vector.load %arg1[%c10_308, %c0_309, %c0_310] : memref<21x16x64xbf16, #tpu.memory_space<vmem>>, vector<1x16x64xbf16>
    %275 = vector.shape_cast %274 : vector<1x16x64xbf16> to vector<16x64xbf16>
    %c1_311 = arith.constant 1 : index
    %c0_312 = arith.constant 0 : index
    %c0_313 = arith.constant 0 : index
    %276 = vector.load %arg2[%c1_311, %c0_312, %c0_313] : memref<5x64x128xbf16, #tpu.memory_space<vmem>>, vector<1x64x128xbf16>
    %277 = vector.shape_cast %276 : vector<1x64x128xbf16> to vector<64x128xbf16>
    %cst_314 = arith.constant dense<0.000000e+00> : vector<16x128xf32>
    %278 = tpu.matmul %275, %277, %cst_314 {dimension_numbers = #tpu.dot_dimension_numbers<[1], [0], [0], [1], [0, 0, 1, 1], [], []>} : vector<16x64xbf16>, vector<64x128xbf16>, vector<16x128xf32> -> vector<16x128xf32>
    %279 = arith.addf %273, %278 : vector<16x128xf32>
    %c11_315 = arith.constant 11 : index
    %c0_316 = arith.constant 0 : index
    %c0_317 = arith.constant 0 : index
    %280 = vector.load %arg1[%c11_315, %c0_316, %c0_317] : memref<21x16x64xbf16, #tpu.memory_space<vmem>>, vector<1x16x64xbf16>
    %281 = vector.shape_cast %280 : vector<1x16x64xbf16> to vector<16x64xbf16>
    %c2_318 = arith.constant 2 : index
    %c0_319 = arith.constant 0 : index
    %c0_320 = arith.constant 0 : index
    %282 = vector.load %arg2[%c2_318, %c0_319, %c0_320] : memref<5x64x128xbf16, #tpu.memory_space<vmem>>, vector<1x64x128xbf16>
    %283 = vector.shape_cast %282 : vector<1x64x128xbf16> to vector<64x128xbf16>
    %cst_321 = arith.constant dense<0.000000e+00> : vector<16x128xf32>
    %284 = tpu.matmul %281, %283, %cst_321 {dimension_numbers = #tpu.dot_dimension_numbers<[1], [0], [0], [1], [0, 0, 1, 1], [], []>} : vector<16x64xbf16>, vector<64x128xbf16>, vector<16x128xf32> -> vector<16x128xf32>
    %285 = arith.addf %279, %284 : vector<16x128xf32>
    %c12_322 = arith.constant 12 : index
    %c0_323 = arith.constant 0 : index
    %c0_324 = arith.constant 0 : index
    %286 = vector.load %arg1[%c12_322, %c0_323, %c0_324] : memref<21x16x64xbf16, #tpu.memory_space<vmem>>, vector<1x16x64xbf16>
    %287 = vector.shape_cast %286 : vector<1x16x64xbf16> to vector<16x64xbf16>
    %c3_325 = arith.constant 3 : index
    %c0_326 = arith.constant 0 : index
    %c0_327 = arith.constant 0 : index
    %288 = vector.load %arg2[%c3_325, %c0_326, %c0_327] : memref<5x64x128xbf16, #tpu.memory_space<vmem>>, vector<1x64x128xbf16>
    %289 = vector.shape_cast %288 : vector<1x64x128xbf16> to vector<64x128xbf16>
    %cst_328 = arith.constant dense<0.000000e+00> : vector<16x128xf32>
    %290 = tpu.matmul %287, %289, %cst_328 {dimension_numbers = #tpu.dot_dimension_numbers<[1], [0], [0], [1], [0, 0, 1, 1], [], []>} : vector<16x64xbf16>, vector<64x128xbf16>, vector<16x128xf32> -> vector<16x128xf32>
    %291 = arith.addf %285, %290 : vector<16x128xf32>
    %c13 = arith.constant 13 : index
    %c0_329 = arith.constant 0 : index
    %c0_330 = arith.constant 0 : index
    %292 = vector.load %arg1[%c13, %c0_329, %c0_330] : memref<21x16x64xbf16, #tpu.memory_space<vmem>>, vector<1x16x64xbf16>
    %293 = vector.shape_cast %292 : vector<1x16x64xbf16> to vector<16x64xbf16>
    %c4_331 = arith.constant 4 : index
    %c0_332 = arith.constant 0 : index
    %c0_333 = arith.constant 0 : index
    %294 = vector.load %arg2[%c4_331, %c0_332, %c0_333] : memref<5x64x128xbf16, #tpu.memory_space<vmem>>, vector<1x64x128xbf16>
    %295 = vector.shape_cast %294 : vector<1x64x128xbf16> to vector<64x128xbf16>
    %cst_334 = arith.constant dense<0.000000e+00> : vector<16x128xf32>
    %296 = tpu.matmul %293, %295, %cst_334 {dimension_numbers = #tpu.dot_dimension_numbers<[1], [0], [0], [1], [0, 0, 1, 1], [], []>} : vector<16x64xbf16>, vector<64x128xbf16>, vector<16x128xf32> -> vector<16x128xf32>
    %297 = arith.addf %291, %296 : vector<16x128xf32>
    %298 = arith.maximumf %268, %297 : vector<16x128xf32>
    %c10_335 = arith.constant 10 : index
    %c0_336 = arith.constant 0 : index
    %c0_337 = arith.constant 0 : index
    %299 = vector.load %arg1[%c10_335, %c0_336, %c0_337] : memref<21x16x64xbf16, #tpu.memory_space<vmem>>, vector<1x16x64xbf16>
    %300 = vector.shape_cast %299 : vector<1x16x64xbf16> to vector<16x64xbf16>
    %c0_338 = arith.constant 0 : index
    %c0_339 = arith.constant 0 : index
    %c0_340 = arith.constant 0 : index
    %301 = vector.load %arg2[%c0_338, %c0_339, %c0_340] : memref<5x64x128xbf16, #tpu.memory_space<vmem>>, vector<1x64x128xbf16>
    %302 = vector.shape_cast %301 : vector<1x64x128xbf16> to vector<64x128xbf16>
    %cst_341 = arith.constant dense<0.000000e+00> : vector<16x128xf32>
    %303 = tpu.matmul %300, %302, %cst_341 {dimension_numbers = #tpu.dot_dimension_numbers<[1], [0], [0], [1], [0, 0, 1, 1], [], []>} : vector<16x64xbf16>, vector<64x128xbf16>, vector<16x128xf32> -> vector<16x128xf32>
    %c11_342 = arith.constant 11 : index
    %c0_343 = arith.constant 0 : index
    %c0_344 = arith.constant 0 : index
    %304 = vector.load %arg1[%c11_342, %c0_343, %c0_344] : memref<21x16x64xbf16, #tpu.memory_space<vmem>>, vector<1x16x64xbf16>
    %305 = vector.shape_cast %304 : vector<1x16x64xbf16> to vector<16x64xbf16>
    %c1_345 = arith.constant 1 : index
    %c0_346 = arith.constant 0 : index
    %c0_347 = arith.constant 0 : index
    %306 = vector.load %arg2[%c1_345, %c0_346, %c0_347] : memref<5x64x128xbf16, #tpu.memory_space<vmem>>, vector<1x64x128xbf16>
    %307 = vector.shape_cast %306 : vector<1x64x128xbf16> to vector<64x128xbf16>
    %cst_348 = arith.constant dense<0.000000e+00> : vector<16x128xf32>
    %308 = tpu.matmul %305, %307, %cst_348 {dimension_numbers = #tpu.dot_dimension_numbers<[1], [0], [0], [1], [0, 0, 1, 1], [], []>} : vector<16x64xbf16>, vector<64x128xbf16>, vector<16x128xf32> -> vector<16x128xf32>
    %309 = arith.addf %303, %308 : vector<16x128xf32>
    %c12_349 = arith.constant 12 : index
    %c0_350 = arith.constant 0 : index
    %c0_351 = arith.constant 0 : index
    %310 = vector.load %arg1[%c12_349, %c0_350, %c0_351] : memref<21x16x64xbf16, #tpu.memory_space<vmem>>, vector<1x16x64xbf16>
    %311 = vector.shape_cast %310 : vector<1x16x64xbf16> to vector<16x64xbf16>
    %c2_352 = arith.constant 2 : index
    %c0_353 = arith.constant 0 : index
    %c0_354 = arith.constant 0 : index
    %312 = vector.load %arg2[%c2_352, %c0_353, %c0_354] : memref<5x64x128xbf16, #tpu.memory_space<vmem>>, vector<1x64x128xbf16>
    %313 = vector.shape_cast %312 : vector<1x64x128xbf16> to vector<64x128xbf16>
    %cst_355 = arith.constant dense<0.000000e+00> : vector<16x128xf32>
    %314 = tpu.matmul %311, %313, %cst_355 {dimension_numbers = #tpu.dot_dimension_numbers<[1], [0], [0], [1], [0, 0, 1, 1], [], []>} : vector<16x64xbf16>, vector<64x128xbf16>, vector<16x128xf32> -> vector<16x128xf32>
    %315 = arith.addf %309, %314 : vector<16x128xf32>
    %c13_356 = arith.constant 13 : index
    %c0_357 = arith.constant 0 : index
    %c0_358 = arith.constant 0 : index
    %316 = vector.load %arg1[%c13_356, %c0_357, %c0_358] : memref<21x16x64xbf16, #tpu.memory_space<vmem>>, vector<1x16x64xbf16>
    %317 = vector.shape_cast %316 : vector<1x16x64xbf16> to vector<16x64xbf16>
    %c3_359 = arith.constant 3 : index
    %c0_360 = arith.constant 0 : index
    %c0_361 = arith.constant 0 : index
    %318 = vector.load %arg2[%c3_359, %c0_360, %c0_361] : memref<5x64x128xbf16, #tpu.memory_space<vmem>>, vector<1x64x128xbf16>
    %319 = vector.shape_cast %318 : vector<1x64x128xbf16> to vector<64x128xbf16>
    %cst_362 = arith.constant dense<0.000000e+00> : vector<16x128xf32>
    %320 = tpu.matmul %317, %319, %cst_362 {dimension_numbers = #tpu.dot_dimension_numbers<[1], [0], [0], [1], [0, 0, 1, 1], [], []>} : vector<16x64xbf16>, vector<64x128xbf16>, vector<16x128xf32> -> vector<16x128xf32>
    %321 = arith.addf %315, %320 : vector<16x128xf32>
    %c14 = arith.constant 14 : index
    %c0_363 = arith.constant 0 : index
    %c0_364 = arith.constant 0 : index
    %322 = vector.load %arg1[%c14, %c0_363, %c0_364] : memref<21x16x64xbf16, #tpu.memory_space<vmem>>, vector<1x16x64xbf16>
    %323 = vector.shape_cast %322 : vector<1x16x64xbf16> to vector<16x64xbf16>
    %c4_365 = arith.constant 4 : index
    %c0_366 = arith.constant 0 : index
    %c0_367 = arith.constant 0 : index
    %324 = vector.load %arg2[%c4_365, %c0_366, %c0_367] : memref<5x64x128xbf16, #tpu.memory_space<vmem>>, vector<1x64x128xbf16>
    %325 = vector.shape_cast %324 : vector<1x64x128xbf16> to vector<64x128xbf16>
    %cst_368 = arith.constant dense<0.000000e+00> : vector<16x128xf32>
    %326 = tpu.matmul %323, %325, %cst_368 {dimension_numbers = #tpu.dot_dimension_numbers<[1], [0], [0], [1], [0, 0, 1, 1], [], []>} : vector<16x64xbf16>, vector<64x128xbf16>, vector<16x128xf32> -> vector<16x128xf32>
    %327 = arith.addf %321, %326 : vector<16x128xf32>
    %328 = arith.maximumf %298, %327 : vector<16x128xf32>
    %c11_369 = arith.constant 11 : index
    %c0_370 = arith.constant 0 : index
    %c0_371 = arith.constant 0 : index
    %329 = vector.load %arg1[%c11_369, %c0_370, %c0_371] : memref<21x16x64xbf16, #tpu.memory_space<vmem>>, vector<1x16x64xbf16>
    %330 = vector.shape_cast %329 : vector<1x16x64xbf16> to vector<16x64xbf16>
    %c0_372 = arith.constant 0 : index
    %c0_373 = arith.constant 0 : index
    %c0_374 = arith.constant 0 : index
    %331 = vector.load %arg2[%c0_372, %c0_373, %c0_374] : memref<5x64x128xbf16, #tpu.memory_space<vmem>>, vector<1x64x128xbf16>
    %332 = vector.shape_cast %331 : vector<1x64x128xbf16> to vector<64x128xbf16>
    %cst_375 = arith.constant dense<0.000000e+00> : vector<16x128xf32>
    %333 = tpu.matmul %330, %332, %cst_375 {dimension_numbers = #tpu.dot_dimension_numbers<[1], [0], [0], [1], [0, 0, 1, 1], [], []>} : vector<16x64xbf16>, vector<64x128xbf16>, vector<16x128xf32> -> vector<16x128xf32>
    %c12_376 = arith.constant 12 : index
    %c0_377 = arith.constant 0 : index
    %c0_378 = arith.constant 0 : index
    %334 = vector.load %arg1[%c12_376, %c0_377, %c0_378] : memref<21x16x64xbf16, #tpu.memory_space<vmem>>, vector<1x16x64xbf16>
    %335 = vector.shape_cast %334 : vector<1x16x64xbf16> to vector<16x64xbf16>
    %c1_379 = arith.constant 1 : index
    %c0_380 = arith.constant 0 : index
    %c0_381 = arith.constant 0 : index
    %336 = vector.load %arg2[%c1_379, %c0_380, %c0_381] : memref<5x64x128xbf16, #tpu.memory_space<vmem>>, vector<1x64x128xbf16>
    %337 = vector.shape_cast %336 : vector<1x64x128xbf16> to vector<64x128xbf16>
    %cst_382 = arith.constant dense<0.000000e+00> : vector<16x128xf32>
    %338 = tpu.matmul %335, %337, %cst_382 {dimension_numbers = #tpu.dot_dimension_numbers<[1], [0], [0], [1], [0, 0, 1, 1], [], []>} : vector<16x64xbf16>, vector<64x128xbf16>, vector<16x128xf32> -> vector<16x128xf32>
    %339 = arith.addf %333, %338 : vector<16x128xf32>
    %c13_383 = arith.constant 13 : index
    %c0_384 = arith.constant 0 : index
    %c0_385 = arith.constant 0 : index
    %340 = vector.load %arg1[%c13_383, %c0_384, %c0_385] : memref<21x16x64xbf16, #tpu.memory_space<vmem>>, vector<1x16x64xbf16>
    %341 = vector.shape_cast %340 : vector<1x16x64xbf16> to vector<16x64xbf16>
    %c2_386 = arith.constant 2 : index
    %c0_387 = arith.constant 0 : index
    %c0_388 = arith.constant 0 : index
    %342 = vector.load %arg2[%c2_386, %c0_387, %c0_388] : memref<5x64x128xbf16, #tpu.memory_space<vmem>>, vector<1x64x128xbf16>
    %343 = vector.shape_cast %342 : vector<1x64x128xbf16> to vector<64x128xbf16>
    %cst_389 = arith.constant dense<0.000000e+00> : vector<16x128xf32>
    %344 = tpu.matmul %341, %343, %cst_389 {dimension_numbers = #tpu.dot_dimension_numbers<[1], [0], [0], [1], [0, 0, 1, 1], [], []>} : vector<16x64xbf16>, vector<64x128xbf16>, vector<16x128xf32> -> vector<16x128xf32>
    %345 = arith.addf %339, %344 : vector<16x128xf32>
    %c14_390 = arith.constant 14 : index
    %c0_391 = arith.constant 0 : index
    %c0_392 = arith.constant 0 : index
    %346 = vector.load %arg1[%c14_390, %c0_391, %c0_392] : memref<21x16x64xbf16, #tpu.memory_space<vmem>>, vector<1x16x64xbf16>
    %347 = vector.shape_cast %346 : vector<1x16x64xbf16> to vector<16x64xbf16>
    %c3_393 = arith.constant 3 : index
    %c0_394 = arith.constant 0 : index
    %c0_395 = arith.constant 0 : index
    %348 = vector.load %arg2[%c3_393, %c0_394, %c0_395] : memref<5x64x128xbf16, #tpu.memory_space<vmem>>, vector<1x64x128xbf16>
    %349 = vector.shape_cast %348 : vector<1x64x128xbf16> to vector<64x128xbf16>
    %cst_396 = arith.constant dense<0.000000e+00> : vector<16x128xf32>
    %350 = tpu.matmul %347, %349, %cst_396 {dimension_numbers = #tpu.dot_dimension_numbers<[1], [0], [0], [1], [0, 0, 1, 1], [], []>} : vector<16x64xbf16>, vector<64x128xbf16>, vector<16x128xf32> -> vector<16x128xf32>
    %351 = arith.addf %345, %350 : vector<16x128xf32>
    %c15 = arith.constant 15 : index
    %c0_397 = arith.constant 0 : index
    %c0_398 = arith.constant 0 : index
    %352 = vector.load %arg1[%c15, %c0_397, %c0_398] : memref<21x16x64xbf16, #tpu.memory_space<vmem>>, vector<1x16x64xbf16>
    %353 = vector.shape_cast %352 : vector<1x16x64xbf16> to vector<16x64xbf16>
    %c4_399 = arith.constant 4 : index
    %c0_400 = arith.constant 0 : index
    %c0_401 = arith.constant 0 : index
    %354 = vector.load %arg2[%c4_399, %c0_400, %c0_401] : memref<5x64x128xbf16, #tpu.memory_space<vmem>>, vector<1x64x128xbf16>
    %355 = vector.shape_cast %354 : vector<1x64x128xbf16> to vector<64x128xbf16>
    %cst_402 = arith.constant dense<0.000000e+00> : vector<16x128xf32>
    %356 = tpu.matmul %353, %355, %cst_402 {dimension_numbers = #tpu.dot_dimension_numbers<[1], [0], [0], [1], [0, 0, 1, 1], [], []>} : vector<16x64xbf16>, vector<64x128xbf16>, vector<16x128xf32> -> vector<16x128xf32>
    %357 = arith.addf %351, %356 : vector<16x128xf32>
    %358 = arith.maximumf %328, %357 : vector<16x128xf32>
    %c12_403 = arith.constant 12 : index
    %c0_404 = arith.constant 0 : index
    %c0_405 = arith.constant 0 : index
    %359 = vector.load %arg1[%c12_403, %c0_404, %c0_405] : memref<21x16x64xbf16, #tpu.memory_space<vmem>>, vector<1x16x64xbf16>
    %360 = vector.shape_cast %359 : vector<1x16x64xbf16> to vector<16x64xbf16>
    %c0_406 = arith.constant 0 : index
    %c0_407 = arith.constant 0 : index
    %c0_408 = arith.constant 0 : index
    %361 = vector.load %arg2[%c0_406, %c0_407, %c0_408] : memref<5x64x128xbf16, #tpu.memory_space<vmem>>, vector<1x64x128xbf16>
    %362 = vector.shape_cast %361 : vector<1x64x128xbf16> to vector<64x128xbf16>
    %cst_409 = arith.constant dense<0.000000e+00> : vector<16x128xf32>
    %363 = tpu.matmul %360, %362, %cst_409 {dimension_numbers = #tpu.dot_dimension_numbers<[1], [0], [0], [1], [0, 0, 1, 1], [], []>} : vector<16x64xbf16>, vector<64x128xbf16>, vector<16x128xf32> -> vector<16x128xf32>
    %c13_410 = arith.constant 13 : index
    %c0_411 = arith.constant 0 : index
    %c0_412 = arith.constant 0 : index
    %364 = vector.load %arg1[%c13_410, %c0_411, %c0_412] : memref<21x16x64xbf16, #tpu.memory_space<vmem>>, vector<1x16x64xbf16>
    %365 = vector.shape_cast %364 : vector<1x16x64xbf16> to vector<16x64xbf16>
    %c1_413 = arith.constant 1 : index
    %c0_414 = arith.constant 0 : index
    %c0_415 = arith.constant 0 : index
    %366 = vector.load %arg2[%c1_413, %c0_414, %c0_415] : memref<5x64x128xbf16, #tpu.memory_space<vmem>>, vector<1x64x128xbf16>
    %367 = vector.shape_cast %366 : vector<1x64x128xbf16> to vector<64x128xbf16>
    %cst_416 = arith.constant dense<0.000000e+00> : vector<16x128xf32>
    %368 = tpu.matmul %365, %367, %cst_416 {dimension_numbers = #tpu.dot_dimension_numbers<[1], [0], [0], [1], [0, 0, 1, 1], [], []>} : vector<16x64xbf16>, vector<64x128xbf16>, vector<16x128xf32> -> vector<16x128xf32>
    %369 = arith.addf %363, %368 : vector<16x128xf32>
    %c14_417 = arith.constant 14 : index
    %c0_418 = arith.constant 0 : index
    %c0_419 = arith.constant 0 : index
    %370 = vector.load %arg1[%c14_417, %c0_418, %c0_419] : memref<21x16x64xbf16, #tpu.memory_space<vmem>>, vector<1x16x64xbf16>
    %371 = vector.shape_cast %370 : vector<1x16x64xbf16> to vector<16x64xbf16>
    %c2_420 = arith.constant 2 : index
    %c0_421 = arith.constant 0 : index
    %c0_422 = arith.constant 0 : index
    %372 = vector.load %arg2[%c2_420, %c0_421, %c0_422] : memref<5x64x128xbf16, #tpu.memory_space<vmem>>, vector<1x64x128xbf16>
    %373 = vector.shape_cast %372 : vector<1x64x128xbf16> to vector<64x128xbf16>
    %cst_423 = arith.constant dense<0.000000e+00> : vector<16x128xf32>
    %374 = tpu.matmul %371, %373, %cst_423 {dimension_numbers = #tpu.dot_dimension_numbers<[1], [0], [0], [1], [0, 0, 1, 1], [], []>} : vector<16x64xbf16>, vector<64x128xbf16>, vector<16x128xf32> -> vector<16x128xf32>
    %375 = arith.addf %369, %374 : vector<16x128xf32>
    %c15_424 = arith.constant 15 : index
    %c0_425 = arith.constant 0 : index
    %c0_426 = arith.constant 0 : index
    %376 = vector.load %arg1[%c15_424, %c0_425, %c0_426] : memref<21x16x64xbf16, #tpu.memory_space<vmem>>, vector<1x16x64xbf16>
    %377 = vector.shape_cast %376 : vector<1x16x64xbf16> to vector<16x64xbf16>
    %c3_427 = arith.constant 3 : index
    %c0_428 = arith.constant 0 : index
    %c0_429 = arith.constant 0 : index
    %378 = vector.load %arg2[%c3_427, %c0_428, %c0_429] : memref<5x64x128xbf16, #tpu.memory_space<vmem>>, vector<1x64x128xbf16>
    %379 = vector.shape_cast %378 : vector<1x64x128xbf16> to vector<64x128xbf16>
    %cst_430 = arith.constant dense<0.000000e+00> : vector<16x128xf32>
    %380 = tpu.matmul %377, %379, %cst_430 {dimension_numbers = #tpu.dot_dimension_numbers<[1], [0], [0], [1], [0, 0, 1, 1], [], []>} : vector<16x64xbf16>, vector<64x128xbf16>, vector<16x128xf32> -> vector<16x128xf32>
    %381 = arith.addf %375, %380 : vector<16x128xf32>
    %c16 = arith.constant 16 : index
    %c0_431 = arith.constant 0 : index
    %c0_432 = arith.constant 0 : index
    %382 = vector.load %arg1[%c16, %c0_431, %c0_432] : memref<21x16x64xbf16, #tpu.memory_space<vmem>>, vector<1x16x64xbf16>
    %383 = vector.shape_cast %382 : vector<1x16x64xbf16> to vector<16x64xbf16>
    %c4_433 = arith.constant 4 : index
    %c0_434 = arith.constant 0 : index
    %c0_435 = arith.constant 0 : index
    %384 = vector.load %arg2[%c4_433, %c0_434, %c0_435] : memref<5x64x128xbf16, #tpu.memory_space<vmem>>, vector<1x64x128xbf16>
    %385 = vector.shape_cast %384 : vector<1x64x128xbf16> to vector<64x128xbf16>
    %cst_436 = arith.constant dense<0.000000e+00> : vector<16x128xf32>
    %386 = tpu.matmul %383, %385, %cst_436 {dimension_numbers = #tpu.dot_dimension_numbers<[1], [0], [0], [1], [0, 0, 1, 1], [], []>} : vector<16x64xbf16>, vector<64x128xbf16>, vector<16x128xf32> -> vector<16x128xf32>
    %387 = arith.addf %381, %386 : vector<16x128xf32>
    %388 = arith.maximumf %358, %387 : vector<16x128xf32>
    %c13_437 = arith.constant 13 : index
    %c0_438 = arith.constant 0 : index
    %c0_439 = arith.constant 0 : index
    %389 = vector.load %arg1[%c13_437, %c0_438, %c0_439] : memref<21x16x64xbf16, #tpu.memory_space<vmem>>, vector<1x16x64xbf16>
    %390 = vector.shape_cast %389 : vector<1x16x64xbf16> to vector<16x64xbf16>
    %c0_440 = arith.constant 0 : index
    %c0_441 = arith.constant 0 : index
    %c0_442 = arith.constant 0 : index
    %391 = vector.load %arg2[%c0_440, %c0_441, %c0_442] : memref<5x64x128xbf16, #tpu.memory_space<vmem>>, vector<1x64x128xbf16>
    %392 = vector.shape_cast %391 : vector<1x64x128xbf16> to vector<64x128xbf16>
    %cst_443 = arith.constant dense<0.000000e+00> : vector<16x128xf32>
    %393 = tpu.matmul %390, %392, %cst_443 {dimension_numbers = #tpu.dot_dimension_numbers<[1], [0], [0], [1], [0, 0, 1, 1], [], []>} : vector<16x64xbf16>, vector<64x128xbf16>, vector<16x128xf32> -> vector<16x128xf32>
    %c14_444 = arith.constant 14 : index
    %c0_445 = arith.constant 0 : index
    %c0_446 = arith.constant 0 : index
    %394 = vector.load %arg1[%c14_444, %c0_445, %c0_446] : memref<21x16x64xbf16, #tpu.memory_space<vmem>>, vector<1x16x64xbf16>
    %395 = vector.shape_cast %394 : vector<1x16x64xbf16> to vector<16x64xbf16>
    %c1_447 = arith.constant 1 : index
    %c0_448 = arith.constant 0 : index
    %c0_449 = arith.constant 0 : index
    %396 = vector.load %arg2[%c1_447, %c0_448, %c0_449] : memref<5x64x128xbf16, #tpu.memory_space<vmem>>, vector<1x64x128xbf16>
    %397 = vector.shape_cast %396 : vector<1x64x128xbf16> to vector<64x128xbf16>
    %cst_450 = arith.constant dense<0.000000e+00> : vector<16x128xf32>
    %398 = tpu.matmul %395, %397, %cst_450 {dimension_numbers = #tpu.dot_dimension_numbers<[1], [0], [0], [1], [0, 0, 1, 1], [], []>} : vector<16x64xbf16>, vector<64x128xbf16>, vector<16x128xf32> -> vector<16x128xf32>
    %399 = arith.addf %393, %398 : vector<16x128xf32>
    %c15_451 = arith.constant 15 : index
    %c0_452 = arith.constant 0 : index
    %c0_453 = arith.constant 0 : index
    %400 = vector.load %arg1[%c15_451, %c0_452, %c0_453] : memref<21x16x64xbf16, #tpu.memory_space<vmem>>, vector<1x16x64xbf16>
    %401 = vector.shape_cast %400 : vector<1x16x64xbf16> to vector<16x64xbf16>
    %c2_454 = arith.constant 2 : index
    %c0_455 = arith.constant 0 : index
    %c0_456 = arith.constant 0 : index
    %402 = vector.load %arg2[%c2_454, %c0_455, %c0_456] : memref<5x64x128xbf16, #tpu.memory_space<vmem>>, vector<1x64x128xbf16>
    %403 = vector.shape_cast %402 : vector<1x64x128xbf16> to vector<64x128xbf16>
    %cst_457 = arith.constant dense<0.000000e+00> : vector<16x128xf32>
    %404 = tpu.matmul %401, %403, %cst_457 {dimension_numbers = #tpu.dot_dimension_numbers<[1], [0], [0], [1], [0, 0, 1, 1], [], []>} : vector<16x64xbf16>, vector<64x128xbf16>, vector<16x128xf32> -> vector<16x128xf32>
    %405 = arith.addf %399, %404 : vector<16x128xf32>
    %c16_458 = arith.constant 16 : index
    %c0_459 = arith.constant 0 : index
    %c0_460 = arith.constant 0 : index
    %406 = vector.load %arg1[%c16_458, %c0_459, %c0_460] : memref<21x16x64xbf16, #tpu.memory_space<vmem>>, vector<1x16x64xbf16>
    %407 = vector.shape_cast %406 : vector<1x16x64xbf16> to vector<16x64xbf16>
    %c3_461 = arith.constant 3 : index
    %c0_462 = arith.constant 0 : index
    %c0_463 = arith.constant 0 : index
    %408 = vector.load %arg2[%c3_461, %c0_462, %c0_463] : memref<5x64x128xbf16, #tpu.memory_space<vmem>>, vector<1x64x128xbf16>
    %409 = vector.shape_cast %408 : vector<1x64x128xbf16> to vector<64x128xbf16>
    %cst_464 = arith.constant dense<0.000000e+00> : vector<16x128xf32>
    %410 = tpu.matmul %407, %409, %cst_464 {dimension_numbers = #tpu.dot_dimension_numbers<[1], [0], [0], [1], [0, 0, 1, 1], [], []>} : vector<16x64xbf16>, vector<64x128xbf16>, vector<16x128xf32> -> vector<16x128xf32>
    %411 = arith.addf %405, %410 : vector<16x128xf32>
    %c17 = arith.constant 17 : index
    %c0_465 = arith.constant 0 : index
    %c0_466 = arith.constant 0 : index
    %412 = vector.load %arg1[%c17, %c0_465, %c0_466] : memref<21x16x64xbf16, #tpu.memory_space<vmem>>, vector<1x16x64xbf16>
    %413 = vector.shape_cast %412 : vector<1x16x64xbf16> to vector<16x64xbf16>
    %c4_467 = arith.constant 4 : index
    %c0_468 = arith.constant 0 : index
    %c0_469 = arith.constant 0 : index
    %414 = vector.load %arg2[%c4_467, %c0_468, %c0_469] : memref<5x64x128xbf16, #tpu.memory_space<vmem>>, vector<1x64x128xbf16>
    %415 = vector.shape_cast %414 : vector<1x64x128xbf16> to vector<64x128xbf16>
    %cst_470 = arith.constant dense<0.000000e+00> : vector<16x128xf32>
    %416 = tpu.matmul %413, %415, %cst_470 {dimension_numbers = #tpu.dot_dimension_numbers<[1], [0], [0], [1], [0, 0, 1, 1], [], []>} : vector<16x64xbf16>, vector<64x128xbf16>, vector<16x128xf32> -> vector<16x128xf32>
    %417 = arith.addf %411, %416 : vector<16x128xf32>
    %418 = arith.maximumf %388, %417 : vector<16x128xf32>
    %c14_471 = arith.constant 14 : index
    %c0_472 = arith.constant 0 : index
    %c0_473 = arith.constant 0 : index
    %419 = vector.load %arg1[%c14_471, %c0_472, %c0_473] : memref<21x16x64xbf16, #tpu.memory_space<vmem>>, vector<1x16x64xbf16>
    %420 = vector.shape_cast %419 : vector<1x16x64xbf16> to vector<16x64xbf16>
    %c0_474 = arith.constant 0 : index
    %c0_475 = arith.constant 0 : index
    %c0_476 = arith.constant 0 : index
    %421 = vector.load %arg2[%c0_474, %c0_475, %c0_476] : memref<5x64x128xbf16, #tpu.memory_space<vmem>>, vector<1x64x128xbf16>
    %422 = vector.shape_cast %421 : vector<1x64x128xbf16> to vector<64x128xbf16>
    %cst_477 = arith.constant dense<0.000000e+00> : vector<16x128xf32>
    %423 = tpu.matmul %420, %422, %cst_477 {dimension_numbers = #tpu.dot_dimension_numbers<[1], [0], [0], [1], [0, 0, 1, 1], [], []>} : vector<16x64xbf16>, vector<64x128xbf16>, vector<16x128xf32> -> vector<16x128xf32>
    %c15_478 = arith.constant 15 : index
    %c0_479 = arith.constant 0 : index
    %c0_480 = arith.constant 0 : index
    %424 = vector.load %arg1[%c15_478, %c0_479, %c0_480] : memref<21x16x64xbf16, #tpu.memory_space<vmem>>, vector<1x16x64xbf16>
    %425 = vector.shape_cast %424 : vector<1x16x64xbf16> to vector<16x64xbf16>
    %c1_481 = arith.constant 1 : index
    %c0_482 = arith.constant 0 : index
    %c0_483 = arith.constant 0 : index
    %426 = vector.load %arg2[%c1_481, %c0_482, %c0_483] : memref<5x64x128xbf16, #tpu.memory_space<vmem>>, vector<1x64x128xbf16>
    %427 = vector.shape_cast %426 : vector<1x64x128xbf16> to vector<64x128xbf16>
    %cst_484 = arith.constant dense<0.000000e+00> : vector<16x128xf32>
    %428 = tpu.matmul %425, %427, %cst_484 {dimension_numbers = #tpu.dot_dimension_numbers<[1], [0], [0], [1], [0, 0, 1, 1], [], []>} : vector<16x64xbf16>, vector<64x128xbf16>, vector<16x128xf32> -> vector<16x128xf32>
    %429 = arith.addf %423, %428 : vector<16x128xf32>
    %c16_485 = arith.constant 16 : index
    %c0_486 = arith.constant 0 : index
    %c0_487 = arith.constant 0 : index
    %430 = vector.load %arg1[%c16_485, %c0_486, %c0_487] : memref<21x16x64xbf16, #tpu.memory_space<vmem>>, vector<1x16x64xbf16>
    %431 = vector.shape_cast %430 : vector<1x16x64xbf16> to vector<16x64xbf16>
    %c2_488 = arith.constant 2 : index
    %c0_489 = arith.constant 0 : index
    %c0_490 = arith.constant 0 : index
    %432 = vector.load %arg2[%c2_488, %c0_489, %c0_490] : memref<5x64x128xbf16, #tpu.memory_space<vmem>>, vector<1x64x128xbf16>
    %433 = vector.shape_cast %432 : vector<1x64x128xbf16> to vector<64x128xbf16>
    %cst_491 = arith.constant dense<0.000000e+00> : vector<16x128xf32>
    %434 = tpu.matmul %431, %433, %cst_491 {dimension_numbers = #tpu.dot_dimension_numbers<[1], [0], [0], [1], [0, 0, 1, 1], [], []>} : vector<16x64xbf16>, vector<64x128xbf16>, vector<16x128xf32> -> vector<16x128xf32>
    %435 = arith.addf %429, %434 : vector<16x128xf32>
    %c17_492 = arith.constant 17 : index
    %c0_493 = arith.constant 0 : index
    %c0_494 = arith.constant 0 : index
    %436 = vector.load %arg1[%c17_492, %c0_493, %c0_494] : memref<21x16x64xbf16, #tpu.memory_space<vmem>>, vector<1x16x64xbf16>
    %437 = vector.shape_cast %436 : vector<1x16x64xbf16> to vector<16x64xbf16>
    %c3_495 = arith.constant 3 : index
    %c0_496 = arith.constant 0 : index
    %c0_497 = arith.constant 0 : index
    %438 = vector.load %arg2[%c3_495, %c0_496, %c0_497] : memref<5x64x128xbf16, #tpu.memory_space<vmem>>, vector<1x64x128xbf16>
    %439 = vector.shape_cast %438 : vector<1x64x128xbf16> to vector<64x128xbf16>
    %cst_498 = arith.constant dense<0.000000e+00> : vector<16x128xf32>
    %440 = tpu.matmul %437, %439, %cst_498 {dimension_numbers = #tpu.dot_dimension_numbers<[1], [0], [0], [1], [0, 0, 1, 1], [], []>} : vector<16x64xbf16>, vector<64x128xbf16>, vector<16x128xf32> -> vector<16x128xf32>
    %441 = arith.addf %435, %440 : vector<16x128xf32>
    %c18 = arith.constant 18 : index
    %c0_499 = arith.constant 0 : index
    %c0_500 = arith.constant 0 : index
    %442 = vector.load %arg1[%c18, %c0_499, %c0_500] : memref<21x16x64xbf16, #tpu.memory_space<vmem>>, vector<1x16x64xbf16>
    %443 = vector.shape_cast %442 : vector<1x16x64xbf16> to vector<16x64xbf16>
    %c4_501 = arith.constant 4 : index
    %c0_502 = arith.constant 0 : index
    %c0_503 = arith.constant 0 : index
    %444 = vector.load %arg2[%c4_501, %c0_502, %c0_503] : memref<5x64x128xbf16, #tpu.memory_space<vmem>>, vector<1x64x128xbf16>
    %445 = vector.shape_cast %444 : vector<1x64x128xbf16> to vector<64x128xbf16>
    %cst_504 = arith.constant dense<0.000000e+00> : vector<16x128xf32>
    %446 = tpu.matmul %443, %445, %cst_504 {dimension_numbers = #tpu.dot_dimension_numbers<[1], [0], [0], [1], [0, 0, 1, 1], [], []>} : vector<16x64xbf16>, vector<64x128xbf16>, vector<16x128xf32> -> vector<16x128xf32>
    %447 = arith.addf %441, %446 : vector<16x128xf32>
    %448 = arith.maximumf %418, %447 : vector<16x128xf32>
    %c15_505 = arith.constant 15 : index
    %c0_506 = arith.constant 0 : index
    %c0_507 = arith.constant 0 : index
    %449 = vector.load %arg1[%c15_505, %c0_506, %c0_507] : memref<21x16x64xbf16, #tpu.memory_space<vmem>>, vector<1x16x64xbf16>
    %450 = vector.shape_cast %449 : vector<1x16x64xbf16> to vector<16x64xbf16>
    %c0_508 = arith.constant 0 : index
    %c0_509 = arith.constant 0 : index
    %c0_510 = arith.constant 0 : index
    %451 = vector.load %arg2[%c0_508, %c0_509, %c0_510] : memref<5x64x128xbf16, #tpu.memory_space<vmem>>, vector<1x64x128xbf16>
    %452 = vector.shape_cast %451 : vector<1x64x128xbf16> to vector<64x128xbf16>
    %cst_511 = arith.constant dense<0.000000e+00> : vector<16x128xf32>
    %453 = tpu.matmul %450, %452, %cst_511 {dimension_numbers = #tpu.dot_dimension_numbers<[1], [0], [0], [1], [0, 0, 1, 1], [], []>} : vector<16x64xbf16>, vector<64x128xbf16>, vector<16x128xf32> -> vector<16x128xf32>
    %c16_512 = arith.constant 16 : index
    %c0_513 = arith.constant 0 : index
    %c0_514 = arith.constant 0 : index
    %454 = vector.load %arg1[%c16_512, %c0_513, %c0_514] : memref<21x16x64xbf16, #tpu.memory_space<vmem>>, vector<1x16x64xbf16>
    %455 = vector.shape_cast %454 : vector<1x16x64xbf16> to vector<16x64xbf16>
    %c1_515 = arith.constant 1 : index
    %c0_516 = arith.constant 0 : index
    %c0_517 = arith.constant 0 : index
    %456 = vector.load %arg2[%c1_515, %c0_516, %c0_517] : memref<5x64x128xbf16, #tpu.memory_space<vmem>>, vector<1x64x128xbf16>
    %457 = vector.shape_cast %456 : vector<1x64x128xbf16> to vector<64x128xbf16>
    %cst_518 = arith.constant dense<0.000000e+00> : vector<16x128xf32>
    %458 = tpu.matmul %455, %457, %cst_518 {dimension_numbers = #tpu.dot_dimension_numbers<[1], [0], [0], [1], [0, 0, 1, 1], [], []>} : vector<16x64xbf16>, vector<64x128xbf16>, vector<16x128xf32> -> vector<16x128xf32>
    %459 = arith.addf %453, %458 : vector<16x128xf32>
    %c17_519 = arith.constant 17 : index
    %c0_520 = arith.constant 0 : index
    %c0_521 = arith.constant 0 : index
    %460 = vector.load %arg1[%c17_519, %c0_520, %c0_521] : memref<21x16x64xbf16, #tpu.memory_space<vmem>>, vector<1x16x64xbf16>
    %461 = vector.shape_cast %460 : vector<1x16x64xbf16> to vector<16x64xbf16>
    %c2_522 = arith.constant 2 : index
    %c0_523 = arith.constant 0 : index
    %c0_524 = arith.constant 0 : index
    %462 = vector.load %arg2[%c2_522, %c0_523, %c0_524] : memref<5x64x128xbf16, #tpu.memory_space<vmem>>, vector<1x64x128xbf16>
    %463 = vector.shape_cast %462 : vector<1x64x128xbf16> to vector<64x128xbf16>
    %cst_525 = arith.constant dense<0.000000e+00> : vector<16x128xf32>
    %464 = tpu.matmul %461, %463, %cst_525 {dimension_numbers = #tpu.dot_dimension_numbers<[1], [0], [0], [1], [0, 0, 1, 1], [], []>} : vector<16x64xbf16>, vector<64x128xbf16>, vector<16x128xf32> -> vector<16x128xf32>
    %465 = arith.addf %459, %464 : vector<16x128xf32>
    %c18_526 = arith.constant 18 : index
    %c0_527 = arith.constant 0 : index
    %c0_528 = arith.constant 0 : index
    %466 = vector.load %arg1[%c18_526, %c0_527, %c0_528] : memref<21x16x64xbf16, #tpu.memory_space<vmem>>, vector<1x16x64xbf16>
    %467 = vector.shape_cast %466 : vector<1x16x64xbf16> to vector<16x64xbf16>
    %c3_529 = arith.constant 3 : index
    %c0_530 = arith.constant 0 : index
    %c0_531 = arith.constant 0 : index
    %468 = vector.load %arg2[%c3_529, %c0_530, %c0_531] : memref<5x64x128xbf16, #tpu.memory_space<vmem>>, vector<1x64x128xbf16>
    %469 = vector.shape_cast %468 : vector<1x64x128xbf16> to vector<64x128xbf16>
    %cst_532 = arith.constant dense<0.000000e+00> : vector<16x128xf32>
    %470 = tpu.matmul %467, %469, %cst_532 {dimension_numbers = #tpu.dot_dimension_numbers<[1], [0], [0], [1], [0, 0, 1, 1], [], []>} : vector<16x64xbf16>, vector<64x128xbf16>, vector<16x128xf32> -> vector<16x128xf32>
    %471 = arith.addf %465, %470 : vector<16x128xf32>
    %c19 = arith.constant 19 : index
    %c0_533 = arith.constant 0 : index
    %c0_534 = arith.constant 0 : index
    %472 = vector.load %arg1[%c19, %c0_533, %c0_534] : memref<21x16x64xbf16, #tpu.memory_space<vmem>>, vector<1x16x64xbf16>
    %473 = vector.shape_cast %472 : vector<1x16x64xbf16> to vector<16x64xbf16>
    %c4_535 = arith.constant 4 : index
    %c0_536 = arith.constant 0 : index
    %c0_537 = arith.constant 0 : index
    %474 = vector.load %arg2[%c4_535, %c0_536, %c0_537] : memref<5x64x128xbf16, #tpu.memory_space<vmem>>, vector<1x64x128xbf16>
    %475 = vector.shape_cast %474 : vector<1x64x128xbf16> to vector<64x128xbf16>
    %cst_538 = arith.constant dense<0.000000e+00> : vector<16x128xf32>
    %476 = tpu.matmul %473, %475, %cst_538 {dimension_numbers = #tpu.dot_dimension_numbers<[1], [0], [0], [1], [0, 0, 1, 1], [], []>} : vector<16x64xbf16>, vector<64x128xbf16>, vector<16x128xf32> -> vector<16x128xf32>
    %477 = arith.addf %471, %476 : vector<16x128xf32>
    %478 = arith.maximumf %448, %477 : vector<16x128xf32>
    %c16_539 = arith.constant 16 : index
    %c0_540 = arith.constant 0 : index
    %c0_541 = arith.constant 0 : index
    %479 = vector.load %arg1[%c16_539, %c0_540, %c0_541] : memref<21x16x64xbf16, #tpu.memory_space<vmem>>, vector<1x16x64xbf16>
    %480 = vector.shape_cast %479 : vector<1x16x64xbf16> to vector<16x64xbf16>
    %c0_542 = arith.constant 0 : index
    %c0_543 = arith.constant 0 : index
    %c0_544 = arith.constant 0 : index
    %481 = vector.load %arg2[%c0_542, %c0_543, %c0_544] : memref<5x64x128xbf16, #tpu.memory_space<vmem>>, vector<1x64x128xbf16>
    %482 = vector.shape_cast %481 : vector<1x64x128xbf16> to vector<64x128xbf16>
    %cst_545 = arith.constant dense<0.000000e+00> : vector<16x128xf32>
    %483 = tpu.matmul %480, %482, %cst_545 {dimension_numbers = #tpu.dot_dimension_numbers<[1], [0], [0], [1], [0, 0, 1, 1], [], []>} : vector<16x64xbf16>, vector<64x128xbf16>, vector<16x128xf32> -> vector<16x128xf32>
    %c17_546 = arith.constant 17 : index
    %c0_547 = arith.constant 0 : index
    %c0_548 = arith.constant 0 : index
    %484 = vector.load %arg1[%c17_546, %c0_547, %c0_548] : memref<21x16x64xbf16, #tpu.memory_space<vmem>>, vector<1x16x64xbf16>
    %485 = vector.shape_cast %484 : vector<1x16x64xbf16> to vector<16x64xbf16>
    %c1_549 = arith.constant 1 : index
    %c0_550 = arith.constant 0 : index
    %c0_551 = arith.constant 0 : index
    %486 = vector.load %arg2[%c1_549, %c0_550, %c0_551] : memref<5x64x128xbf16, #tpu.memory_space<vmem>>, vector<1x64x128xbf16>
    %487 = vector.shape_cast %486 : vector<1x64x128xbf16> to vector<64x128xbf16>
    %cst_552 = arith.constant dense<0.000000e+00> : vector<16x128xf32>
    %488 = tpu.matmul %485, %487, %cst_552 {dimension_numbers = #tpu.dot_dimension_numbers<[1], [0], [0], [1], [0, 0, 1, 1], [], []>} : vector<16x64xbf16>, vector<64x128xbf16>, vector<16x128xf32> -> vector<16x128xf32>
    %489 = arith.addf %483, %488 : vector<16x128xf32>
    %c18_553 = arith.constant 18 : index
    %c0_554 = arith.constant 0 : index
    %c0_555 = arith.constant 0 : index
    %490 = vector.load %arg1[%c18_553, %c0_554, %c0_555] : memref<21x16x64xbf16, #tpu.memory_space<vmem>>, vector<1x16x64xbf16>
    %491 = vector.shape_cast %490 : vector<1x16x64xbf16> to vector<16x64xbf16>
    %c2_556 = arith.constant 2 : index
    %c0_557 = arith.constant 0 : index
    %c0_558 = arith.constant 0 : index
    %492 = vector.load %arg2[%c2_556, %c0_557, %c0_558] : memref<5x64x128xbf16, #tpu.memory_space<vmem>>, vector<1x64x128xbf16>
    %493 = vector.shape_cast %492 : vector<1x64x128xbf16> to vector<64x128xbf16>
    %cst_559 = arith.constant dense<0.000000e+00> : vector<16x128xf32>
    %494 = tpu.matmul %491, %493, %cst_559 {dimension_numbers = #tpu.dot_dimension_numbers<[1], [0], [0], [1], [0, 0, 1, 1], [], []>} : vector<16x64xbf16>, vector<64x128xbf16>, vector<16x128xf32> -> vector<16x128xf32>
    %495 = arith.addf %489, %494 : vector<16x128xf32>
    %c19_560 = arith.constant 19 : index
    %c0_561 = arith.constant 0 : index
    %c0_562 = arith.constant 0 : index
    %496 = vector.load %arg1[%c19_560, %c0_561, %c0_562] : memref<21x16x64xbf16, #tpu.memory_space<vmem>>, vector<1x16x64xbf16>
    %497 = vector.shape_cast %496 : vector<1x16x64xbf16> to vector<16x64xbf16>
    %c3_563 = arith.constant 3 : index
    %c0_564 = arith.constant 0 : index
    %c0_565 = arith.constant 0 : index
    %498 = vector.load %arg2[%c3_563, %c0_564, %c0_565] : memref<5x64x128xbf16, #tpu.memory_space<vmem>>, vector<1x64x128xbf16>
    %499 = vector.shape_cast %498 : vector<1x64x128xbf16> to vector<64x128xbf16>
    %cst_566 = arith.constant dense<0.000000e+00> : vector<16x128xf32>
    %500 = tpu.matmul %497, %499, %cst_566 {dimension_numbers = #tpu.dot_dimension_numbers<[1], [0], [0], [1], [0, 0, 1, 1], [], []>} : vector<16x64xbf16>, vector<64x128xbf16>, vector<16x128xf32> -> vector<16x128xf32>
    %501 = arith.addf %495, %500 : vector<16x128xf32>
    %c20 = arith.constant 20 : index
    %c0_567 = arith.constant 0 : index
    %c0_568 = arith.constant 0 : index
    %502 = vector.load %arg1[%c20, %c0_567, %c0_568] : memref<21x16x64xbf16, #tpu.memory_space<vmem>>, vector<1x16x64xbf16>
    %503 = vector.shape_cast %502 : vector<1x16x64xbf16> to vector<16x64xbf16>
    %c4_569 = arith.constant 4 : index
    %c0_570 = arith.constant 0 : index
    %c0_571 = arith.constant 0 : index
    %504 = vector.load %arg2[%c4_569, %c0_570, %c0_571] : memref<5x64x128xbf16, #tpu.memory_space<vmem>>, vector<1x64x128xbf16>
    %505 = vector.shape_cast %504 : vector<1x64x128xbf16> to vector<64x128xbf16>
    %cst_572 = arith.constant dense<0.000000e+00> : vector<16x128xf32>
    %506 = tpu.matmul %503, %505, %cst_572 {dimension_numbers = #tpu.dot_dimension_numbers<[1], [0], [0], [1], [0, 0, 1, 1], [], []>} : vector<16x64xbf16>, vector<64x128xbf16>, vector<16x128xf32> -> vector<16x128xf32>
    %507 = arith.addf %501, %506 : vector<16x128xf32>
    %508 = arith.maximumf %478, %507 : vector<16x128xf32>
    %c0_573 = arith.constant 0 : index
    %c0_574 = arith.constant 0 : index
    %509 = vector.load %arg3[%c0_573, %c0_574] : memref<1x128xf32, #tpu.memory_space<vmem>>, vector<1x128xf32>
    %510 = vector.broadcast %509 : vector<1x128xf32> to vector<16x128xf32>
    %511 = arith.addf %508, %510 : vector<16x128xf32>
    %cst_575 = arith.constant 0.000000e+00 : f32
    %512 = vector.broadcast %cst_575 : f32 to vector<16x128xf32>
    %513 = arith.maximumf %511, %512 : vector<16x128xf32>
    %514 = arith.truncf %513 : vector<16x128xf32> to vector<16x128xbf16>
    %c0_576 = arith.constant 0 : index
    %c0_577 = arith.constant 0 : index
    %515 = vector.load %arg4[%c0_576, %c0_577] : memref<128x256xbf16, #tpu.memory_space<vmem>>, vector<128x256xbf16>
    %cst_578 = arith.constant dense<0.000000e+00> : vector<16x256xf32>
    %516 = tpu.matmul %514, %515, %cst_578 {dimension_numbers = #tpu.dot_dimension_numbers<[1], [0], [0], [1], [0, 0, 1, 1], [], []>} : vector<16x128xbf16>, vector<128x256xbf16>, vector<16x256xf32> -> vector<16x256xf32>
    %c0_579 = arith.constant 0 : index
    %c0_580 = arith.constant 0 : index
    %517 = vector.load %arg5[%c0_579, %c0_580] : memref<1x256xf32, #tpu.memory_space<vmem>>, vector<1x256xf32>
    %518 = vector.broadcast %517 : vector<1x256xf32> to vector<16x256xf32>
    %519 = arith.addf %516, %518 : vector<16x256xf32>
    %520 = vector.extract_strided_slice %519 {offsets = [0, 0], sizes = [16, 128], strides = [1, 1]} : vector<16x256xf32> to vector<16x128xf32>
    %cst_581 = arith.constant 0.000000e+00 : f32
    %521 = vector.broadcast %cst_581 : f32 to vector<16x128xf32>
    %522 = arith.maximumf %520, %521 : vector<16x128xf32>
    %523 = vector.extract_strided_slice %519 {offsets = [0, 128], sizes = [16, 128], strides = [1, 1]} : vector<16x256xf32> to vector<16x128xf32>
    %524 = arith.negf %523 : vector<16x128xf32>
    %525 = math.exp %524 : vector<16x128xf32>
    %cst_582 = arith.constant 1.000000e+00 : f32
    %526 = vector.broadcast %cst_582 : f32 to vector<16x128xf32>
    %527 = arith.addf %526, %525 : vector<16x128xf32>
    %528 = arith.divf %526, %527 : vector<16x128xf32>
    %529 = arith.mulf %528, %522 : vector<16x128xf32>
    %cst_583 = arith.constant 1.000000e+00 : f32
    %530 = vector.broadcast %cst_583 : f32 to vector<16x128xf32>
    %531 = arith.subf %530, %528 : vector<16x128xf32>
    %532 = arith.mulf %531, %513 : vector<16x128xf32>
    %533 = arith.addf %529, %532 : vector<16x128xf32>
    %c0_584 = arith.constant 0 : index
    %c0_585 = arith.constant 0 : index
    %534 = vector.load %arg6[%c0_584, %c0_585] : memref<16x128xf32, #tpu.memory_space<vmem>>, vector<16x128xf32>
    tpu.vector_store %arg6[%c0_584, %c0_585], %533 {strides = array<i32>} : memref<16x128xf32, #tpu.memory_space<vmem>>, vector<16x128xf32>,
    return
  }
  func.func @transform_0(%arg0: i32) -> (i32, i32, i32) {
    %c0_i32 = arith.constant 0 : i32
    %c0_i32_0 = arith.constant 0 : i32
    %c0_i32_1 = arith.constant 0 : i32
    return %c0_i32, %arg0, %c0_i32_0 : i32, i32, i32
  }
  func.func @transform_1(%arg0: i32) -> (i32, i32, i32) {
    %c0_i32 = arith.constant 0 : i32
    %c0_i32_0 = arith.constant 0 : i32
    %c0_i32_1 = arith.constant 0 : i32
    %c0_i32_2 = arith.constant 0 : i32
    return %c0_i32, %c0_i32_0, %c0_i32_1 : i32, i32, i32
  }
  func.func @transform_2(%arg0: i32) -> (i32, i32) {
    %c0_i32 = arith.constant 0 : i32
    %c0_i32_0 = arith.constant 0 : i32
    %c0_i32_1 = arith.constant 0 : i32
    return %c0_i32, %c0_i32_0 : i32, i32
  }
  func.func @transform_3(%arg0: i32) -> (i32, i32) {
    %c0_i32 = arith.constant 0 : i32
    %c0_i32_0 = arith.constant 0 : i32
    %c0_i32_1 = arith.constant 0 : i32
    return %c0_i32, %c0_i32_0 : i32, i32
  }
  func.func @transform_4(%arg0: i32) -> (i32, i32) {
    %c0_i32 = arith.constant 0 : i32
    %c0_i32_0 = arith.constant 0 : i32
    %c0_i32_1 = arith.constant 0 : i32
    return %c0_i32, %c0_i32_0 : i32, i32
  }
  func.func @transform_5(%arg0: i32) -> (i32, i32) {
    %c0_i32 = arith.constant 0 : i32
    %c0_i32_0 = arith.constant 0 : i32
    return %arg0, %c0_i32 : i32, i32
  }
}

</mosaic_0001>

<bundles_post_ra>
// kernel: tpu_custom_call.1
= control target key start
LH: loop header
LB: loop body
LE: loop exit
PB: predicated region body
PF: predicated region fallthrough
CT: control target
= control target key end

     0   :  { %10 = vsyncpa [#allocation3], 0  ;;  %s7655_s0 = inlined_call_operand.hbm [shape: bf16[21,16,64], index: 0, kind: input, shape index: {}]   ;;  %s7656_s1 = inlined_call_operand.hbm [shape: bf16[5,64,128], index: 1, kind: input, shape index: {}]   ;;  %s7657_s2 = inlined_call_operand.vmem [shape: f32[1,128], index: 2, kind: input, shape index: {}]   ;;  %s7658_s3 = inlined_call_operand.hbm [shape: bf16[128,256], index: 3, kind: input, shape index: {}]   ;;  %s7659_s4 = inlined_call_operand.vmem [shape: f32[1,256], index: 4, kind: input, shape index: {}]   ;;  %s7660_s5 = inlined_call_operand.hbm [shape: f32[16,128], index: 5, kind: output, shape index: {}]  }
   0x1   :  { %11 = vsyncpa [#allocation6], 0 }
   0x2   :  { %12 = vsyncpa [#allocation4], 0  ;;  %s6340_s18 = smov [#allocation5]   ;;  %s6341_s20 = smov [#allocation2]  }
   0x3   :  { %s30_s19 = sshll.u32 %s6340_s18, 4  ;;  %s18_s21 = sshll.u32 %s6341_s20, 4  ;;  %s31_s19 = int_to_ptr.vmem [resolvable:$true] %s30_s19  ;;  %s6381_s21 = int_to_ptr.vmem [resolvable:$true] %s18_s21 }
   0x4   :  { %s6246_s24 = scalar_lea.hbm %s7656_s1, 2560 }
   0x5   :  { %p6247_p0 = scmp.ne.s32.totalorder %s7656_s1, %s6246_s24  ;;  %p6250_p1 = scmp.lt.u32.totalorder %s6246_s24, %s7656_s1 }
   0x7   :  { %p6252_p2 = pnand %p6250_p1, %p6247_p0 }
   0x9   :  { %6255 = shalt.err (!%p6252_p2)
}
   0xa   :  { %s6256_s29 = scalar_lea.vmem %s31_s19, 2560  ;;  %p6261_p4 = scmp.lt.s32.totalorder %s31_s19, %s31_s19 }
   0xb   :  { %p6257_p3 = scmp.ne.s32.totalorder %s31_s19, %s6256_s29  ;;  %p6262_p5 = scmp.lt.s32.totalorder %s6256_s29, %s6256_s29 }
   0xd   :  { %p6263_p6 = por %p6262_p5, %p6261_p4 }
   0xf   :  { %p6264_p7 = pnand %p6263_p6, %p6257_p3 }
  0x11   :  { %6267 = shalt.err (!%p6264_p7)
}
  0x12   :  { %s6342_s30 = smov 64   ;;  %s6343_s6 = smov 4  }
  0x13   :  { %36 = dma.hbm_to_vmem [thread:$0]  %s7656_s1, 2560, %s31_s19, [#allocation6], %s6342_s30, %s6342_s30, %s6343_s6  }
  0x14   :  { %s6268_s11 = scalar_lea.hbm %s7655_s0, 2688 }
  0x15   :  { %p6269_p8 = scmp.ne.s32.totalorder %s7655_s0, %s6268_s11  ;;  %p6272_p9 = scmp.lt.u32.totalorder %s6268_s11, %s7655_s0 }
  0x17   :  { %p6274_p10 = pnand %p6272_p9, %p6269_p8 }
  0x19   :  { %6277 = shalt.err (!%p6274_p10)
}
  0x1a   :  { %s6278_s16 = scalar_lea.vmem %s6381_s21, 2688  ;;  %p6283_p12 = scmp.lt.s32.totalorder %s6381_s21, %s6381_s21 }
  0x1b   :  { %p6279_p11 = scmp.ne.s32.totalorder %s6381_s21, %s6278_s16  ;;  %p6284_p13 = scmp.lt.s32.totalorder %s6278_s16, %s6278_s16 }
  0x1d   :  { %p6285_p0 = por %p6284_p13, %p6283_p12 }
  0x1f   :  { %p6286_p1 = pnand %p6285_p0, %p6279_p11 }
  0x21   :  { %6289 = shalt.err (!%p6286_p1)
}
  0x22   :  { %24 = dma.hbm_to_vmem [thread:$0]  %s7655_s0, 2688, %s6381_s21, [#allocation3], %s6342_s30, %s6342_s30, %s6343_s6  }
  0x23   :  { %s6344_s18 = smov [#allocation7]   ;;  %s6290_s23 = scalar_lea.hbm %s7658_s3, 2048 }
  0x24   :  { %s44_s19 = sshll.u32 %s6344_s18, 4  ;;  %p6291_p2 = scmp.ne.s32.totalorder %s7658_s3, %s6290_s23  ;;  %s45_s19 = int_to_ptr.vmem [resolvable:$true] %s44_s19 }
  0x25   :  { %p6294_p3 = scmp.lt.u32.totalorder %s6290_s23, %s7658_s3 }
  0x27   :  { %p6296_p4 = pnand %p6294_p3, %p6291_p2 }
  0x29   :  { %6299 = shalt.err (!%p6296_p4)
}
  0x2a   :  { %s6300_s28 = scalar_lea.vmem %s45_s19, 2048  ;;  %p6305_p6 = scmp.lt.s32.totalorder %s45_s19, %s45_s19 }
  0x2b   :  { %p6301_p5 = scmp.ne.s32.totalorder %s45_s19, %s6300_s28  ;;  %p6306_p7 = scmp.lt.s32.totalorder %s6300_s28, %s6300_s28 }
  0x2d   :  { %p6307_p8 = por %p6306_p7, %p6305_p6 }
  0x2f   :  { %p6308_p9 = pnand %p6307_p8, %p6301_p5 }
  0x31   :  { %6311 = shalt.err (!%p6308_p9)
}
  0x32   :  { %s6345_s0 = smov 128   ;;  %s6346_s21 = smov 8  }
  0x33   :  { %50 = dma.hbm_to_vmem [thread:$0]  %s7658_s3, 2048, %s45_s19, [#allocation6], %s6345_s0, %s6345_s0, %s6346_s21  }
  0x34   :  { %6334 = dma.done.wait [#allocation3], 2688  }
  0x35   :  { %6335 = vsyncadd [#allocation3], 4294964608 }
  0x36   :  { %6336 = dma.done.wait [#allocation6], 4608  }
  0x37   :  { %6337 = vsyncadd [#allocation6], 4294962688  ;;  %v6347_v0 = vmov 0.0   ;;  %vm6348_vm0 = vmmov 0   ;;  %v6433_v1 = vld [vmem:[#allocation5 + $0x20] sm:$0xff]   ;;  %v6438_v3 = vld [vmem:[#allocation5 + $0x28] sm:$0xff]  }
  0x38   :  { %4852 = vmatprep.subr.bf16.mxu1 %v6347_v0  ;;  %4864 = vmatprep.subr.bf16.mxu0 %v6347_v0  ;;  %v6435_v2 = vld [vmem:[#allocation5] sm:$0xff]   ;;  %v6442_v4 = vld [vmem:[#allocation5 + $0x8] sm:$0xff]   ;;  %v6446_v5 = vld [vmem:[#allocation5 + $0x30] sm:$0xff]   ;;  %vm114_vm1 = vcmask 523264  }
  0x39   :  { %4860 = vmatprep.mubr.msk.bf16.mxu1 %vm6348_vm0, %v6347_v0  ;;  %4872 = vmatprep.mubr.msk.bf16.mxu0 %vm6348_vm0, %v6347_v0  ;;  %v6450_v6 = vld [vmem:[#allocation5 + $0x10] sm:$0xff]   ;;  %v6454_v7 = vld [vmem:[#allocation5 + $0x38] sm:$0xff]   ;;  %v6161_v9 = vld [vmem:[#allocation2 + $0x8] sm:$0xff]  }
  0x3a   :  { %4853 = vmatpush3.bf16.msra.mxu1 %v6433_v1  ;;  %4865 = vmatpush3.bf16.msra.mxu0 %v6435_v2  ;;  %v6458_v8 = vld [vmem:[#allocation5 + $0x18] sm:$0xff]   ;;  %v6464_v11 = vld [vmem:[#allocation5 + $0x40] sm:$0xff]   ;;  %v6472_v12 = vld [vmem:[#allocation5 + $0x48] sm:$0xff]  }
  0x3b   :  { %4854 = vmatprep.subr.bf16.mxu1 %v6347_v0  ;;  %4866 = vmatprep.subr.bf16.mxu0 %v6347_v0  ;;  %v6162_v10 = vld [vmem:[#allocation2] sm:$0xff]   ;;  %v6482_v13 = vld [vmem:[#allocation5 + $0x50] sm:$0xff]   ;;  %v6490_v15 = vld [vmem:[#allocation2 + $0x10] sm:$0xff]  }
  0x3c   :  { %v6486_v14 = vld [vmem:[#allocation5 + $0x58] sm:$0xff]   ;;  %v6493_v16 = vld [vmem:[#allocation5 + $0x60] sm:$0xff]   ;;  %v6501_v17 = vld [vmem:[#allocation5 + $0x68] sm:$0xff]  }
  0x3d   :  { %v6511_v18 = vld [vmem:[#allocation5 + $0x70] sm:$0xff]   ;;  %v6522_v19 = vld [vmem:[#allocation5 + $0x78] sm:$0xff]   ;;  %v6530_v21 = vld [vmem:[#allocation5 + $0x80] sm:$0xff]  }
  0x3e   :  { %4855 = vmatpush3.bf16.msra.mxu1 %v6438_v3  ;;  %4867 = vmatpush3.bf16.msra.mxu0 %v6442_v4  ;;  %v6526_v20 = vld [vmem:[#allocation2 + $0x18] sm:$0xff]   ;;  %v6539_v22 = vld [vmem:[#allocation5 + $0x88] sm:$0xff]   ;;  %v6555_v24 = vld [vmem:[#allocation5 + $0x98] sm:$0xff]  }
  0x3f   :  { %4856 = vmatprep.subr.bf16.mxu1 %v6347_v0  ;;  %4868 = vmatprep.subr.bf16.mxu0 %v6347_v0  ;;  %v6549_v23 = vld [vmem:[#allocation5 + $0x90] sm:$0xff]   ;;  %v6559_v25 = vld [vmem:[#allocation2 + $0x20] sm:$0xff]   ;;  %v6608_v26 = vld [vmem:[#allocation2 + $0x28] sm:$0xff]  }
  0x40   :  { %v6683_v27 = vld [vmem:[#allocation2 + $0x30] sm:$0xff]   ;;  %v6732_v28 = vld [vmem:[#allocation2 + $0x38] sm:$0xff]   ;;  %v6807_v29 = vld [vmem:[#allocation2 + $0x40] sm:$0xff]  }
  0x41   :  { %v6860_v34 = vld [vmem:[#allocation2 + $0x48] sm:$0xff]   ;;  %v6941_v41 = vld [vmem:[#allocation2 + $0x50] sm:$0xff]   ;;  %v6975_v50 = vld [vmem:[#allocation5 + $0x30] sm:$0xff]  }
  0x42   :  { %4857 = vmatpush3.bf16.msra.mxu1 %v6446_v5  ;;  %4869 = vmatpush3.bf16.msra.mxu0 %v6450_v6  ;;  %v6951_v42 = vld [vmem:[#allocation5 + $0x20] sm:$0xff]   ;;  %v6969_v48 = vld [vmem:[#allocation5 + $0x28] sm:$0xff]   ;;  %v7005_v53 = vld [vmem:[#allocation5 + $0x10] sm:$0xff]  }
  0x43   :  { %4858 = vmatprep.subr.bf16.mxu1 %v6347_v0  ;;  %4870 = vmatprep.subr.bf16.mxu0 %v6347_v0  ;;  %v6989_v51 = vld [vmem:[#allocation5] sm:$0xff]   ;;  %v6999_v52 = vld [vmem:[#allocation5 + $0x8] sm:$0xff]   ;;  %v7010_v54 = vld [vmem:[#allocation2 + $0x58] sm:$0xff]  }
  0x44   :  { %v7013_v55 = vld [vmem:[#allocation5 + $0x18] sm:$0xff]   ;;  %v7082_v63 = vld [vmem:[#allocation5 + $0x40] sm:$0xff]  }
  0x45   :  { %v7038_v56 = vld [vmem:[#allocation5 + $0x38] sm:$0xff]  }
  0x46   :  { %4859 = vmatpush3.bf16.msra.mxu1 %v6454_v7  ;;  %4871 = vmatpush3.bf16.msra.mxu0 %v6458_v8 }
  0x47   :  { %4912 = vmatprep.subr.bf16.mxu1 %v6347_v0  ;;  %4876 = vmatprep.subr.bf16.mxu0 %v6347_v0 }
  0x49   :  { %4861 = vmatmul.mubr.msk.bf16.vlgmr.msra.gmra.mrb[0].mxu1 %vm114_vm1, %v6161_v9  ;;  %4873 = vmatmul.mubr.msk.bf16.vlgmr.msra.gmra.mrb[0].mxu0 %vm114_vm1, %v6162_v10  ;;  %v7132_v10 = vld [vmem:[#allocation5 + $0x68] sm:$0xff]  }
  0x4a   :  { %4913 = vmatpush3.bf16.msra.mxu1 %v6433_v1  ;;  %4877 = vmatpush3.bf16.msra.mxu0 %v6464_v11 }
  0x4b   :  { %4914 = vmatprep.subr.bf16.mxu1 %v6347_v0  ;;  %4878 = vmatprep.subr.bf16.mxu0 %v6347_v0 }
  0x4c   :  { %4884 = vmatprep.mubr.msk.bf16.mxu0 %vm6348_vm0, %v6347_v0  ;;  %4920 = vmatprep.mubr.msk.bf16.mxu1 %vm6348_vm0, %v6347_v0 }
  0x4e   :  { %4915 = vmatpush3.bf16.msra.mxu1 %v6438_v3  ;;  %4879 = vmatpush3.bf16.msra.mxu0 %v6472_v12 }
  0x4f   :  { %4916 = vmatprep.subr.bf16.mxu1 %v6347_v0  ;;  %4880 = vmatprep.subr.bf16.mxu0 %v6347_v0 }
  0x52   :  { %4917 = vmatpush3.bf16.msra.mxu1 %v6446_v5  ;;  %4881 = vmatpush3.bf16.msra.mxu0 %v6482_v13 }
  0x53   :  { %4918 = vmatprep.subr.bf16.mxu1 %v6347_v0  ;;  %4882 = vmatprep.subr.bf16.mxu0 %v6347_v0 }
  0x56   :  { %4919 = vmatpush3.bf16.msra.mxu1 %v6454_v7  ;;  %4883 = vmatpush3.bf16.msra.mxu0 %v6486_v14 }
  0x57   :  { %4924 = vmatprep.subr.bf16.mxu1 %v6347_v0  ;;  %4888 = vmatprep.subr.bf16.mxu0 %v6347_v0 }
  0x59   :  { %4921 = vmatmul.mubr.msk.bf16.vlgmr.msra.gmra.mrb[4].mxu1 %vm114_vm1, %v6490_v15  ;;  %4885 = vmatmul.mubr.msk.bf16.vlgmr.msra.gmra.mrb[0].mxu0 %vm114_vm1, %v6490_v15 }
  0x5a   :  { %4925 = vmatpush3.bf16.msra.mxu1 %v6435_v2  ;;  %4889 = vmatpush3.bf16.msra.mxu0 %v6493_v16 }
  0x5b   :  { %4926 = vmatprep.subr.bf16.mxu1 %v6347_v0  ;;  %4890 = vmatprep.subr.bf16.mxu0 %v6347_v0 }
  0x5c   :  { %4896 = vmatprep.mubr.msk.bf16.mxu0 %vm6348_vm0, %v6347_v0  ;;  %4932 = vmatprep.mubr.msk.bf16.mxu1 %vm6348_vm0, %v6347_v0 }
  0x5e   :  { %4927 = vmatpush3.bf16.msra.mxu1 %v6442_v4  ;;  %4891 = vmatpush3.bf16.msra.mxu0 %v6501_v17 }
  0x5f   :  { %4928 = vmatprep.subr.bf16.mxu1 %v6347_v0  ;;  %4892 = vmatprep.subr.bf16.mxu0 %v6347_v0 }
  0x62   :  { %4929 = vmatpush3.bf16.msra.mxu1 %v6450_v6  ;;  %4893 = vmatpush3.bf16.msra.mxu0 %v6511_v18 }
  0x63   :  { %4930 = vmatprep.subr.bf16.mxu1 %v6347_v0  ;;  %4894 = vmatprep.subr.bf16.mxu0 %v6347_v0 }
  0x66   :  { %4931 = vmatpush3.bf16.msra.mxu1 %v6458_v8  ;;  %4895 = vmatpush3.bf16.msra.mxu0 %v6522_v19 }
  0x67   :  { %4936 = vmatprep.subr.bf16.mxu1 %v6347_v0  ;;  %4900 = vmatprep.subr.bf16.mxu0 %v6347_v0 }
  0x69   :  { %4933 = vmatmul.mubr.msk.bf16.vlgmr.msra.gmra.mrb[4].mxu1 %vm114_vm1, %v6161_v9  ;;  %4897 = vmatmul.mubr.msk.bf16.vlgmr.msra.gmra.mrb[0].mxu0 %vm114_vm1, %v6526_v20 }
  0x6a   :  { %4937 = vmatpush3.bf16.msra.mxu1 %v6464_v11  ;;  %4901 = vmatpush3.bf16.msra.mxu0 %v6530_v21 }
  0x6b   :  { %4938 = vmatprep.subr.bf16.mxu1 %v6347_v0  ;;  %4902 = vmatprep.subr.bf16.mxu0 %v6347_v0 }
  0x6c   :  { %4908 = vmatprep.mubr.msk.bf16.mxu0 %vm6348_vm0, %v6347_v0  ;;  %4944 = vmatprep.mubr.msk.bf16.mxu1 %vm6348_vm0, %v6347_v0 }
  0x6e   :  { %4939 = vmatpush3.bf16.msra.mxu1 %v6472_v12  ;;  %4903 = vmatpush3.bf16.msra.mxu0 %v6539_v22 }
  0x6f   :  { %4940 = vmatprep.subr.bf16.mxu1 %v6347_v0  ;;  %4904 = vmatprep.subr.bf16.mxu0 %v6347_v0 }
  0x72   :  { %4941 = vmatpush3.bf16.msra.mxu1 %v6482_v13  ;;  %4905 = vmatpush3.bf16.msra.mxu0 %v6549_v23 }
  0x73   :  { %4942 = vmatprep.subr.bf16.mxu1 %v6347_v0  ;;  %4906 = vmatprep.subr.bf16.mxu0 %v6347_v0 }
  0x76   :  { %4943 = vmatpush3.bf16.msra.mxu1 %v6486_v14  ;;  %4907 = vmatpush3.bf16.msra.mxu0 %v6555_v24 }
  0x77   :  { %4948 = vmatprep.subr.bf16.mxu1 %v6347_v0  ;;  %4972 = vmatprep.subr.bf16.mxu0 %v6347_v0 }
  0x79   :  { %4945 = vmatmul.mubr.msk.bf16.vlgmr.msra.gmra.mrb[4].mxu1 %vm114_vm1, %v6526_v20  ;;  %4909 = vmatmul.mubr.msk.bf16.vlgmr.msra.gmra.mrb[0].mxu0 %vm114_vm1, %v6559_v25 }
  0x7a   :  { %4949 = vmatpush3.bf16.msra.mxu1 %v6493_v16  ;;  %4973 = vmatpush3.bf16.msra.mxu0 %v6433_v1 }
  0x7b   :  { %4950 = vmatprep.subr.bf16.mxu1 %v6347_v0  ;;  %4974 = vmatprep.subr.bf16.mxu0 %v6347_v0 }
  0x7c   :  { %4956 = vmatprep.mubr.msk.bf16.mxu1 %vm6348_vm0, %v6347_v0  ;;  %4980 = vmatprep.mubr.msk.bf16.mxu0 %vm6348_vm0, %v6347_v0 }
  0x7e   :  { %4951 = vmatpush3.bf16.msra.mxu1 %v6501_v17  ;;  %4975 = vmatpush3.bf16.msra.mxu0 %v6438_v3 }
  0x7f   :  { %4952 = vmatprep.subr.bf16.mxu1 %v6347_v0  ;;  %4976 = vmatprep.subr.bf16.mxu0 %v6347_v0 }
  0x82   :  { %4953 = vmatpush3.bf16.msra.mxu1 %v6511_v18  ;;  %4977 = vmatpush3.bf16.msra.mxu0 %v6446_v5 }
  0x83   :  { %4954 = vmatprep.subr.bf16.mxu1 %v6347_v0  ;;  %4978 = vmatprep.subr.bf16.mxu0 %v6347_v0 }
  0x86   :  { %4955 = vmatpush3.bf16.msra.mxu1 %v6522_v19  ;;  %4979 = vmatpush3.bf16.msra.mxu0 %v6454_v7 }
  0x87   :  { %4960 = vmatprep.subr.bf16.mxu1 %v6347_v0  ;;  %4984 = vmatprep.subr.bf16.mxu0 %v6347_v0 }
  0x89   :  { %4957 = vmatmul.mubr.msk.bf16.vlgmr.msra.gmra.mrb[4].mxu1 %vm114_vm1, %v6559_v25  ;;  %4981 = vmatmul.mubr.msk.bf16.vlgmr.msra.gmra.mrb[4].mxu0 %vm114_vm1, %v6526_v20 }
  0x8a   :  { %4961 = vmatpush3.bf16.msra.mxu1 %v6530_v21  ;;  %4985 = vmatpush3.bf16.msra.mxu0 %v6435_v2 }
  0x8b   :  { %4962 = vmatprep.subr.bf16.mxu1 %v6347_v0  ;;  %4986 = vmatprep.subr.bf16.mxu0 %v6347_v0 }
  0x8c   :  { %4968 = vmatprep.mubr.msk.bf16.mxu1 %vm6348_vm0, %v6347_v0  ;;  %4992 = vmatprep.mubr.msk.bf16.mxu0 %vm6348_vm0, %v6347_v0 }
  0x8e   :  { %4963 = vmatpush3.bf16.msra.mxu1 %v6539_v22  ;;  %4987 = vmatpush3.bf16.msra.mxu0 %v6442_v4 }
  0x8f   :  { %4964 = vmatprep.subr.bf16.mxu1 %v6347_v0  ;;  %4988 = vmatprep.subr.bf16.mxu0 %v6347_v0 }
  0x92   :  { %4965 = vmatpush3.bf16.msra.mxu1 %v6549_v23  ;;  %4989 = vmatpush3.bf16.msra.mxu0 %v6450_v6 }
  0x93   :  { %4966 = vmatprep.subr.bf16.mxu1 %v6347_v0  ;;  %4990 = vmatprep.subr.bf16.mxu0 %v6347_v0 }
  0x96   :  { %4967 = vmatpush3.bf16.msra.mxu1 %v6555_v24  ;;  %4991 = vmatpush3.bf16.msra.mxu0 %v6458_v8 }
  0x97   :  { %5032 = vmatprep.subr.bf16.mxu1 %v6347_v0  ;;  %4996 = vmatprep.subr.bf16.mxu0 %v6347_v0 }
  0x99   :  { %4969 = vmatmul.mubr.msk.bf16.vlgmr.msra.gmra.mrb[4].mxu1 %vm114_vm1, %v6608_v26  ;;  %4993 = vmatmul.mubr.msk.bf16.vlgmr.msra.gmra.mrb[4].mxu0 %vm114_vm1, %v6490_v15 }
  0x9a   :  { %5033 = vmatpush3.bf16.msra.mxu1 %v6433_v1  ;;  %4997 = vmatpush3.bf16.msra.mxu0 %v6464_v11 }
  0x9b   :  { %5034 = vmatprep.subr.bf16.mxu1 %v6347_v0  ;;  %4998 = vmatprep.subr.bf16.mxu0 %v6347_v0 }
  0x9c   :  { %5004 = vmatprep.mubr.msk.bf16.mxu0 %vm6348_vm0, %v6347_v0  ;;  %5040 = vmatprep.mubr.msk.bf16.mxu1 %vm6348_vm0, %v6347_v0 }
  0x9e   :  { %5035 = vmatpush3.bf16.msra.mxu1 %v6438_v3  ;;  %4999 = vmatpush3.bf16.msra.mxu0 %v6472_v12 }
  0x9f   :  { %5036 = vmatprep.subr.bf16.mxu1 %v6347_v0  ;;  %5000 = vmatprep.subr.bf16.mxu0 %v6347_v0 }
  0xa2   :  { %5037 = vmatpush3.bf16.msra.mxu1 %v6446_v5  ;;  %5001 = vmatpush3.bf16.msra.mxu0 %v6482_v13 }
  0xa3   :  { %5038 = vmatprep.subr.bf16.mxu1 %v6347_v0  ;;  %5002 = vmatprep.subr.bf16.mxu0 %v6347_v0 }
  0xa6   :  { %5039 = vmatpush3.bf16.msra.mxu1 %v6454_v7  ;;  %5003 = vmatpush3.bf16.msra.mxu0 %v6486_v14 }
  0xa7   :  { %5044 = vmatprep.subr.bf16.mxu1 %v6347_v0  ;;  %5008 = vmatprep.subr.bf16.mxu0 %v6347_v0 }
  0xa9   :  { %5041 = vmatmul.mubr.msk.bf16.vlgmr.msra.gmra.mrb[8].mxu1 %vm114_vm1, %v6559_v25  ;;  %5005 = vmatmul.mubr.msk.bf16.vlgmr.msra.gmra.mrb[4].mxu0 %vm114_vm1, %v6559_v25 }
  0xaa   :  { %5045 = vmatpush3.bf16.msra.mxu1 %v6435_v2  ;;  %5009 = vmatpush3.bf16.msra.mxu0 %v6493_v16 }
  0xab   :  { %5046 = vmatprep.subr.bf16.mxu1 %v6347_v0  ;;  %5010 = vmatprep.subr.bf16.mxu0 %v6347_v0 }
  0xac   :  { %5016 = vmatprep.mubr.msk.bf16.mxu0 %vm6348_vm0, %v6347_v0  ;;  %5052 = vmatprep.mubr.msk.bf16.mxu1 %vm6348_vm0, %v6347_v0 }
  0xae   :  { %5047 = vmatpush3.bf16.msra.mxu1 %v6442_v4  ;;  %5011 = vmatpush3.bf16.msra.mxu0 %v6501_v17 }
  0xaf   :  { %5048 = vmatprep.subr.bf16.mxu1 %v6347_v0  ;;  %5012 = vmatprep.subr.bf16.mxu0 %v6347_v0 }
  0xb2   :  { %5049 = vmatpush3.bf16.msra.mxu1 %v6450_v6  ;;  %5013 = vmatpush3.bf16.msra.mxu0 %v6511_v18 }
  0xb3   :  { %5050 = vmatprep.subr.bf16.mxu1 %v6347_v0  ;;  %5014 = vmatprep.subr.bf16.mxu0 %v6347_v0 }
  0xb6   :  { %5051 = vmatpush3.bf16.msra.mxu1 %v6458_v8  ;;  %5015 = vmatpush3.bf16.msra.mxu0 %v6522_v19 }
  0xb7   :  { %5056 = vmatprep.subr.bf16.mxu1 %v6347_v0  ;;  %5020 = vmatprep.subr.bf16.mxu0 %v6347_v0 }
  0xb9   :  { %5053 = vmatmul.mubr.msk.bf16.vlgmr.msra.gmra.mrb[8].mxu1 %vm114_vm1, %v6526_v20  ;;  %5017 = vmatmul.mubr.msk.bf16.vlgmr.msra.gmra.mrb[4].mxu0 %vm114_vm1, %v6608_v26  ;;  %v7225_v20 = vld [vmem:[#allocation5 + $0x70] sm:$0xff]  }
  0xba   :  { %5057 = vmatpush3.bf16.msra.mxu1 %v6464_v11  ;;  %5021 = vmatpush3.bf16.msra.mxu0 %v6530_v21 }
  0xbb   :  { %5058 = vmatprep.subr.bf16.mxu1 %v6347_v0  ;;  %5022 = vmatprep.subr.bf16.mxu0 %v6347_v0 }
  0xbc   :  { %5028 = vmatprep.mubr.msk.bf16.mxu0 %vm6348_vm0, %v6347_v0  ;;  %5064 = vmatprep.mubr.msk.bf16.mxu1 %vm6348_vm0, %v6347_v0 }
  0xbe   :  { %5059 = vmatpush3.bf16.msra.mxu1 %v6472_v12  ;;  %5023 = vmatpush3.bf16.msra.mxu0 %v6539_v22 }
  0xbf   :  { %5060 = vmatprep.subr.bf16.mxu1 %v6347_v0  ;;  %5024 = vmatprep.subr.bf16.mxu0 %v6347_v0 }
  0xc2   :  { %5061 = vmatpush3.bf16.msra.mxu1 %v6482_v13  ;;  %5025 = vmatpush3.bf16.msra.mxu0 %v6549_v23 }
  0xc3   :  { %5062 = vmatprep.subr.bf16.mxu1 %v6347_v0  ;;  %5026 = vmatprep.subr.bf16.mxu0 %v6347_v0 }
  0xc6   :  { %5063 = vmatpush3.bf16.msra.mxu1 %v6486_v14  ;;  %5027 = vmatpush3.bf16.msra.mxu0 %v6555_v24 }
  0xc7   :  { %5068 = vmatprep.subr.bf16.mxu1 %v6347_v0  ;;  %5092 = vmatprep.subr.bf16.mxu0 %v6347_v0 }
  0xc9   :  { %5065 = vmatmul.mubr.msk.bf16.vlgmr.msra.gmra.mrb[8].mxu1 %vm114_vm1, %v6608_v26  ;;  %5029 = vmatmul.mubr.msk.bf16.vlgmr.msra.gmra.mrb[4].mxu0 %vm114_vm1, %v6683_v27 }
  0xca   :  { %5069 = vmatpush3.bf16.msra.mxu1 %v6493_v16  ;;  %5093 = vmatpush3.bf16.msra.mxu0 %v6433_v1 }
  0xcb   :  { %5070 = vmatprep.subr.bf16.mxu1 %v6347_v0  ;;  %5094 = vmatprep.subr.bf16.mxu0 %v6347_v0 }
  0xcc   :  { %5076 = vmatprep.mubr.msk.bf16.mxu1 %vm6348_vm0, %v6347_v0  ;;  %5100 = vmatprep.mubr.msk.bf16.mxu0 %vm6348_vm0, %v6347_v0 }
  0xce   :  { %5071 = vmatpush3.bf16.msra.mxu1 %v6501_v17  ;;  %5095 = vmatpush3.bf16.msra.mxu0 %v6438_v3 }
  0xcf   :  { %5072 = vmatprep.subr.bf16.mxu1 %v6347_v0  ;;  %5096 = vmatprep.subr.bf16.mxu0 %v6347_v0 }
  0xd2   :  { %5073 = vmatpush3.bf16.msra.mxu1 %v6511_v18  ;;  %5097 = vmatpush3.bf16.msra.mxu0 %v6446_v5 }
  0xd3   :  { %5074 = vmatprep.subr.bf16.mxu1 %v6347_v0  ;;  %5098 = vmatprep.subr.bf16.mxu0 %v6347_v0 }
  0xd6   :  { %5075 = vmatpush3.bf16.msra.mxu1 %v6522_v19  ;;  %5099 = vmatpush3.bf16.msra.mxu0 %v6454_v7 }
  0xd7   :  { %5080 = vmatprep.subr.bf16.mxu1 %v6347_v0  ;;  %5104 = vmatprep.subr.bf16.mxu0 %v6347_v0 }
  0xd9   :  { %5077 = vmatmul.mubr.msk.bf16.vlgmr.msra.gmra.mrb[8].mxu1 %vm114_vm1, %v6683_v27  ;;  %5101 = vmatmul.mubr.msk.bf16.vlgmr.msra.gmra.mrb[8].mxu0 %vm114_vm1, %v6608_v26 }
  0xda   :  { %5081 = vmatpush3.bf16.msra.mxu1 %v6530_v21  ;;  %5105 = vmatpush3.bf16.msra.mxu0 %v6435_v2 }
  0xdb   :  { %5082 = vmatprep.subr.bf16.mxu1 %v6347_v0  ;;  %5106 = vmatprep.subr.bf16.mxu0 %v6347_v0 }
  0xdc   :  { %5088 = vmatprep.mubr.msk.bf16.mxu1 %vm6348_vm0, %v6347_v0  ;;  %5112 = vmatprep.mubr.msk.bf16.mxu0 %vm6348_vm0, %v6347_v0 }
  0xde   :  { %5083 = vmatpush3.bf16.msra.mxu1 %v6539_v22  ;;  %5107 = vmatpush3.bf16.msra.mxu0 %v6442_v4 }
  0xdf   :  { %5084 = vmatprep.subr.bf16.mxu1 %v6347_v0  ;;  %5108 = vmatprep.subr.bf16.mxu0 %v6347_v0 }
  0xe2   :  { %5085 = vmatpush3.bf16.msra.mxu1 %v6549_v23  ;;  %5109 = vmatpush3.bf16.msra.mxu0 %v6450_v6 }
  0xe3   :  { %5086 = vmatprep.subr.bf16.mxu1 %v6347_v0  ;;  %5110 = vmatprep.subr.bf16.mxu0 %v6347_v0 }
  0xe6   :  { %5087 = vmatpush3.bf16.msra.mxu1 %v6555_v24  ;;  %5111 = vmatpush3.bf16.msra.mxu0 %v6458_v8 }
  0xe7   :  { %5152 = vmatprep.subr.bf16.mxu1 %v6347_v0  ;;  %5116 = vmatprep.subr.bf16.mxu0 %v6347_v0 }
  0xe9   :  { %5089 = vmatmul.mubr.msk.bf16.vlgmr.msra.gmra.mrb[8].mxu1 %vm114_vm1, %v6732_v28  ;;  %5113 = vmatmul.mubr.msk.bf16.vlgmr.msra.gmra.mrb[8].mxu0 %vm114_vm1, %v6559_v25  ;;  %v7263_v25 = vld [vmem:[#allocation2 + $0x70] sm:$0xff]  }
  0xea   :  { %5153 = vmatpush3.bf16.msra.mxu1 %v6433_v1  ;;  %5117 = vmatpush3.bf16.msra.mxu0 %v6464_v11 }
  0xeb   :  { %5154 = vmatprep.subr.bf16.mxu1 %v6347_v0  ;;  %5118 = vmatprep.subr.bf16.mxu0 %v6347_v0 }
  0xec   :  { %5124 = vmatprep.mubr.msk.bf16.mxu0 %vm6348_vm0, %v6347_v0  ;;  %5160 = vmatprep.mubr.msk.bf16.mxu1 %vm6348_vm0, %v6347_v0 }
  0xee   :  { %5155 = vmatpush3.bf16.msra.mxu1 %v6438_v3  ;;  %5119 = vmatpush3.bf16.msra.mxu0 %v6472_v12 }
  0xef   :  { %5156 = vmatprep.subr.bf16.mxu1 %v6347_v0  ;;  %5120 = vmatprep.subr.bf16.mxu0 %v6347_v0 }
  0xf2   :  { %5157 = vmatpush3.bf16.msra.mxu1 %v6446_v5  ;;  %5121 = vmatpush3.bf16.msra.mxu0 %v6482_v13 }
  0xf3   :  { %5158 = vmatprep.subr.bf16.mxu1 %v6347_v0  ;;  %5122 = vmatprep.subr.bf16.mxu0 %v6347_v0 }
  0xf6   :  { %5159 = vmatpush3.bf16.msra.mxu1 %v6454_v7  ;;  %5123 = vmatpush3.bf16.msra.mxu0 %v6486_v14 }
  0xf7   :  { %5164 = vmatprep.subr.bf16.mxu1 %v6347_v0  ;;  %5128 = vmatprep.subr.bf16.mxu0 %v6347_v0 }
  0xf9   :  { %5161 = vmatmul.mubr.msk.bf16.vlgmr.msra.gmra.mrb[12].mxu1 %vm114_vm1, %v6683_v27  ;;  %5125 = vmatmul.mubr.msk.bf16.vlgmr.msra.gmra.mrb[8].mxu0 %vm114_vm1, %v6683_v27 }
  0xfa   :  { %5165 = vmatpush3.bf16.msra.mxu1 %v6435_v2  ;;  %5129 = vmatpush3.bf16.msra.mxu0 %v6493_v16 }
  0xfb   :  { %5166 = vmatprep.subr.bf16.mxu1 %v6347_v0  ;;  %5130 = vmatprep.subr.bf16.mxu0 %v6347_v0 }
  0xfc   :  { %5136 = vmatprep.mubr.msk.bf16.mxu0 %vm6348_vm0, %v6347_v0  ;;  %5172 = vmatprep.mubr.msk.bf16.mxu1 %vm6348_vm0, %v6347_v0 }
  0xfe   :  { %5167 = vmatpush3.bf16.msra.mxu1 %v6442_v4  ;;  %5131 = vmatpush3.bf16.msra.mxu0 %v6501_v17 }
  0xff   :  { %5168 = vmatprep.subr.bf16.mxu1 %v6347_v0  ;;  %5132 = vmatprep.subr.bf16.mxu0 %v6347_v0 }
 0x102   :  { %5169 = vmatpush3.bf16.msra.mxu1 %v6450_v6  ;;  %5133 = vmatpush3.bf16.msra.mxu0 %v6511_v18 }
 0x103   :  { %5170 = vmatprep.subr.bf16.mxu1 %v6347_v0  ;;  %5134 = vmatprep.subr.bf16.mxu0 %v6347_v0 }
 0x106   :  { %5171 = vmatpush3.bf16.msra.mxu1 %v6458_v8  ;;  %5135 = vmatpush3.bf16.msra.mxu0 %v6522_v19 }
 0x107   :  { %5176 = vmatprep.subr.bf16.mxu1 %v6347_v0  ;;  %5140 = vmatprep.subr.bf16.mxu0 %v6347_v0 }
 0x109   :  { %5173 = vmatmul.mubr.msk.bf16.vlgmr.msra.gmra.mrb[12].mxu1 %vm114_vm1, %v6608_v26  ;;  %5137 = vmatmul.mubr.msk.bf16.vlgmr.msra.gmra.mrb[8].mxu0 %vm114_vm1, %v6732_v28  ;;  %v7265_v26 = vld [vmem:[#allocation5 + $0x98] sm:$0xff]  }
 0x10a   :  { %5177 = vmatpush3.bf16.msra.mxu1 %v6464_v11  ;;  %5141 = vmatpush3.bf16.msra.mxu0 %v6530_v21 }
 0x10b   :  { %5178 = vmatprep.subr.bf16.mxu1 %v6347_v0  ;;  %5142 = vmatprep.subr.bf16.mxu0 %v6347_v0 }
 0x10c   :  { %5148 = vmatprep.mubr.msk.bf16.mxu0 %vm6348_vm0, %v6347_v0  ;;  %5184 = vmatprep.mubr.msk.bf16.mxu1 %vm6348_vm0, %v6347_v0 }
 0x10e   :  { %5179 = vmatpush3.bf16.msra.mxu1 %v6472_v12  ;;  %5143 = vmatpush3.bf16.msra.mxu0 %v6539_v22 }
 0x10f   :  { %5180 = vmatprep.subr.bf16.mxu1 %v6347_v0  ;;  %5144 = vmatprep.subr.bf16.mxu0 %v6347_v0 }
 0x112   :  { %5181 = vmatpush3.bf16.msra.mxu1 %v6482_v13  ;;  %5145 = vmatpush3.bf16.msra.mxu0 %v6549_v23 }
 0x113   :  { %5182 = vmatprep.subr.bf16.mxu1 %v6347_v0  ;;  %5146 = vmatprep.subr.bf16.mxu0 %v6347_v0 }
 0x116   :  { %5183 = vmatpush3.bf16.msra.mxu1 %v6486_v14  ;;  %5147 = vmatpush3.bf16.msra.mxu0 %v6555_v24 }
 0x117   :  { %5188 = vmatprep.subr.bf16.mxu1 %v6347_v0  ;;  %5212 = vmatprep.subr.bf16.mxu0 %v6347_v0 }
 0x119   :  { %5185 = vmatmul.mubr.msk.bf16.vlgmr.msra.gmra.mrb[12].mxu1 %vm114_vm1, %v6732_v28  ;;  %5149 = vmatmul.mubr.msk.bf16.vlgmr.msra.gmra.mrb[8].mxu0 %vm114_vm1, %v6807_v29 }
 0x11a   :  { %5189 = vmatpush3.bf16.msra.mxu1 %v6493_v16  ;;  %5213 = vmatpush3.bf16.msra.mxu0 %v6433_v1 }
 0x11b   :  { %5190 = vmatprep.subr.bf16.mxu1 %v6347_v0  ;;  %5214 = vmatprep.subr.bf16.mxu0 %v6347_v0 }
 0x11c   :  { %5196 = vmatprep.mubr.msk.bf16.mxu1 %vm6348_vm0, %v6347_v0  ;;  %v6822_v30 = vpop.f32.mrb[0].mxu1  ;;  %5220 = vmatprep.mubr.msk.bf16.mxu0 %vm6348_vm0, %v6347_v0 }
 0x11d   :  { %v4862_v31 = vpop.f32.mrb[1].mxu1 }
 0x11e   :  { %5191 = vmatpush3.bf16.msra.mxu1 %v6501_v17  ;;  %v6827_v32 = vpop.f32.mrb[2].mxu1  ;;  %5215 = vmatpush3.bf16.msra.mxu0 %v6438_v3 }
 0x11f   :  { %5192 = vmatprep.subr.bf16.mxu1 %v6347_v0  ;;  %v4863_v33 = vpop.f32.mrb[3].mxu1  ;;  %5216 = vmatprep.subr.bf16.mxu0 %v6347_v0 }
 0x120   :  { %v7322_v33 = vld [vmem:[#allocation2 + $0x78] sm:$0xff]  }
 0x122   :  { %5193 = vmatpush3.bf16.msra.mxu1 %v6511_v18  ;;  %5217 = vmatpush3.bf16.msra.mxu0 %v6446_v5 }
 0x123   :  { %5194 = vmatprep.subr.bf16.mxu1 %v6347_v0  ;;  %5218 = vmatprep.subr.bf16.mxu0 %v6347_v0 }
 0x126   :  { %5195 = vmatpush3.bf16.msra.mxu1 %v6522_v19  ;;  %5219 = vmatpush3.bf16.msra.mxu0 %v6454_v7 }
 0x127   :  { %5200 = vmatprep.subr.bf16.mxu1 %v6347_v0  ;;  %5224 = vmatprep.subr.bf16.mxu0 %v6347_v0 }
 0x129   :  { %5197 = vmatmul.mubr.msk.bf16.vlgmr.msra.gmra.mrb[12].mxu1 %vm114_vm1, %v6807_v29  ;;  %5221 = vmatmul.mubr.msk.bf16.vlgmr.msra.gmra.mrb[12].mxu0 %vm114_vm1, %v6732_v28 }
 0x12a   :  { %5201 = vmatpush3.bf16.msra.mxu1 %v6530_v21  ;;  %5225 = vmatpush3.bf16.msra.mxu0 %v6435_v2 }
 0x12b   :  { %5202 = vmatprep.subr.bf16.mxu1 %v6347_v0  ;;  %5226 = vmatprep.subr.bf16.mxu0 %v6347_v0 }
 0x12c   :  { %5208 = vmatprep.mubr.msk.bf16.mxu1 %vm6348_vm0, %v6347_v0  ;;  %5232 = vmatprep.mubr.msk.bf16.mxu0 %vm6348_vm0, %v6347_v0 }
 0x12e   :  { %5203 = vmatpush3.bf16.msra.mxu1 %v6539_v22  ;;  %5227 = vmatpush3.bf16.msra.mxu0 %v6442_v4 }
 0x12f   :  { %5204 = vmatprep.subr.bf16.mxu1 %v6347_v0  ;;  %5228 = vmatprep.subr.bf16.mxu0 %v6347_v0 }
 0x132   :  { %5205 = vmatpush3.bf16.msra.mxu1 %v6549_v23  ;;  %5229 = vmatpush3.bf16.msra.mxu0 %v6450_v6 }
 0x133   :  { %5206 = vmatprep.subr.bf16.mxu1 %v6347_v0  ;;  %5230 = vmatprep.subr.bf16.mxu0 %v6347_v0 }
 0x136   :  { %5207 = vmatpush3.bf16.msra.mxu1 %v6555_v24  ;;  %5231 = vmatpush3.bf16.msra.mxu0 %v6458_v8 }
 0x137   :  { %5272 = vmatprep.subr.bf16.mxu1 %v6347_v0  ;;  %5236 = vmatprep.subr.bf16.mxu0 %v6347_v0 }
 0x139   :  { %5209 = vmatmul.mubr.msk.bf16.vlgmr.msra.gmra.mrb[12].mxu1 %vm114_vm1, %v6860_v34  ;;  %5233 = vmatmul.mubr.msk.bf16.vlgmr.msra.gmra.mrb[12].mxu0 %vm114_vm1, %v6683_v27 }
 0x13a   :  { %5273 = vmatpush3.bf16.msra.mxu1 %v6433_v1  ;;  %5237 = vmatpush3.bf16.msra.mxu0 %v6464_v11  ;;  %v7092_v1 = vld [vmem:[#allocation5 + $0x48] sm:$0xff]  }
 0x13b   :  { %5274 = vmatprep.subr.bf16.mxu1 %v6347_v0  ;;  %5238 = vmatprep.subr.bf16.mxu0 %v6347_v0 }
 0x13c   :  { %5244 = vmatprep.mubr.msk.bf16.mxu0 %vm6348_vm0, %v6347_v0  ;;  %5280 = vmatprep.mubr.msk.bf16.mxu1 %vm6348_vm0, %v6347_v0 }
 0x13e   :  { %5275 = vmatpush3.bf16.msra.mxu1 %v6438_v3  ;;  %5239 = vmatpush3.bf16.msra.mxu0 %v6472_v12  ;;  %v7104_v3 = vld [vmem:[#allocation5 + $0x58] sm:$0xff]  }
 0x13f   :  { %5276 = vmatprep.subr.bf16.mxu1 %v6347_v0  ;;  %5240 = vmatprep.subr.bf16.mxu0 %v6347_v0 }
 0x142   :  { %5277 = vmatpush3.bf16.msra.mxu1 %v6446_v5  ;;  %5241 = vmatpush3.bf16.msra.mxu0 %v6482_v13  ;;  %v7116_v5 = vld [vmem:[#allocation5 + $0x60] sm:$0xff]  }
 0x143   :  { %5278 = vmatprep.subr.bf16.mxu1 %v6347_v0  ;;  %5242 = vmatprep.subr.bf16.mxu0 %v6347_v0 }
 0x146   :  { %5279 = vmatpush3.bf16.msra.mxu1 %v6454_v7  ;;  %5243 = vmatpush3.bf16.msra.mxu0 %v6486_v14 }
 0x147   :  { %5284 = vmatprep.subr.bf16.mxu1 %v6347_v0  ;;  %5248 = vmatprep.subr.bf16.mxu0 %v6347_v0 }
 0x149   :  { %5281 = vmatmul.mubr.msk.bf16.vlgmr.msra.gmra.mrb[16].mxu1 %vm114_vm1, %v6807_v29  ;;  %5245 = vmatmul.mubr.msk.bf16.vlgmr.msra.gmra.mrb[12].mxu0 %vm114_vm1, %v6807_v29 }
 0x14a   :  { %5285 = vmatpush3.bf16.msra.mxu1 %v6435_v2  ;;  %5249 = vmatpush3.bf16.msra.mxu0 %v6493_v16  ;;  %v7098_v2 = vld [vmem:[#allocation5 + $0x50] sm:$0xff]  }
 0x14b   :  { %5286 = vmatprep.subr.bf16.mxu1 %v6347_v0  ;;  %5250 = vmatprep.subr.bf16.mxu0 %v6347_v0 }
 0x14c   :  { %5256 = vmatprep.mubr.msk.bf16.mxu0 %vm6348_vm0, %v6347_v0  ;;  %v484_v35 = vpop.f32.mrb[0].mxu0  ;;  %5292 = vmatprep.mubr.msk.bf16.mxu1 %vm6348_vm0, %v6347_v0 }
 0x14d   :  { %v6903_v36 = vadd.f32 %v484_v35, %v6822_v30  ;;  %v4910_v37 = vpop.f32.mrb[1].mxu0 }
 0x14e   :  { %5287 = vmatpush3.bf16.msra.mxu1 %v6442_v4  ;;  %v487_v38 = vpop.f32.mrb[2].mxu0  ;;  %5251 = vmatpush3.bf16.msra.mxu0 %v6501_v17  ;;  %v7107_v4 = vld [vmem:[#allocation2 + $0x60] sm:$0xff]  }
 0x14f   :  { %5288 = vmatprep.subr.bf16.mxu1 %v6347_v0  ;;  %v6909_v39 = vadd.f32 %v487_v38, %v6827_v32  ;;  %v4911_v40 = vpop.f32.mrb[3].mxu0  ;;  %5252 = vmatprep.subr.bf16.mxu0 %v6347_v0 }
 0x150   :  { %v7407_v40 = vld [vmem:[#allocation2 + $0x80] sm:$0xff]  }
 0x152   :  { %5289 = vmatpush3.bf16.msra.mxu1 %v6450_v6  ;;  %5253 = vmatpush3.bf16.msra.mxu0 %v6511_v18 }
 0x153   :  { %5290 = vmatprep.subr.bf16.mxu1 %v6347_v0  ;;  %5254 = vmatprep.subr.bf16.mxu0 %v6347_v0 }
 0x156   :  { %5291 = vmatpush3.bf16.msra.mxu1 %v6458_v8  ;;  %5255 = vmatpush3.bf16.msra.mxu0 %v6522_v19 }
 0x157   :  { %5296 = vmatprep.subr.bf16.mxu1 %v6347_v0  ;;  %5260 = vmatprep.subr.bf16.mxu0 %v6347_v0 }
 0x159   :  { %5293 = vmatmul.mubr.msk.bf16.vlgmr.msra.gmra.mrb[16].mxu1 %vm114_vm1, %v6732_v28  ;;  %5257 = vmatmul.mubr.msk.bf16.vlgmr.msra.gmra.mrb[12].mxu0 %vm114_vm1, %v6860_v34 }
 0x15a   :  { %5297 = vmatpush3.bf16.msra.mxu1 %v6464_v11  ;;  %5261 = vmatpush3.bf16.msra.mxu0 %v6530_v21 }
 0x15b   :  { %5298 = vmatprep.subr.bf16.mxu1 %v6347_v0  ;;  %5262 = vmatprep.subr.bf16.mxu0 %v6347_v0 }
 0x15c   :  { %5268 = vmatprep.mubr.msk.bf16.mxu0 %vm6348_vm0, %v6347_v0  ;;  %5304 = vmatprep.mubr.msk.bf16.mxu1 %vm6348_vm0, %v6347_v0 }
 0x15e   :  { %5299 = vmatpush3.bf16.msra.mxu1 %v6472_v12  ;;  %5263 = vmatpush3.bf16.msra.mxu0 %v6539_v22 }
 0x15f   :  { %5300 = vmatprep.subr.bf16.mxu1 %v6347_v0  ;;  %5264 = vmatprep.subr.bf16.mxu0 %v6347_v0 }
 0x162   :  { %5301 = vmatpush3.bf16.msra.mxu1 %v6482_v13  ;;  %5265 = vmatpush3.bf16.msra.mxu0 %v6549_v23 }
 0x163   :  { %5302 = vmatprep.subr.bf16.mxu1 %v6347_v0  ;;  %5266 = vmatprep.subr.bf16.mxu0 %v6347_v0 }
 0x166   :  { %5303 = vmatpush3.bf16.msra.mxu1 %v6486_v14  ;;  %5267 = vmatpush3.bf16.msra.mxu0 %v6555_v24 }
 0x167   :  { %5308 = vmatprep.subr.bf16.mxu1 %v6347_v0  ;;  %5332 = vmatprep.subr.bf16.mxu0 %v6347_v0 }
 0x169   :  { %5305 = vmatmul.mubr.msk.bf16.vlgmr.msra.gmra.mrb[16].mxu1 %vm114_vm1, %v6860_v34  ;;  %5269 = vmatmul.mubr.msk.bf16.vlgmr.msra.gmra.mrb[12].mxu0 %vm114_vm1, %v6941_v41 }
 0x16a   :  { %5309 = vmatpush3.bf16.msra.mxu1 %v6493_v16  ;;  %5333 = vmatpush3.bf16.msra.mxu0 %v6951_v42 }
 0x16b   :  { %5310 = vmatprep.subr.bf16.mxu1 %v6347_v0  ;;  %5334 = vmatprep.subr.bf16.mxu0 %v6347_v0 }
 0x16c   :  { %v6955_v43 = vpop.f32.mrb[4].mxu1  ;;  %5316 = vmatprep.mubr.msk.bf16.mxu1 %vm6348_vm0, %v6347_v0  ;;  %5340 = vmatprep.mubr.msk.bf16.mxu0 %vm6348_vm0, %v6347_v0 }
 0x16d   :  { %v715_v44 = vmax.f32 %v6903_v36, %v6955_v43  ;;  %v4970_v45 = vpop.f32.mrb[5].mxu1 }
 0x16e   :  { %v6964_v46 = vpop.f32.mrb[6].mxu1  ;;  %5311 = vmatpush3.bf16.msra.mxu1 %v6501_v17  ;;  %5335 = vmatpush3.bf16.msra.mxu0 %v6969_v48 }
 0x16f   :  { %v716_v47 = vmax.f32 %v6909_v39, %v6964_v46  ;;  %v4971_v49 = vpop.f32.mrb[7].mxu1  ;;  %5312 = vmatprep.subr.bf16.mxu1 %v6347_v0  ;;  %5336 = vmatprep.subr.bf16.mxu0 %v6347_v0 }
 0x170   :  { %v7464_v49 = vld [vmem:[#allocation2 + $0x88] sm:$0xff]  }
 0x172   :  { %5313 = vmatpush3.bf16.msra.mxu1 %v6511_v18  ;;  %5337 = vmatpush3.bf16.msra.mxu0 %v6975_v50 }
 0x173   :  { %5314 = vmatprep.subr.bf16.mxu1 %v6347_v0  ;;  %5338 = vmatprep.subr.bf16.mxu0 %v6347_v0 }
 0x176   :  { %5315 = vmatpush3.bf16.msra.mxu1 %v6522_v19  ;;  %5339 = vmatpush3.bf16.msra.mxu0 %v6454_v7 }
 0x177   :  { %5320 = vmatprep.subr.bf16.mxu1 %v6347_v0  ;;  %5344 = vmatprep.subr.bf16.mxu0 %v6347_v0 }
 0x179   :  { %5317 = vmatmul.mubr.msk.bf16.vlgmr.msra.gmra.mrb[16].mxu1 %vm114_vm1, %v6941_v41  ;;  %5341 = vmatmul.mubr.msk.bf16.vlgmr.msra.gmra.mrb[16].mxu0 %vm114_vm1, %v6860_v34 }
 0x17a   :  { %5321 = vmatpush3.bf16.msra.mxu1 %v6530_v21  ;;  %5345 = vmatpush3.bf16.msra.mxu0 %v6989_v51 }
 0x17b   :  { %5322 = vmatprep.subr.bf16.mxu1 %v6347_v0  ;;  %5346 = vmatprep.subr.bf16.mxu0 %v6347_v0 }
 0x17c   :  { %5328 = vmatprep.mubr.msk.bf16.mxu1 %vm6348_vm0, %v6347_v0  ;;  %5352 = vmatprep.mubr.msk.bf16.mxu0 %vm6348_vm0, %v6347_v0 }
 0x17e   :  { %5323 = vmatpush3.bf16.msra.mxu1 %v6539_v22  ;;  %5347 = vmatpush3.bf16.msra.mxu0 %v6999_v52 }
 0x17f   :  { %5324 = vmatprep.subr.bf16.mxu1 %v6347_v0  ;;  %5348 = vmatprep.subr.bf16.mxu0 %v6347_v0 }
 0x182   :  { %5325 = vmatpush3.bf16.msra.mxu1 %v6549_v23  ;;  %5349 = vmatpush3.bf16.msra.mxu0 %v7005_v53 }
 0x183   :  { %5326 = vmatprep.subr.bf16.mxu1 %v6347_v0  ;;  %5350 = vmatprep.subr.bf16.mxu0 %v6347_v0 }
 0x186   :  { %5327 = vmatpush3.bf16.msra.mxu1 %v6555_v24  ;;  %5351 = vmatpush3.bf16.msra.mxu0 %v7013_v55 }
 0x187   :  { %5392 = vmatprep.subr.bf16.mxu1 %v6347_v0  ;;  %5356 = vmatprep.subr.bf16.mxu0 %v6347_v0 }
 0x189   :  { %5329 = vmatmul.mubr.msk.bf16.vlgmr.msra.gmra.mrb[16].mxu1 %vm114_vm1, %v7010_v54  ;;  %5353 = vmatmul.mubr.msk.bf16.vlgmr.msra.gmra.mrb[16].mxu0 %vm114_vm1, %v6807_v29 }
 0x18a   :  { %5393 = vmatpush3.bf16.msra.mxu1 %v6951_v42  ;;  %5357 = vmatpush3.bf16.msra.mxu0 %v6464_v11 }
 0x18b   :  { %5394 = vmatprep.subr.bf16.mxu1 %v6347_v0  ;;  %5358 = vmatprep.subr.bf16.mxu0 %v6347_v0 }
 0x18c   :  { %5364 = vmatprep.mubr.msk.bf16.mxu0 %vm6348_vm0, %v6347_v0  ;;  %5400 = vmatprep.mubr.msk.bf16.mxu1 %vm6348_vm0, %v6347_v0 }
 0x18e   :  { %5395 = vmatpush3.bf16.msra.mxu1 %v6969_v48  ;;  %5359 = vmatpush3.bf16.msra.mxu0 %v6472_v12 }
 0x18f   :  { %5396 = vmatprep.subr.bf16.mxu1 %v6347_v0  ;;  %5360 = vmatprep.subr.bf16.mxu0 %v6347_v0 }
 0x192   :  { %5397 = vmatpush3.bf16.msra.mxu1 %v6975_v50  ;;  %5361 = vmatpush3.bf16.msra.mxu0 %v6482_v13  ;;  %v7168_v13 = vld [vmem:[#allocation2 + $0x68] sm:$0xff]  }
 0x193   :  { %5398 = vmatprep.subr.bf16.mxu1 %v6347_v0  ;;  %5362 = vmatprep.subr.bf16.mxu0 %v6347_v0 }
 0x196   :  { %5399 = vmatpush3.bf16.msra.mxu1 %v7038_v56  ;;  %5363 = vmatpush3.bf16.msra.mxu0 %v6486_v14 }
 0x197   :  { %5404 = vmatprep.subr.bf16.mxu1 %v6347_v0  ;;  %5368 = vmatprep.subr.bf16.mxu0 %v6347_v0 }
 0x199   :  { %5401 = vmatmul.mubr.msk.bf16.vlgmr.msra.gmra.mrb[20].mxu1 %vm114_vm1, %v6941_v41  ;;  %5365 = vmatmul.mubr.msk.bf16.vlgmr.msra.gmra.mrb[16].mxu0 %vm114_vm1, %v6941_v41 }
 0x19a   :  { %5405 = vmatpush3.bf16.msra.mxu1 %v6989_v51  ;;  %5369 = vmatpush3.bf16.msra.mxu0 %v6493_v16 }
 0x19b   :  { %5406 = vmatprep.subr.bf16.mxu1 %v6347_v0  ;;  %5370 = vmatprep.subr.bf16.mxu0 %v6347_v0 }
 0x19c   :  { %5376 = vmatprep.mubr.msk.bf16.mxu0 %vm6348_vm0, %v6347_v0  ;;  %v930_v57 = vpop.f32.mrb[4].mxu0  ;;  %5412 = vmatprep.mubr.msk.bf16.mxu1 %vm6348_vm0, %v6347_v0 }
 0x19d   :  { %v7059_v58 = vmax.f32 %v715_v44, %v930_v57  ;;  %v5030_v59 = vpop.f32.mrb[5].mxu0 }
 0x19e   :  { %5407 = vmatpush3.bf16.msra.mxu1 %v6999_v52  ;;  %v933_v60 = vpop.f32.mrb[6].mxu0  ;;  %5371 = vmatpush3.bf16.msra.mxu0 %v6501_v17 }
 0x19f   :  { %5408 = vmatprep.subr.bf16.mxu1 %v6347_v0  ;;  %v7067_v61 = vmax.f32 %v716_v47, %v933_v60  ;;  %v5031_v62 = vpop.f32.mrb[7].mxu0  ;;  %5372 = vmatprep.subr.bf16.mxu0 %v6347_v0 }
 0x1a0   :  { %v6191_v62 = vld [vmem:[#allocation2 + $0x90] sm:$0xff]  }
 0x1a2   :  { %5409 = vmatpush3.bf16.msra.mxu1 %v7005_v53  ;;  %5373 = vmatpush3.bf16.msra.mxu0 %v6511_v18 }
 0x1a3   :  { %5410 = vmatprep.subr.bf16.mxu1 %v6347_v0  ;;  %5374 = vmatprep.subr.bf16.mxu0 %v6347_v0 }
 0x1a6   :  { %5411 = vmatpush3.bf16.msra.mxu1 %v7013_v55  ;;  %5375 = vmatpush3.bf16.msra.mxu0 %v6522_v19 }
 0x1a7   :  { %5416 = vmatprep.subr.bf16.mxu1 %v6347_v0  ;;  %5380 = vmatprep.subr.bf16.mxu0 %v6347_v0 }
 0x1a9   :  { %5413 = vmatmul.mubr.msk.bf16.vlgmr.msra.gmra.mrb[20].mxu1 %vm114_vm1, %v6860_v34  ;;  %5377 = vmatmul.mubr.msk.bf16.vlgmr.msra.gmra.mrb[16].mxu0 %vm114_vm1, %v7010_v54 }
 0x1aa   :  { %5417 = vmatpush3.bf16.msra.mxu1 %v7082_v63  ;;  %5381 = vmatpush3.bf16.msra.mxu0 %v6530_v21 }
 0x1ab   :  { %5418 = vmatprep.subr.bf16.mxu1 %v6347_v0  ;;  %5382 = vmatprep.subr.bf16.mxu0 %v6347_v0 }
 0x1ac   :  { %5388 = vmatprep.mubr.msk.bf16.mxu0 %vm6348_vm0, %v6347_v0  ;;  %5424 = vmatprep.mubr.msk.bf16.mxu1 %vm6348_vm0, %v6347_v0 }
 0x1ae   :  { %5419 = vmatpush3.bf16.msra.mxu1 %v7092_v1  ;;  %5383 = vmatpush3.bf16.msra.mxu0 %v6539_v22 }
 0x1af   :  { %5420 = vmatprep.subr.bf16.mxu1 %v6347_v0  ;;  %5384 = vmatprep.subr.bf16.mxu0 %v6347_v0 }
 0x1b2   :  { %5421 = vmatpush3.bf16.msra.mxu1 %v7098_v2  ;;  %5385 = vmatpush3.bf16.msra.mxu0 %v6549_v23 }
 0x1b3   :  { %5422 = vmatprep.subr.bf16.mxu1 %v6347_v0  ;;  %5386 = vmatprep.subr.bf16.mxu0 %v6347_v0 }
 0x1b6   :  { %5423 = vmatpush3.bf16.msra.mxu1 %v7104_v3  ;;  %5387 = vmatpush3.bf16.msra.mxu0 %v6555_v24 }
 0x1b7   :  { %5428 = vmatprep.subr.bf16.mxu1 %v6347_v0  ;;  %5452 = vmatprep.subr.bf16.mxu0 %v6347_v0 }
 0x1b9   :  { %5425 = vmatmul.mubr.msk.bf16.vlgmr.msra.gmra.mrb[20].mxu1 %vm114_vm1, %v7010_v54  ;;  %5389 = vmatmul.mubr.msk.bf16.vlgmr.msra.gmra.mrb[16].mxu0 %vm114_vm1, %v7107_v4 }
 0x1ba   :  { %5429 = vmatpush3.bf16.msra.mxu1 %v7116_v5  ;;  %5453 = vmatpush3.bf16.msra.mxu0 %v6951_v42 }
 0x1bb   :  { %5430 = vmatprep.subr.bf16.mxu1 %v6347_v0  ;;  %5454 = vmatprep.subr.bf16.mxu0 %v6347_v0 }
 0x1bc   :  { %v7121_v6 = vpop.f32.mrb[8].mxu1  ;;  %5436 = vmatprep.mubr.msk.bf16.mxu1 %vm6348_vm0, %v6347_v0  ;;  %5460 = vmatprep.mubr.msk.bf16.mxu0 %vm6348_vm0, %v6347_v0 }
 0x1bd   :  { %v1163_v7 = vmax.f32 %v7059_v58, %v7121_v6  ;;  %v5090_v8 = vpop.f32.mrb[9].mxu1 }
 0x1be   :  { %v7130_v9 = vpop.f32.mrb[10].mxu1  ;;  %5431 = vmatpush3.bf16.msra.mxu1 %v7132_v10  ;;  %5455 = vmatpush3.bf16.msra.mxu0 %v6969_v48 }
 0x1bf   :  { %v1164_v11 = vmax.f32 %v7067_v61, %v7130_v9  ;;  %v5091_v12 = vpop.f32.mrb[11].mxu1  ;;  %5432 = vmatprep.subr.bf16.mxu1 %v6347_v0  ;;  %5456 = vmatprep.subr.bf16.mxu0 %v6347_v0 }
 0x1c0   :  { %v6194_v12 = vld [vmem:[#allocation7] ss:$8 sps:$4 sm:$0xff]  }
 0x1c2   :  { %5433 = vmatpush3.bf16.msra.mxu1 %v6511_v18  ;;  %5457 = vmatpush3.bf16.msra.mxu0 %v6975_v50 }
 0x1c3   :  { %5434 = vmatprep.subr.bf16.mxu1 %v6347_v0  ;;  %5458 = vmatprep.subr.bf16.mxu0 %v6347_v0 }
 0x1c6   :  { %5435 = vmatpush3.bf16.msra.mxu1 %v6522_v19  ;;  %5459 = vmatpush3.bf16.msra.mxu0 %v7038_v56 }
 0x1c7   :  { %5440 = vmatprep.subr.bf16.mxu1 %v6347_v0  ;;  %5464 = vmatprep.subr.bf16.mxu0 %v6347_v0 }
 0x1c9   :  { %5437 = vmatmul.mubr.msk.bf16.vlgmr.msra.gmra.mrb[20].mxu1 %vm114_vm1, %v7107_v4  ;;  %5461 = vmatmul.mubr.msk.bf16.vlgmr.msra.gmra.mrb[20].mxu0 %vm114_vm1, %v7010_v54 }
 0x1ca   :  { %5441 = vmatpush3.bf16.msra.mxu1 %v6530_v21  ;;  %5465 = vmatpush3.bf16.msra.mxu0 %v6989_v51  ;;  %v7231_v21 = vld [vmem:[#allocation5 + $0x78] sm:$0xff]  }
 0x1cb   :  { %5442 = vmatprep.subr.bf16.mxu1 %v6347_v0  ;;  %5466 = vmatprep.subr.bf16.mxu0 %v6347_v0 }
 0x1cc   :  { %5448 = vmatprep.mubr.msk.bf16.mxu1 %vm6348_vm0, %v6347_v0  ;;  %5472 = vmatprep.mubr.msk.bf16.mxu0 %vm6348_vm0, %v6347_v0 }
 0x1ce   :  { %5443 = vmatpush3.bf16.msra.mxu1 %v6539_v22  ;;  %5467 = vmatpush3.bf16.msra.mxu0 %v6999_v52  ;;  %v7241_v22 = vld [vmem:[#allocation5 + $0x80] sm:$0xff]  }
 0x1cf   :  { %5444 = vmatprep.subr.bf16.mxu1 %v6347_v0  ;;  %5468 = vmatprep.subr.bf16.mxu0 %v6347_v0 }
 0x1d2   :  { %5445 = vmatpush3.bf16.msra.mxu1 %v6549_v23  ;;  %5469 = vmatpush3.bf16.msra.mxu0 %v7005_v53  ;;  %v7251_v23 = vld [vmem:[#allocation5 + $0x88] sm:$0xff]  }
 0x1d3   :  { %5446 = vmatprep.subr.bf16.mxu1 %v6347_v0  ;;  %5470 = vmatprep.subr.bf16.mxu0 %v6347_v0 }
 0x1d6   :  { %5447 = vmatpush3.bf16.msra.mxu1 %v6555_v24  ;;  %5471 = vmatpush3.bf16.msra.mxu0 %v7013_v55  ;;  %v7257_v24 = vld [vmem:[#allocation5 + $0x90] sm:$0xff]  }
 0x1d7   :  { %5512 = vmatprep.subr.bf16.mxu1 %v6347_v0  ;;  %5476 = vmatprep.subr.bf16.mxu0 %v6347_v0 }
 0x1d9   :  { %5449 = vmatmul.mubr.msk.bf16.vlgmr.msra.gmra.mrb[20].mxu1 %vm114_vm1, %v7168_v13  ;;  %5473 = vmatmul.mubr.msk.bf16.vlgmr.msra.gmra.mrb[20].mxu0 %vm114_vm1, %v6941_v41 }
 0x1da   :  { %5513 = vmatpush3.bf16.msra.mxu1 %v6951_v42  ;;  %5477 = vmatpush3.bf16.msra.mxu0 %v7082_v63 }
 0x1db   :  { %5514 = vmatprep.subr.bf16.mxu1 %v6347_v0  ;;  %5478 = vmatprep.subr.bf16.mxu0 %v6347_v0 }
 0x1dc   :  { %5484 = vmatprep.mubr.msk.bf16.mxu0 %vm6348_vm0, %v6347_v0  ;;  %5520 = vmatprep.mubr.msk.bf16.mxu1 %vm6348_vm0, %v6347_v0 }
 0x1de   :  { %5515 = vmatpush3.bf16.msra.mxu1 %v6969_v48  ;;  %5479 = vmatpush3.bf16.msra.mxu0 %v7092_v1 }
 0x1df   :  { %5516 = vmatprep.subr.bf16.mxu1 %v6347_v0  ;;  %5480 = vmatprep.subr.bf16.mxu0 %v6347_v0 }
 0x1e2   :  { %5517 = vmatpush3.bf16.msra.mxu1 %v6975_v50  ;;  %5481 = vmatpush3.bf16.msra.mxu0 %v7098_v2 }
 0x1e3   :  { %5518 = vmatprep.subr.bf16.mxu1 %v6347_v0  ;;  %5482 = vmatprep.subr.bf16.mxu0 %v6347_v0 }
 0x1e6   :  { %5519 = vmatpush3.bf16.msra.mxu1 %v7038_v56  ;;  %5483 = vmatpush3.bf16.msra.mxu0 %v7104_v3 }
 0x1e7   :  { %5524 = vmatprep.subr.bf16.mxu1 %v6347_v0  ;;  %5488 = vmatprep.subr.bf16.mxu0 %v6347_v0 }
 0x1e9   :  { %5521 = vmatmul.mubr.msk.bf16.vlgmr.msra.gmra.mrb[24].mxu1 %vm114_vm1, %v7107_v4  ;;  %5485 = vmatmul.mubr.msk.bf16.vlgmr.msra.gmra.mrb[20].mxu0 %vm114_vm1, %v7107_v4 }
 0x1ea   :  { %5525 = vmatpush3.bf16.msra.mxu1 %v6989_v51  ;;  %5489 = vmatpush3.bf16.msra.mxu0 %v7116_v5 }
 0x1eb   :  { %5526 = vmatprep.subr.bf16.mxu1 %v6347_v0  ;;  %5490 = vmatprep.subr.bf16.mxu0 %v6347_v0 }
 0x1ec   :  { %5496 = vmatprep.mubr.msk.bf16.mxu0 %vm6348_vm0, %v6347_v0  ;;  %v1378_v14 = vpop.f32.mrb[8].mxu0  ;;  %5532 = vmatprep.mubr.msk.bf16.mxu1 %vm6348_vm0, %v6347_v0 }
 0x1ed   :  { %v7213_v15 = vmax.f32 %v1163_v7, %v1378_v14  ;;  %v5150_v16 = vpop.f32.mrb[9].mxu0  ;;  %v6199_v14 = vld [vmem:[#allocation7 + $0x14] ss:$8 sps:$4 sm:$0xff]  }
 0x1ee   :  { %5527 = vmatpush3.bf16.msra.mxu1 %v6999_v52  ;;  %v1381_v17 = vpop.f32.mrb[10].mxu0  ;;  %5491 = vmatpush3.bf16.msra.mxu0 %v7132_v10  ;;  %v6202_v16 = vld [vmem:[#allocation7 + $0x24] ss:$8 sps:$4 sm:$0xff]  }
 0x1ef   :  { %5528 = vmatprep.subr.bf16.mxu1 %v6347_v0  ;;  %v7221_v18 = vmax.f32 %v1164_v11, %v1381_v17  ;;  %v5151_v19 = vpop.f32.mrb[11].mxu0  ;;  %5492 = vmatprep.subr.bf16.mxu0 %v6347_v0  ;;  %v6205_v17 = vld [vmem:[#allocation7 + $0x34] ss:$8 sps:$4 sm:$0xff]  }
 0x1f0   :  { %v6208_v19 = vld [vmem:[#allocation7 + $0x44] ss:$8 sps:$4 sm:$0xff]  }
 0x1f2   :  { %5529 = vmatpush3.bf16.msra.mxu1 %v7005_v53  ;;  %5493 = vmatpush3.bf16.msra.mxu0 %v7225_v20 }
 0x1f3   :  { %5530 = vmatprep.subr.bf16.mxu1 %v6347_v0  ;;  %5494 = vmatprep.subr.bf16.mxu0 %v6347_v0 }
 0x1f6   :  { %5531 = vmatpush3.bf16.msra.mxu1 %v7013_v55  ;;  %5495 = vmatpush3.bf16.msra.mxu0 %v7231_v21 }
 0x1f7   :  { %5536 = vmatprep.subr.bf16.mxu1 %v6347_v0  ;;  %5500 = vmatprep.subr.bf16.mxu0 %v6347_v0 }
 0x1f9   :  { %5533 = vmatmul.mubr.msk.bf16.vlgmr.msra.gmra.mrb[24].mxu1 %vm114_vm1, %v7010_v54  ;;  %5497 = vmatmul.mubr.msk.bf16.vlgmr.msra.gmra.mrb[20].mxu0 %vm114_vm1, %v7168_v13 }
 0x1fa   :  { %5537 = vmatpush3.bf16.msra.mxu1 %v7082_v63  ;;  %5501 = vmatpush3.bf16.msra.mxu0 %v7241_v22 }
 0x1fb   :  { %5538 = vmatprep.subr.bf16.mxu1 %v6347_v0  ;;  %5502 = vmatprep.subr.bf16.mxu0 %v6347_v0 }
 0x1fc   :  { %5508 = vmatprep.mubr.msk.bf16.mxu0 %vm6348_vm0, %v6347_v0  ;;  %5544 = vmatprep.mubr.msk.bf16.mxu1 %vm6348_vm0, %v6347_v0 }
 0x1fe   :  { %5539 = vmatpush3.bf16.msra.mxu1 %v7092_v1  ;;  %5503 = vmatpush3.bf16.msra.mxu0 %v7251_v23 }
 0x1ff   :  { %5540 = vmatprep.subr.bf16.mxu1 %v6347_v0  ;;  %5504 = vmatprep.subr.bf16.mxu0 %v6347_v0 }
 0x202   :  { %5541 = vmatpush3.bf16.msra.mxu1 %v7098_v2  ;;  %5505 = vmatpush3.bf16.msra.mxu0 %v7257_v24 }
 0x203   :  { %5542 = vmatprep.subr.bf16.mxu1 %v6347_v0  ;;  %5506 = vmatprep.subr.bf16.mxu0 %v6347_v0 }
 0x206   :  { %5543 = vmatpush3.bf16.msra.mxu1 %v7104_v3  ;;  %5507 = vmatpush3.bf16.msra.mxu0 %v7265_v26 }
 0x207   :  { %5548 = vmatprep.subr.bf16.mxu1 %v6347_v0  ;;  %5572 = vmatprep.subr.bf16.mxu0 %v6347_v0 }
 0x209   :  { %5545 = vmatmul.mubr.msk.bf16.vlgmr.msra.gmra.mrb[24].mxu1 %vm114_vm1, %v7168_v13  ;;  %5509 = vmatmul.mubr.msk.bf16.vlgmr.msra.gmra.mrb[20].mxu0 %vm114_vm1, %v7263_v25 }
 0x20a   :  { %5549 = vmatpush3.bf16.msra.mxu1 %v7116_v5  ;;  %5573 = vmatpush3.bf16.msra.mxu0 %v6951_v42 }
 0x20b   :  { %5550 = vmatprep.subr.bf16.mxu1 %v6347_v0  ;;  %5574 = vmatprep.subr.bf16.mxu0 %v6347_v0 }
 0x20c   :  { %v7277_v27 = vpop.f32.mrb[12].mxu1  ;;  %5556 = vmatprep.mubr.msk.bf16.mxu1 %vm6348_vm0, %v6347_v0  ;;  %5580 = vmatprep.mubr.msk.bf16.mxu0 %vm6348_vm0, %v6347_v0 }
 0x20d   :  { %v1611_v28 = vmax.f32 %v7213_v15, %v7277_v27  ;;  %v5210_v29 = vpop.f32.mrb[13].mxu1  ;;  %v6197_v15 = vld [vmem:[#allocation7 + $0x10] ss:$8 sps:$4 sm:$0xff]  }
 0x20e   :  { %v7286_v30 = vpop.f32.mrb[14].mxu1  ;;  %5551 = vmatpush3.bf16.msra.mxu1 %v7132_v10  ;;  %5575 = vmatpush3.bf16.msra.mxu0 %v6969_v48 }
 0x20f   :  { %v1612_v31 = vmax.f32 %v7221_v18, %v7286_v30  ;;  %v5211_v32 = vpop.f32.mrb[15].mxu1  ;;  %5552 = vmatprep.subr.bf16.mxu1 %v6347_v0  ;;  %5576 = vmatprep.subr.bf16.mxu0 %v6347_v0  ;;  %v6203_v18 = vld [vmem:[#allocation7 + $0x30] ss:$8 sps:$4 sm:$0xff]  }
 0x212   :  { %5553 = vmatpush3.bf16.msra.mxu1 %v7225_v20  ;;  %5577 = vmatpush3.bf16.msra.mxu0 %v6975_v50 }
 0x213   :  { %5554 = vmatprep.subr.bf16.mxu1 %v6347_v0  ;;  %5578 = vmatprep.subr.bf16.mxu0 %v6347_v0 }
 0x216   :  { %5555 = vmatpush3.bf16.msra.mxu1 %v7231_v21  ;;  %5579 = vmatpush3.bf16.msra.mxu0 %v7038_v56 }
 0x217   :  { %5560 = vmatprep.subr.bf16.mxu1 %v6347_v0  ;;  %5584 = vmatprep.subr.bf16.mxu0 %v6347_v0 }
 0x219   :  { %5557 = vmatmul.mubr.msk.bf16.vlgmr.msra.gmra.mrb[24].mxu1 %vm114_vm1, %v7263_v25  ;;  %5581 = vmatmul.mubr.msk.bf16.vlgmr.msra.gmra.mrb[24].mxu0 %vm114_vm1, %v7168_v13 }
 0x21a   :  { %5561 = vmatpush3.bf16.msra.mxu1 %v7241_v22  ;;  %5585 = vmatpush3.bf16.msra.mxu0 %v6989_v51 }
 0x21b   :  { %5562 = vmatprep.subr.bf16.mxu1 %v6347_v0  ;;  %5586 = vmatprep.subr.bf16.mxu0 %v6347_v0 }
 0x21c   :  { %5568 = vmatprep.mubr.msk.bf16.mxu1 %vm6348_vm0, %v6347_v0  ;;  %5592 = vmatprep.mubr.msk.bf16.mxu0 %vm6348_vm0, %v6347_v0 }
 0x21e   :  { %5563 = vmatpush3.bf16.msra.mxu1 %v7251_v23  ;;  %5587 = vmatpush3.bf16.msra.mxu0 %v6999_v52 }
 0x21f   :  { %5564 = vmatprep.subr.bf16.mxu1 %v6347_v0  ;;  %5588 = vmatprep.subr.bf16.mxu0 %v6347_v0 }
 0x222   :  { %5565 = vmatpush3.bf16.msra.mxu1 %v7257_v24  ;;  %5589 = vmatpush3.bf16.msra.mxu0 %v7005_v53 }
 0x223   :  { %5566 = vmatprep.subr.bf16.mxu1 %v6347_v0  ;;  %5590 = vmatprep.subr.bf16.mxu0 %v6347_v0 }
 0x226   :  { %5567 = vmatpush3.bf16.msra.mxu1 %v7265_v26  ;;  %5591 = vmatpush3.bf16.msra.mxu0 %v7013_v55 }
 0x227   :  { %5632 = vmatprep.subr.bf16.mxu1 %v6347_v0  ;;  %5596 = vmatprep.subr.bf16.mxu0 %v6347_v0 }
 0x229   :  { %5569 = vmatmul.mubr.msk.bf16.vlgmr.msra.gmra.mrb[24].mxu1 %vm114_vm1, %v7322_v33  ;;  %5593 = vmatmul.mubr.msk.bf16.vlgmr.msra.gmra.mrb[24].mxu0 %vm114_vm1, %v7107_v4 }
 0x22a   :  { %5633 = vmatpush3.bf16.msra.mxu1 %v6951_v42  ;;  %5597 = vmatpush3.bf16.msra.mxu0 %v7082_v63 }
 0x22b   :  { %5634 = vmatprep.subr.bf16.mxu1 %v6347_v0  ;;  %5598 = vmatprep.subr.bf16.mxu0 %v6347_v0 }
 0x22c   :  { %5604 = vmatprep.mubr.msk.bf16.mxu0 %vm6348_vm0, %v6347_v0  ;;  %5640 = vmatprep.mubr.msk.bf16.mxu1 %vm6348_vm0, %v6347_v0 }
 0x22e   :  { %5635 = vmatpush3.bf16.msra.mxu1 %v6969_v48  ;;  %5599 = vmatpush3.bf16.msra.mxu0 %v7092_v1 }
 0x22f   :  { %5636 = vmatprep.subr.bf16.mxu1 %v6347_v0  ;;  %5600 = vmatprep.subr.bf16.mxu0 %v6347_v0 }
 0x232   :  { %5637 = vmatpush3.bf16.msra.mxu1 %v6975_v50  ;;  %5601 = vmatpush3.bf16.msra.mxu0 %v7098_v2 }
 0x233   :  { %5638 = vmatprep.subr.bf16.mxu1 %v6347_v0  ;;  %5602 = vmatprep.subr.bf16.mxu0 %v6347_v0 }
 0x236   :  { %5639 = vmatpush3.bf16.msra.mxu1 %v7038_v56  ;;  %5603 = vmatpush3.bf16.msra.mxu0 %v7104_v3 }
 0x237   :  { %5644 = vmatprep.subr.bf16.mxu1 %v6347_v0  ;;  %5608 = vmatprep.subr.bf16.mxu0 %v6347_v0 }
 0x239   :  { %5641 = vmatmul.mubr.msk.bf16.vlgmr.msra.gmra.mrb[28].mxu1 %vm114_vm1, %v7263_v25  ;;  %5605 = vmatmul.mubr.msk.bf16.vlgmr.msra.gmra.mrb[24].mxu0 %vm114_vm1, %v7263_v25 }
 0x23a   :  { %5645 = vmatpush3.bf16.msra.mxu1 %v6989_v51  ;;  %5609 = vmatpush3.bf16.msra.mxu0 %v7116_v5 }
 0x23b   :  { %5646 = vmatprep.subr.bf16.mxu1 %v6347_v0  ;;  %5610 = vmatprep.subr.bf16.mxu0 %v6347_v0 }
 0x23c   :  { %5616 = vmatprep.mubr.msk.bf16.mxu0 %vm6348_vm0, %v6347_v0  ;;  %v1826_v34 = vpop.f32.mrb[12].mxu0  ;;  %5652 = vmatprep.mubr.msk.bf16.mxu1 %vm6348_vm0, %v6347_v0 }
 0x23d   :  { %v7367_v35 = vmax.f32 %v1611_v28, %v1826_v34  ;;  %v5270_v36 = vpop.f32.mrb[13].mxu0  ;;  %v6209_v28 = vld [vmem:[#allocation7 + $0x50] ss:$8 sps:$4 sm:$0xff]  }
 0x23e   :  { %5647 = vmatpush3.bf16.msra.mxu1 %v6999_v52  ;;  %v1829_v37 = vpop.f32.mrb[14].mxu0  ;;  %5611 = vmatpush3.bf16.msra.mxu0 %v7132_v10  ;;  %v6212_v36 = vld [vmem:[#allocation7 + $0x60] ss:$8 sps:$4 sm:$0xff]  }
 0x23f   :  { %5648 = vmatprep.subr.bf16.mxu1 %v6347_v0  ;;  %v7375_v38 = vmax.f32 %v1612_v31, %v1829_v37  ;;  %v5271_v39 = vpop.f32.mrb[15].mxu0  ;;  %5612 = vmatprep.subr.bf16.mxu0 %v6347_v0  ;;  %v6217_v37 = vld [vmem:[#allocation7 + $0x74] ss:$8 sps:$4 sm:$0xff]  }
 0x240   :  { %v6349_v39 = vmov 0  }
 0x242   :  { %5649 = vmatpush3.bf16.msra.mxu1 %v7005_v53  ;;  %5613 = vmatpush3.bf16.msra.mxu0 %v7225_v20 }
 0x243   :  { %5650 = vmatprep.subr.bf16.mxu1 %v6347_v0  ;;  %5614 = vmatprep.subr.bf16.mxu0 %v6347_v0 }
 0x246   :  { %5651 = vmatpush3.bf16.msra.mxu1 %v7013_v55  ;;  %5615 = vmatpush3.bf16.msra.mxu0 %v7231_v21 }
 0x247   :  { %5656 = vmatprep.subr.bf16.mxu1 %v6347_v0  ;;  %5620 = vmatprep.subr.bf16.mxu0 %v6347_v0 }
 0x249   :  { %5653 = vmatmul.mubr.msk.bf16.vlgmr.msra.gmra.mrb[28].mxu1 %vm114_vm1, %v7168_v13  ;;  %5617 = vmatmul.mubr.msk.bf16.vlgmr.msra.gmra.mrb[24].mxu0 %vm114_vm1, %v7322_v33  ;;  %v6196_v13 = vld [vmem:[#allocation7 + $0x4] ss:$8 sps:$4 sm:$0xff]  }
 0x24a   :  { %5657 = vmatpush3.bf16.msra.mxu1 %v7082_v63  ;;  %5621 = vmatpush3.bf16.msra.mxu0 %v7241_v22 }
 0x24b   :  { %5658 = vmatprep.subr.bf16.mxu1 %v6347_v0  ;;  %5622 = vmatprep.subr.bf16.mxu0 %v6347_v0 }
 0x24c   :  { %5628 = vmatprep.mubr.msk.bf16.mxu0 %vm6348_vm0, %v6347_v0  ;;  %5664 = vmatprep.mubr.msk.bf16.mxu1 %vm6348_vm0, %v6347_v0 }
 0x24e   :  { %5659 = vmatpush3.bf16.msra.mxu1 %v7092_v1  ;;  %5623 = vmatpush3.bf16.msra.mxu0 %v7251_v23 }
 0x24f   :  { %5660 = vmatprep.subr.bf16.mxu1 %v6347_v0  ;;  %5624 = vmatprep.subr.bf16.mxu0 %v6347_v0 }
 0x252   :  { %5661 = vmatpush3.bf16.msra.mxu1 %v7098_v2  ;;  %5625 = vmatpush3.bf16.msra.mxu0 %v7257_v24 }
 0x253   :  { %5662 = vmatprep.subr.bf16.mxu1 %v6347_v0  ;;  %5626 = vmatprep.subr.bf16.mxu0 %v6347_v0 }
 0x256   :  { %5663 = vmatpush3.bf16.msra.mxu1 %v7104_v3  ;;  %5627 = vmatpush3.bf16.msra.mxu0 %v7265_v26 }
 0x257   :  { %5668 = vmatprep.subr.bf16.mxu1 %v6347_v0  ;;  %5692 = vmatprep.subr.bf16.mxu0 %v6347_v0 }
 0x259   :  { %5665 = vmatmul.mubr.msk.bf16.vlgmr.msra.gmra.mrb[28].mxu1 %vm114_vm1, %v7322_v33  ;;  %5629 = vmatmul.mubr.msk.bf16.vlgmr.msra.gmra.mrb[24].mxu0 %vm114_vm1, %v7407_v40 }
 0x25a   :  { %5669 = vmatpush3.bf16.msra.mxu1 %v7116_v5  ;;  %5693 = vmatpush3.bf16.msra.mxu0 %v6951_v42 }
 0x25b   :  { %5670 = vmatprep.subr.bf16.mxu1 %v6347_v0  ;;  %5694 = vmatprep.subr.bf16.mxu0 %v6347_v0 }
 0x25c   :  { %v7419_v41 = vpop.f32.mrb[16].mxu1  ;;  %5676 = vmatprep.mubr.msk.bf16.mxu1 %vm6348_vm0, %v6347_v0  ;;  %5700 = vmatprep.mubr.msk.bf16.mxu0 %vm6348_vm0, %v6347_v0 }
 0x25d   :  { %v2059_v43 = vmax.f32 %v7367_v35, %v7419_v41  ;;  %v5330_v44 = vpop.f32.mrb[17].mxu1 }
 0x25e   :  { %v7428_v45 = vpop.f32.mrb[18].mxu1  ;;  %5671 = vmatpush3.bf16.msra.mxu1 %v7132_v10  ;;  %5695 = vmatpush3.bf16.msra.mxu0 %v6969_v48 }
 0x25f   :  { %v2060_v46 = vmax.f32 %v7375_v38, %v7428_v45  ;;  %v5331_v47 = vpop.f32.mrb[19].mxu1  ;;  %5672 = vmatprep.subr.bf16.mxu1 %v6347_v0  ;;  %5696 = vmatprep.subr.bf16.mxu0 %v6347_v0  ;;  %v6215_v38 = vld [vmem:[#allocation7 + $0x70] ss:$8 sps:$4 sm:$0xff]  }
 0x262   :  { %5673 = vmatpush3.bf16.msra.mxu1 %v7225_v20  ;;  %5697 = vmatpush3.bf16.msra.mxu0 %v6975_v50 }
 0x263   :  { %5674 = vmatprep.subr.bf16.mxu1 %v6347_v0  ;;  %5698 = vmatprep.subr.bf16.mxu0 %v6347_v0 }
 0x266   :  { %5675 = vmatpush3.bf16.msra.mxu1 %v7231_v21  ;;  %5699 = vmatpush3.bf16.msra.mxu0 %v7038_v56 }
 0x267   :  { %5680 = vmatprep.subr.bf16.mxu1 %v6347_v0  ;;  %5704 = vmatprep.subr.bf16.mxu0 %v6347_v0 }
 0x269   :  { %5677 = vmatmul.mubr.msk.bf16.vlgmr.msra.gmra.mrb[28].mxu1 %vm114_vm1, %v7407_v40  ;;  %5701 = vmatmul.mubr.msk.bf16.vlgmr.msra.gmra.mrb[28].mxu0 %vm114_vm1, %v7322_v33 }
 0x26a   :  { %5681 = vmatpush3.bf16.msra.mxu1 %v7241_v22  ;;  %5705 = vmatpush3.bf16.msra.mxu0 %v6989_v51 }
 0x26b   :  { %5682 = vmatprep.subr.bf16.mxu1 %v6347_v0  ;;  %5706 = vmatprep.subr.bf16.mxu0 %v6347_v0 }
 0x26c   :  { %5688 = vmatprep.mubr.msk.bf16.mxu1 %vm6348_vm0, %v6347_v0  ;;  %5712 = vmatprep.mubr.msk.bf16.mxu0 %vm6348_vm0, %v6347_v0 }
 0x26e   :  { %5683 = vmatpush3.bf16.msra.mxu1 %v7251_v23  ;;  %5707 = vmatpush3.bf16.msra.mxu0 %v6999_v52 }
 0x26f   :  { %5684 = vmatprep.subr.bf16.mxu1 %v6347_v0  ;;  %5708 = vmatprep.subr.bf16.mxu0 %v6347_v0 }
 0x272   :  { %5685 = vmatpush3.bf16.msra.mxu1 %v7257_v24  ;;  %5709 = vmatpush3.bf16.msra.mxu0 %v7005_v53 }
 0x273   :  { %5686 = vmatprep.subr.bf16.mxu1 %v6347_v0  ;;  %5710 = vmatprep.subr.bf16.mxu0 %v6347_v0 }
 0x276   :  { %5687 = vmatpush3.bf16.msra.mxu1 %v7265_v26  ;;  %5711 = vmatpush3.bf16.msra.mxu0 %v7013_v55 }
 0x277   :  { %5752 = vmatprep.subr.bf16.mxu1 %v6347_v0  ;;  %5716 = vmatprep.subr.bf16.mxu0 %v6347_v0 }
 0x279   :  { %5689 = vmatmul.mubr.msk.bf16.vlgmr.msra.gmra.mrb[28].mxu1 %vm114_vm1, %v7464_v49  ;;  %5713 = vmatmul.mubr.msk.bf16.vlgmr.msra.gmra.mrb[28].mxu0 %vm114_vm1, %v7263_v25  ;;  %v6211_v25 = vld [vmem:[#allocation7 + $0x54] ss:$8 sps:$4 sm:$0xff]  }
 0x27a   :  { %5753 = vmatpush3.bf16.msra.mxu1 %v6951_v42  ;;  %5717 = vmatpush3.bf16.msra.mxu0 %v7082_v63 }
 0x27b   :  { %5754 = vmatprep.subr.bf16.mxu1 %v6347_v0  ;;  %5718 = vmatprep.subr.bf16.mxu0 %v6347_v0 }
 0x27c   :  { %5724 = vmatprep.mubr.msk.bf16.mxu0 %vm6348_vm0, %v6347_v0  ;;  %5760 = vmatprep.mubr.msk.bf16.mxu1 %vm6348_vm0, %v6347_v0 }
 0x27e   :  { %5755 = vmatpush3.bf16.msra.mxu1 %v6969_v48  ;;  %5719 = vmatpush3.bf16.msra.mxu0 %v7092_v1 }
 0x27f   :  { %5756 = vmatprep.subr.bf16.mxu1 %v6347_v0  ;;  %5720 = vmatprep.subr.bf16.mxu0 %v6347_v0 }
 0x282   :  { %5757 = vmatpush3.bf16.msra.mxu1 %v6975_v50  ;;  %5721 = vmatpush3.bf16.msra.mxu0 %v7098_v2 }
 0x283   :  { %5758 = vmatprep.subr.bf16.mxu1 %v6347_v0  ;;  %5722 = vmatprep.subr.bf16.mxu0 %v6347_v0 }
 0x286   :  { %5759 = vmatpush3.bf16.msra.mxu1 %v7038_v56  ;;  %5723 = vmatpush3.bf16.msra.mxu0 %v7104_v3 }
 0x287   :  { %5764 = vmatprep.subr.bf16.mxu1 %v6347_v0  ;;  %5728 = vmatprep.subr.bf16.mxu0 %v6347_v0 }
 0x289   :  { %5761 = vmatmul.mubr.msk.bf16.vlgmr.msra.gmra.mrb[32].mxu1 %vm114_vm1, %v7407_v40  ;;  %5725 = vmatmul.mubr.msk.bf16.vlgmr.msra.gmra.mrb[28].mxu0 %vm114_vm1, %v7407_v40 }
 0x28a   :  { %5765 = vmatpush3.bf16.msra.mxu1 %v6989_v51  ;;  %5729 = vmatpush3.bf16.msra.mxu0 %v7116_v5 }
 0x28b   :  { %5766 = vmatprep.subr.bf16.mxu1 %v6347_v0  ;;  %5730 = vmatprep.subr.bf16.mxu0 %v6347_v0 }
 0x28c   :  { %5736 = vmatprep.mubr.msk.bf16.mxu0 %vm6348_vm0, %v6347_v0  ;;  %v2274_v54 = vpop.f32.mrb[16].mxu0  ;;  %5772 = vmatprep.mubr.msk.bf16.mxu1 %vm6348_vm0, %v6347_v0 }
 0x28d   :  { %v7509_v57 = vmax.f32 %v2059_v43, %v2274_v54  ;;  %v5390_v58 = vpop.f32.mrb[17].mxu0 }
 0x28e   :  { %5767 = vmatpush3.bf16.msra.mxu1 %v6999_v52  ;;  %v2277_v59 = vpop.f32.mrb[18].mxu0  ;;  %5731 = vmatpush3.bf16.msra.mxu0 %v7132_v10 }
 0x28f   :  { %5768 = vmatprep.subr.bf16.mxu1 %v6347_v0  ;;  %v7517_v60 = vmax.f32 %v2060_v46, %v2277_v59  ;;  %v5391_v61 = vpop.f32.mrb[19].mxu0  ;;  %5732 = vmatprep.subr.bf16.mxu0 %v6347_v0 }
 0x290   :  { %v4408_v61 = vld [vmem:[%s7657_s2] ss:$0 sm:$0xff]  ;;  %s6350_s2 = smov [#allocation8]  }
 0x292   :  { %5769 = vmatpush3.bf16.msra.mxu1 %v7005_v53  ;;  %5733 = vmatpush3.bf16.msra.mxu0 %v7225_v20 }
 0x293   :  { %5770 = vmatprep.subr.bf16.mxu1 %v6347_v0  ;;  %5734 = vmatprep.subr.bf16.mxu0 %v6347_v0 }
 0x296   :  { %5771 = vmatpush3.bf16.msra.mxu1 %v7013_v55  ;;  %5735 = vmatpush3.bf16.msra.mxu0 %v7231_v21 }
 0x297   :  { %5776 = vmatprep.subr.bf16.mxu1 %v6347_v0  ;;  %5740 = vmatprep.subr.bf16.mxu0 %v6347_v0 }
 0x299   :  { %5773 = vmatmul.mubr.msk.bf16.vlgmr.msra.gmra.mrb[32].mxu1 %vm114_vm1, %v7322_v33  ;;  %5737 = vmatmul.mubr.msk.bf16.vlgmr.msra.gmra.mrb[28].mxu0 %vm114_vm1, %v7464_v49  ;;  %v6214_v33 = vld [vmem:[#allocation7 + $0x64] ss:$8 sps:$4 sm:$0xff]  }
 0x29a   :  { %5777 = vmatpush3.bf16.msra.mxu1 %v7082_v63  ;;  %5741 = vmatpush3.bf16.msra.mxu0 %v7241_v22 }
 0x29b   :  { %5778 = vmatprep.subr.bf16.mxu1 %v6347_v0  ;;  %5742 = vmatprep.subr.bf16.mxu0 %v6347_v0 }
 0x29c   :  { %5748 = vmatprep.mubr.msk.bf16.mxu0 %vm6348_vm0, %v6347_v0  ;;  %5784 = vmatprep.mubr.msk.bf16.mxu1 %vm6348_vm0, %v6347_v0 }
 0x29e   :  { %5779 = vmatpush3.bf16.msra.mxu1 %v7092_v1  ;;  %5743 = vmatpush3.bf16.msra.mxu0 %v7251_v23 }
 0x29f   :  { %5780 = vmatprep.subr.bf16.mxu1 %v6347_v0  ;;  %5744 = vmatprep.subr.bf16.mxu0 %v6347_v0 }
 0x2a2   :  { %5781 = vmatpush3.bf16.msra.mxu1 %v7098_v2  ;;  %5745 = vmatpush3.bf16.msra.mxu0 %v7257_v24 }
 0x2a3   :  { %5782 = vmatprep.subr.bf16.mxu1 %v6347_v0  ;;  %5746 = vmatprep.subr.bf16.mxu0 %v6347_v0 }
 0x2a6   :  { %5783 = vmatpush3.bf16.msra.mxu1 %v7104_v3  ;;  %5747 = vmatpush3.bf16.msra.mxu0 %v7265_v26 }
 0x2a7   :  { %5788 = vmatprep.subr.bf16.mxu1 %v6347_v0  ;;  %5812 = vmatprep.subr.bf16.mxu0 %v6347_v0 }
 0x2a9   :  { %5785 = vmatmul.mubr.msk.bf16.vlgmr.msra.gmra.mrb[32].mxu1 %vm114_vm1, %v7464_v49  ;;  %5749 = vmatmul.mubr.msk.bf16.vlgmr.msra.gmra.mrb[28].mxu0 %vm114_vm1, %v6191_v62 }
 0x2aa   :  { %5789 = vmatpush3.bf16.msra.mxu1 %v7116_v5  ;;  %5813 = vmatpush3.bf16.msra.mxu0 %v6951_v42 }
 0x2ab   :  { %5790 = vmatprep.subr.bf16.mxu1 %v6347_v0  ;;  %5814 = vmatprep.subr.bf16.mxu0 %v6347_v0 }
 0x2ac   :  { %v2498_v4 = vpop.f32.mrb[20].mxu1  ;;  %5796 = vmatprep.mubr.msk.bf16.mxu1 %vm6348_vm0, %v6347_v0  ;;  %5820 = vmatprep.mubr.msk.bf16.mxu0 %vm6348_vm0, %v6347_v0 }
 0x2ad   :  { %v2507_v6 = vmax.f32 %v7509_v57, %v2498_v4  ;;  %v5450_v7 = vpop.f32.mrb[21].mxu1 }
 0x2ae   :  { %v2501_v8 = vpop.f32.mrb[22].mxu1  ;;  %5791 = vmatpush3.bf16.msra.mxu1 %v7132_v10  ;;  %5815 = vmatpush3.bf16.msra.mxu0 %v6969_v48  ;;  %v6192_v48 = vld [vmem:[#allocation2 + $0x98] sm:$0xff]  }
 0x2af   :  { %v2508_v9 = vmax.f32 %v7517_v60, %v2501_v8  ;;  %v5451_v42 = vpop.f32.mrb[23].mxu1  ;;  %5792 = vmatprep.subr.bf16.mxu1 %v6347_v0  ;;  %5816 = vmatprep.subr.bf16.mxu0 %v6347_v0 }
 0x2b2   :  { %5793 = vmatpush3.bf16.msra.mxu1 %v7225_v20  ;;  %5817 = vmatpush3.bf16.msra.mxu0 %v6975_v50 }
 0x2b3   :  { %5794 = vmatprep.subr.bf16.mxu1 %v6347_v0  ;;  %5818 = vmatprep.subr.bf16.mxu0 %v6347_v0 }
 0x2b6   :  { %5795 = vmatpush3.bf16.msra.mxu1 %v7231_v21  ;;  %5819 = vmatpush3.bf16.msra.mxu0 %v7038_v56 }
 0x2b7   :  { %5800 = vmatprep.subr.bf16.mxu1 %v6347_v0  ;;  %5824 = vmatprep.subr.bf16.mxu0 %v6347_v0 }
 0x2b9   :  { %5797 = vmatmul.mubr.msk.bf16.vlgmr.msra.gmra.mrb[32].mxu1 %vm114_vm1, %v6191_v62  ;;  %5821 = vmatmul.mubr.msk.bf16.vlgmr.msra.gmra.mrb[32].mxu0 %vm114_vm1, %v7464_v49 }
 0x2ba   :  { %5801 = vmatpush3.bf16.msra.mxu1 %v7241_v22  ;;  %5825 = vmatpush3.bf16.msra.mxu0 %v6989_v51 }
 0x2bb   :  { %5802 = vmatprep.subr.bf16.mxu1 %v6347_v0  ;;  %5826 = vmatprep.subr.bf16.mxu0 %v6347_v0 }
 0x2bc   :  { %5808 = vmatprep.mubr.msk.bf16.mxu1 %vm6348_vm0, %v6347_v0  ;;  %5832 = vmatprep.mubr.msk.bf16.mxu0 %vm6348_vm0, %v6347_v0 }
 0x2be   :  { %5803 = vmatpush3.bf16.msra.mxu1 %v7251_v23  ;;  %5827 = vmatpush3.bf16.msra.mxu0 %v6999_v52 }
 0x2bf   :  { %5804 = vmatprep.subr.bf16.mxu1 %v6347_v0  ;;  %5828 = vmatprep.subr.bf16.mxu0 %v6347_v0 }
 0x2c2   :  { %5805 = vmatpush3.bf16.msra.mxu1 %v7257_v24  ;;  %5829 = vmatpush3.bf16.msra.mxu0 %v7005_v53 }
 0x2c3   :  { %5806 = vmatprep.subr.bf16.mxu1 %v6347_v0  ;;  %5830 = vmatprep.subr.bf16.mxu0 %v6347_v0 }
 0x2c6   :  { %5807 = vmatpush3.bf16.msra.mxu1 %v7265_v26  ;;  %5831 = vmatpush3.bf16.msra.mxu0 %v7013_v55 }
 0x2c7   :  { %5836 = vmatprep.subr.bf16.mxu0 %v6347_v0  ;;  %4197 = vmatprep.subr.bf16.mxu1 %v6196_v13 }
 0x2c9   :  { %5809 = vmatmul.mubr.msk.bf16.vlgmr.msra.gmra.mrb[32].mxu1 %vm114_vm1, %v6192_v48  ;;  %5833 = vmatmul.mubr.msk.bf16.vlgmr.msra.gmra.mrb[32].mxu0 %vm114_vm1, %v7407_v40 }
 0x2ca   :  { %5837 = vmatpush3.bf16.msra.mxu0 %v7082_v63  ;;  %5844 = vmatprep.mubr.msk.bf16.mxu0 %vm6348_vm0, %v6347_v0  ;;  %v6193_v63 = vld [vmem:[#allocation2 + $0xa0] sm:$0xff]  }
 0x2cb   :  { %5838 = vmatprep.subr.bf16.mxu0 %v6347_v0  ;;  %4198 = vmatpush1.bf16.msra.mxu1 %v6194_v12 }
 0x2cc   :  { %4199 = vmatprep.subr.bf16.mxu1 %v6199_v14  ;;  %4229 = vmatprep.mubr.bf16.mxu1 %v6349_v39 }
 0x2ce   :  { %5839 = vmatpush3.bf16.msra.mxu0 %v7092_v1 }
 0x2cf   :  { %5840 = vmatprep.subr.bf16.mxu0 %v6347_v0  ;;  %4200 = vmatpush1.bf16.msra.mxu1 %v6197_v15 }
 0x2d0   :  { %4201 = vmatprep.subr.bf16.mxu1 %v6202_v16 }
 0x2d2   :  { %5841 = vmatpush3.bf16.msra.mxu0 %v7098_v2 }
 0x2d3   :  { %5842 = vmatprep.subr.bf16.mxu0 %v6347_v0 }
 0x2d6   :  { %5843 = vmatpush3.bf16.msra.mxu0 %v7104_v3 }
 0x2d7   :  { %5848 = vmatprep.subr.bf16.mxu0 %v6347_v0 }
 0x2d9   :  { %5845 = vmatmul.mubr.msk.bf16.vlgmr.msra.gmra.mrb[32].mxu0 %vm114_vm1, %v6191_v62 }
 0x2da   :  { %5849 = vmatpush3.bf16.msra.mxu0 %v7116_v5  ;;  %5856 = vmatprep.mubr.msk.bf16.mxu0 %vm6348_vm0, %v6347_v0 }
 0x2db   :  { %5850 = vmatprep.subr.bf16.mxu0 %v6347_v0 }
 0x2dc   :  { %v2722_v50 = vpop.f32.mrb[20].mxu0 }
 0x2dd   :  { %v2731_v51 = vmax.f32 %v2507_v6, %v2722_v50  ;;  %v5510_v52 = vpop.f32.mrb[21].mxu0 }
 0x2de   :  { %v2725_v53 = vpop.f32.mrb[22].mxu0  ;;  %5851 = vmatpush3.bf16.msra.mxu0 %v7132_v10  ;;  %v4107_v52 = vlaneseq }
 0x2df   :  { %v2732_v55 = vmax.f32 %v2508_v9, %v2725_v53  ;;  %v5511_v56 = vpop.f32.mrb[23].mxu0  ;;  %5852 = vmatprep.subr.bf16.mxu0 %v6347_v0 }
 0x2e0   :  { %v4108_v53 = vshrl.u32 %v4107_v52, 7  ;;  %v4105_v56 = vld [vmem:[%s7659_s4] sm:$0x3]  ;;  %s4269_s4 = sshll.u32 %s6350_s2, 4  ;;  %s4270_s4 = int_to_ptr.vmem [resolvable:$true] %s4269_s4 }
 0x2e1   :  { %s6312_s9 = scalar_lea.vmem %s4270_s4, 256  ;;  %p6317_p11 = scmp.lt.s32.totalorder %s4270_s4, %s4270_s4 }
 0x2e2   :  { %5853 = vmatpush3.bf16.msra.mxu0 %v7225_v20  ;;  %v4109_v15 = vsub.s32 0, %v4108_v53  ;;  %p6313_p10 = scmp.ne.s32.totalorder %s4270_s4, %s6312_s9  ;;  %p6318_p12 = scmp.lt.s32.totalorder %s6312_s9, %s6312_s9 }
 0x2e3   :  { %5854 = vmatprep.subr.bf16.mxu0 %v6347_v0 }
 0x2e4   :  { %p6319_p13 = por %p6318_p12, %p6317_p11 }
 0x2e6   :  { %5855 = vmatpush3.bf16.msra.mxu0 %v7231_v21  ;;  %p6320_p0 = pnand %p6319_p13, %p6313_p10 }
 0x2e7   :  { %5860 = vmatprep.subr.bf16.mxu0 %v6347_v0 }
 0x2e9   :  { %5857 = vmatmul.mubr.msk.bf16.vlgmr.msra.gmra.mrb[32].mxu0 %vm114_vm1, %v6192_v48 }
 0x2ea   :  { %5861 = vmatpush3.bf16.msra.mxu0 %v7241_v22  ;;  %5868 = vmatprep.mubr.msk.bf16.mxu0 %vm6348_vm0, %v6347_v0 }
 0x2eb   :  { %5862 = vmatprep.subr.bf16.mxu0 %v6347_v0 }
 0x2ee   :  { %5863 = vmatpush3.bf16.msra.mxu0 %v7251_v23  ;;  %v6206_v23 = vld [vmem:[#allocation7 + $0x40] ss:$8 sps:$4 sm:$0xff]  }
 0x2ef   :  { %5864 = vmatprep.subr.bf16.mxu0 %v6347_v0 }
 0x2f2   :  { %5865 = vmatpush3.bf16.msra.mxu0 %v7257_v24 }
 0x2f3   :  { %5866 = vmatprep.subr.bf16.mxu0 %v6347_v0  ;;  %v6200_v0 = vld [vmem:[#allocation7 + $0x20] ss:$8 sps:$4 sm:$0xff]  }
 0x2f4   :  { %4202 = vmatpush1.bf16.msra.mxu1 %v6200_v0 }
 0x2f5   :  { %4203 = vmatprep.subr.bf16.mxu1 %v6205_v17 }
 0x2f6   :  { %5867 = vmatpush3.bf16.msra.mxu0 %v7265_v26 }
 0x2f8   :  { %4204 = vmatpush1.bf16.msra.mxu1 %v6203_v18  ;;  %v4110_v18 = vrot.slane %v4105_v56, %v4109_v15 }
 0x2f9   :  { %5869 = vmatmul.mubr.msk.bf16.vlgmr.msra.gmra.mrb[32].mxu0 %vm114_vm1, %v6193_v63  ;;  %4205 = vmatprep.subr.bf16.mxu1 %v6208_v19 }
 0x2fc   :  { %v2946_v1 = vpop.f32.mrb[24].mxu1  ;;  %4206 = vmatpush1.bf16.msra.mxu1 %v6206_v23 }
 0x2fd   :  { %v2955_v2 = vmax.f32 %v2731_v51, %v2946_v1  ;;  %v5570_v3 = vpop.f32.mrb[25].mxu1  ;;  %4207 = vmatprep.subr.bf16.mxu1 %v6211_v25 }
 0x2fe   :  { %v2949_v5 = vpop.f32.mrb[26].mxu1 }
 0x2ff   :  { %v2956_v10 = vmax.f32 %v2732_v55, %v2949_v5  ;;  %v5571_v11 = vpop.f32.mrb[27].mxu1  ;;  %v4113_v55 = vsub.s32 1, %v4108_v53 }
 0x300   :  { %4208 = vmatpush1.bf16.msra.mxu1 %v6209_v28 }
 0x301   :  { %4209 = vmatprep.subr.bf16.mxu1 %v6214_v33  ;;  %v4114_v63 = vrot.slane %v4105_v56, %v4113_v55 }
 0x304   :  { %4210 = vmatpush1.bf16.msra.mxu1 %v6212_v36 }
 0x305   :  { %4211 = vmatprep.subr.bf16.mxu1 %v6217_v37 }
 0x308   :  { %4212 = vmatpush1.bf16.msra.mxu1 %v6215_v38 }
 0x32c   :  { %v3170_v20 = vpop.f32.mrb[24].mxu0 }
 0x32d   :  { %v3179_v21 = vmax.f32 %v2955_v2, %v3170_v20  ;;  %v5630_v22 = vpop.f32.mrb[25].mxu0 }
 0x32e   :  { %v3173_v24 = vpop.f32.mrb[26].mxu0 }
 0x32f   :  { %v3180_v26 = vmax.f32 %v2956_v10, %v3173_v24  ;;  %v5631_v27 = vpop.f32.mrb[27].mxu0 }
 0x34c   :  { %v3394_v29 = vpop.f32.mrb[28].mxu1 }
 0x34d   :  { %v3403_v30 = vmax.f32 %v3179_v21, %v3394_v29  ;;  %v5690_v31 = vpop.f32.mrb[29].mxu1 }
 0x34e   :  { %v3397_v32 = vpop.f32.mrb[30].mxu1 }
 0x34f   :  { %v3404_v34 = vmax.f32 %v3180_v26, %v3397_v32  ;;  %v5691_v35 = vpop.f32.mrb[31].mxu1 }
 0x37c   :  { %v3618_v40 = vpop.f32.mrb[28].mxu0 }
 0x37d   :  { %v3627_v41 = vmax.f32 %v3403_v30, %v3618_v40  ;;  %v5750_v43 = vpop.f32.mrb[29].mxu0 }
 0x37e   :  { %v3621_v44 = vpop.f32.mrb[30].mxu0 }
 0x37f   :  { %v3628_v45 = vmax.f32 %v3404_v34, %v3621_v44  ;;  %v5751_v46 = vpop.f32.mrb[31].mxu0 }
 0x39c   :  { %v3842_v47 = vpop.f32.mrb[32].mxu1 }
 0x39d   :  { %v3851_v49 = vmax.f32 %v3627_v41, %v3842_v47  ;;  %v5810_v54 = vpop.f32.mrb[33].mxu1 }
 0x39e   :  { %v3845_v57 = vpop.f32.mrb[34].mxu1 }
 0x39f   :  { %v3852_v58 = vmax.f32 %v3628_v45, %v3845_v57  ;;  %v5811_v59 = vpop.f32.mrb[35].mxu1 }
 0x3cc   :  { %v4066_v60 = vpop.f32.mrb[32].mxu0 }
 0x3cd   :  { %v4075_v62 = vmax.f32 %v3851_v49, %v4066_v60  ;;  %v5870_v4 = vpop.f32.mrb[33].mxu0 }
 0x3ce   :  { %v4069_v6 = vpop.f32.mrb[34].mxu0 }
 0x3cf   :  { %v4084_v7 = vadd.f32 %v4408_v61, %v4075_v62  ;;  %v4076_v8 = vmax.f32 %v3852_v58, %v4069_v6  ;;  %v5871_v9 = vpop.f32.mrb[35].mxu0 }
 0x3d1   :  { %v4085_v42 = vadd.f32 %v4408_v61, %v4076_v8  ;;  %v4086_v48 = vmax.f32 %v4084_v7, 0.0 }
 0x3d3   :  { %v4087_v50 = vmax.f32 %v4085_v42, 0.0 }
 0x3d5   :  { %v4088_v51 = vpack.c.bf16 %v4087_v50, %v4086_v48 }
 0x3d7   :  { %4230 = vmatmul.mubr.bf16.vlgmr.msra.gmra.mrb[36].mxu1 %v4088_v51 }
 0x4aa   :  { %v4231_v1 = vpop.f32.mrb[36].mxu1 }
 0x4ab   :  { %v4233_v2 = vpop.f32.mrb[37].mxu1  ;;  %v4232_v19 = vadd.f32 %v4231_v1, %v4110_v18 }
 0x4ac   :  { %v4234_v3 = vadd.f32 %v4233_v2, %v4114_v63  ;;  %v4235_v5 = vpop.f32.mrb[38].mxu1 }
 0x4ad   :  { %v4237_v10 = vpop.f32.mrb[39].mxu1  ;;  %v4236_v20 = vadd.f32 %v4235_v5, %v4110_v18  ;;  %v4240_v21 = vmax.f32 %v4232_v19, 0.0 }
 0x4ae   :  { %v4425_v11 = vmul.f32 -1.442695, %v4234_v3  ;;  %v4238_v12 = vadd.f32 %v4237_v10, %v4114_v63 }
 0x4af   :  { %v4241_v23 = vmax.f32 %v4236_v20, 0.0 }
 0x4b0   :  { %6218 = vpow2.f32 %v4425_v11  ;;  %v4426_v13 = vmul.f32 -1.442695, %v4238_v12 }
 0x4b2   :  { %6220 = vpow2.f32 %v4426_v13 }
 0x4ba   :  { %v6219_v14 = vpop.eup %6218 }
 0x4bb   :  { %v4248_v16 = vadd.f32 1.0, %v6219_v14 }
 0x4bc   :  { %v6221_v0 = vpop.eup %6220 }
 0x4bd   :  { %6222 = vrcp.f32 %v4248_v16  ;;  %v4249_v17 = vadd.f32 1.0, %v6221_v0 }
 0x4bf   :  { %6224 = vrcp.f32 %v4249_v17 }
 0x4c7   :  { %v6223_v22 = vpop.eup %6222 }
 0x4c8   :  { %v4254_v24 = vmul.f32 %v6223_v22, %v4240_v21  ;;  %v4256_v25 = vsub.f32 1.0, %v6223_v22 }
 0x4c9   :  { %v6225_v26 = vpop.eup %6224 }
 0x4ca   :  { %v4255_v27 = vmul.f32 %v6225_v26, %v4241_v23  ;;  %v4257_v28 = vsub.f32 1.0, %v6225_v26  ;;  %v4258_v29 = vmul.f32 %v4256_v25, %v4086_v48 }
 0x4cc   :  { %v4259_v30 = vmul.f32 %v4257_v28, %v4087_v50  ;;  %v4260_v31 = vadd.f32 %v4258_v29, %v4254_v24 }
 0x4ce   :  { %v4261_v32 = vadd.f32 %v4259_v30, %v4255_v27  ;;  %4262 = vst [vmem:[#allocation8] sm:$0xff] %v4260_v31 }
 0x4d0   :  { %4263 = vst [vmem:[#allocation8 + $0x8] sm:$0xff] %v4261_v32 }
 0x4d1   :  { %6323 = shalt.err (!%p6320_p0)
}
 0x4d2   :  { %s6324_s12 = scalar_lea.hbm %s7660_s5, 256 }
 0x4d3   :  { %p6325_p1 = scmp.ne.s32.totalorder %s7660_s5, %s6324_s12  ;;  %p6328_p2 = scmp.lt.u32.totalorder %s6324_s12, %s7660_s5 }
 0x4d5   :  { %p6330_p3 = pnand %p6328_p2, %p6325_p1 }
 0x4d7   :  { %6333 = shalt.err (!%p6330_p3)
}
 0x4d8   :  { %4275 = dma.vmem_to_hbm [thread:$0]  %s4270_s4, 256, %s7660_s5, [#allocation4], %s6345_s0, %s6345_s0, %s6346_s21  }
 0x4d9   :  { %6338 = dma.done.wait [#allocation4], 256  }
 0x4da   :  { %6339 = vsyncadd [#allocation4], 4294967040 }
 0x4db   :  { %4279 = vsyncpa [#allocation3], 1 }
 0x4dc   :  { %4280 = vsyncpa [#allocation6], 1 }
 0x4dd   :  { %4281 = vsyncpa [#allocation4], 1 }

</bundles_post_ra>
